<compile_context>
chip_gen: v7x
topology: tpu7x:2x2x1
jax: 0.10.0
libtpu: 0.0.40
codegen_flags: <defaults>
</compile_context>

<pallas_src>
import functools
import math

import numpy as np
import jax
import jax.numpy as jnp
from jax.experimental import pallas as pl
from jax.experimental.pallas import tpu as pltpu


# ------------------------------------------------------------------ helpers

def _norm(x, alpha, bias, eps=1e-6):
    """Matches Norm.forward: alpha*(x-mean)/(std+eps)+bias, std unbiased (N-1)."""
    d = x.shape[-1]
    mean = jnp.mean(x, axis=-1, keepdims=True)
    xc = x - mean
    var = jnp.sum(xc * xc, axis=-1, keepdims=True) * (1.0 / (d - 1))
    inv = 1.0 / (jnp.sqrt(var) + eps)          # cheap (rows,1) column divide
    return alpha * (xc * inv) + bias


# ------------------------------------------------------------------ kernel

def fused_encoder_kernel(x_ref, mb_ref, pe_ref,
                         wqkv_ref, wo_ref,
                         a1_ref, b1n_ref, a2_ref, b2n_ref,
                         w1_ref, bf1_ref, w2_ref, bf2_ref,
                         af_ref, bf_ref,
                         o_ref, *, num_layers, num_heads, emb_scale):
    Bt, S, D = x_ref.shape
    hd = D // num_heads
    R = Bt * S

    # ---- embedding scale + positional encoding, then flatten (Bt,S,D)->(R,D)
    x3 = x_ref[...].astype(jnp.float32) * emb_scale + pe_ref[...][None, :, :]
    x = x3.reshape(R, D)

    for l in range(num_layers):                              # static layer loop
        # ---- norm_1
        xn = _norm(x, a1_ref[l], b1n_ref[l])                 # (R, D)

        # ---- fused QKV projection: one (R,D)x(D,3D) MXU matmul per layer.
        # 1/sqrt(dim_k) is already folded into the Q columns of wqkv.
        qkv = jnp.dot(xn, wqkv_ref[l], preferred_element_type=jnp.float32)  # (R, 3D)

        # ---- per-(batch, head) attention on small (S,S) tiles
        batch_rows = []
        for bt in range(Bt):                                 # static batch loop
            r0 = bt * S
            mb = mb_ref[bt]                                  # (S, S) additive bias
            head_outs = []
            for h in range(num_heads):                       # static head loop
                c = h * hd
                q = qkv[r0:r0 + S, c:c + hd]
                k = qkv[r0:r0 + S, D + c:D + c + hd]
                v = qkv[r0:r0 + S, 2 * D + c:2 * D + c + hd]
                s = jnp.dot(q, k.T, preferred_element_type=jnp.float32) + mb
                s = s - jnp.max(s, axis=-1, keepdims=True)
                p = jnp.exp(s)
                p = p / jnp.sum(p, axis=-1, keepdims=True)
                head_outs.append(
                    jnp.dot(p, v, preferred_element_type=jnp.float32))  # (S, hd)
            batch_rows.append(jnp.concatenate(head_outs, axis=-1))      # (S, D)
        attn_concat = jnp.concatenate(batch_rows, axis=0)               # (R, D)

        # ---- fused output projection: single (R,D)x(D,D) matmul per layer
        attn = jnp.dot(attn_concat, wo_ref[l],
                       preferred_element_type=jnp.float32)              # (R, D)

        # ---- add & norm + feed-forward
        h1 = attn + x                                        # residual 1
        hn = _norm(h1, a2_ref[l], b2n_ref[l])
        ff = jnp.dot(hn, w1_ref[l],
                     preferred_element_type=jnp.float32) + bf1_ref[l]
        ff = jnp.maximum(ff, 0.0)
        ff = jnp.dot(ff, w2_ref[l],
                     preferred_element_type=jnp.float32) + bf2_ref[l]
        x = ff + h1                                          # residual 2

    # ---- final Norm
    out = _norm(x, af_ref[...], bf_ref[...])
    o_ref[...] = out.reshape(Bt, S, D).astype(o_ref.dtype)


# ------------------------------------------------------------------ wrapper

def run_trans_encoder(x, mask, packed, *, num_layers, num_heads, dim_model,
                      block_b=None):
    B, S, D = x.shape
    Fdim = packed["w1"].shape[-1]
    L = num_layers
    Bt = B if block_b is None else block_b
    assert B % Bt == 0, "batch must be divisible by block_b"

    # Additive mask bias precomputed on the host: (mask==0) -> -1e9, else 0.
    mask_bias = jnp.where(mask == 0.0, jnp.float32(-1e9), jnp.float32(0.0))

    kern = functools.partial(fused_encoder_kernel,
                             num_layers=num_layers, num_heads=num_heads,
                             emb_scale=math.sqrt(dim_model))

    def const(shape):
        return pl.BlockSpec(shape, lambda b: (0,) * len(shape))

    return pl.pallas_call(
        kern,
        out_shape=jax.ShapeDtypeStruct((B, S, D), x.dtype),
        grid=(B // Bt,),
        in_specs=[
            pl.BlockSpec((Bt, S, D), lambda b: (b, 0, 0)),    # x
            pl.BlockSpec((Bt, S, S), lambda b: (b, 0, 0)),    # mask bias
            const((S, D)),                                    # positional encoding
            const((L, D, 3 * D)),                             # fused wqkv
            const((L, D, D)),                                 # wo
            const((L, 1, D)), const((L, 1, D)),               # alpha1, bias1
            const((L, 1, D)), const((L, 1, D)),               # alpha2, bias2
            const((L, D, Fdim)), const((L, 1, Fdim)),         # w1, b1
            const((L, Fdim, D)), const((L, 1, D)),            # w2, b2
            const((1, D)), const((1, D)),                     # final alpha, bias
        ],
        out_specs=pl.BlockSpec((Bt, S, D), lambda b: (b, 0, 0)),
        compiler_params=pltpu.CompilerParams(
            dimension_semantics=("parallel",),
            vmem_limit_bytes=64 * 1024 * 1024),
    )(x, mask_bias, packed["pe"], packed["wqkv"], packed["wo"],
      packed["alpha1"], packed["bias1"], packed["alpha2"], packed["bias2"],
      packed["w1"], packed["b1"], packed["w2"], packed["b2"],
      packed["alpha_f"], packed["bias_f"])


# ------------------------------------------------------------------ params

def make_pos_encoding(seq_len, dim_model):
    """Exactly reproduces the double loop in Trans_encoder.__init__."""
    pe = np.zeros((seq_len, dim_model), dtype=np.float32)
    for pos in range(seq_len):
        for i in range(0, dim_model, 2):
            pe[pos, i] = math.sin(pos / 10000 ** (2 * i / dim_model))
            pe[pos, i + 1] = math.cos(pos / 10000 ** (2 * (i + 1) / dim_model))
    return jnp.asarray(pe)


def init_params(key, dim_model, dim_ff, num_layers):
    def uni(k, shape, fan_in):
        bound = 1.0 / math.sqrt(fan_in)
        return jax.random.uniform(k, shape, jnp.float32, -bound, bound)

    layers = []
    for _ in range(num_layers):
        key, *ks = jax.random.split(key, 9)
        layers.append({
            "wq": uni(ks[0], (dim_model, dim_model), dim_model),
            "wk": uni(ks[1], (dim_model, dim_model), dim_model),
            "wv": uni(ks[2], (dim_model, dim_model), dim_model),
            "wo": uni(ks[3], (dim_model, dim_model), dim_model),
            "w1": uni(ks[4], (dim_model, dim_ff), dim_model),
            "b1": uni(ks[5], (1, dim_ff), dim_model),
            "w2": uni(ks[6], (dim_ff, dim_model), dim_ff),
            "b2": uni(ks[7], (1, dim_model), dim_ff),
            "alpha1": jnp.ones((1, dim_model), jnp.float32),
            "bias1": jnp.zeros((1, dim_model), jnp.float32),
            "alpha2": jnp.ones((1, dim_model), jnp.float32),
            "bias2": jnp.zeros((1, dim_model), jnp.float32),
        })
    final = {"alpha": jnp.ones((1, dim_model), jnp.float32),
             "bias": jnp.zeros((1, dim_model), jnp.float32)}
    return {"layers": layers, "final": final}


def pack_params(params, *, num_heads, dim_k, seq_len, dim_model):
    """Stack per-layer weights, fuse Q|K|V into one (L, D, 3D) weight, and
    fold the 1/sqrt(dim_k) scale into the Q columns (one-time host work)."""
    L = len(params["layers"])
    D = dim_model

    def stack(name):
        return jnp.stack([lp[name] for lp in params["layers"]], axis=0)

    scale = 1.0 / math.sqrt(dim_k)   # folded into the Q projection weights
    wqkv = jnp.concatenate([stack("wq") * scale, stack("wk"), stack("wv")],
                           axis=-1)                    # (L, D, 3D)
    return {
        "pe": make_pos_encoding(seq_len, D),
        "wqkv": wqkv.astype(jnp.float32),
        "wo": stack("wo").astype(jnp.float32),
        "w1": stack("w1").astype(jnp.float32),
        "b1": stack("b1"),
        "w2": stack("w2").astype(jnp.float32),
        "b2": stack("b2"),
        "alpha1": stack("alpha1"), "bias1": stack("bias1"),
        "alpha2": stack("alpha2"), "bias2": stack("bias2"),
        "alpha_f": params["final"]["alpha"],
        "bias_f": params["final"]["bias"],
    }


# ------------------------------------------------------------------ reference

def reference_forward(x, mask, params, pe, *, num_heads, dim_k):
    """Pure-JAX mirror of the PyTorch module (eval mode, dropout = identity)."""
    B, S, D = x.shape
    hd = D // num_heads

    def norm(v, alpha, bias, eps=1e-6):
        mean = jnp.mean(v, axis=-1, keepdims=True)
        std = jnp.std(v, axis=-1, keepdims=True, ddof=1)
        return alpha * (v - mean) / (std + eps) + bias

    h = x * math.sqrt(D) + pe[None]
    for lp in params["layers"]:
        hn = norm(h, lp["alpha1"], lp["bias1"])
        q = (hn @ lp["wq"]).reshape(B, S, num_heads, hd).transpose(0, 2, 1, 3)
        k = (hn @ lp["wk"]).reshape(B, S, num_heads, hd).transpose(0, 2, 1, 3)
        v = (hn @ lp["wv"]).reshape(B, S, num_heads, hd).transpose(0, 2, 1, 3)
        s = jnp.einsum("bhqd,bhkd->bhqk", q, k) / math.sqrt(dim_k)
        s = jnp.where(mask[:, None] == 0.0, -1e9, s)
        p = jax.nn.softmax(s, axis=-1)
        attn = jnp.einsum("bhqk,bhkd->bhqd", p, v)
        attn = attn.transpose(0, 2, 1, 3).reshape(B, S, D) @ lp["wo"]
        h1 = attn + h
        hn2 = norm(h1, lp["alpha2"], lp["bias2"])
        ff = jnp.maximum(hn2 @ lp["w1"] + lp["b1"], 0.0)
        ff = ff @ lp["w2"] + lp["b2"]
        h = ff + h1
    return norm(h, params["final"]["alpha"], params["final"]["bias"])


# ------------------------------------------------------------------ main

if __name__ == "__main__":
    B, S, D = 4, 16, 128          # batch, seq_len, dim_model (lane-dense output)
    H, FF, L = 4, 256, 2          # num_heads, dim_ff, num_layers
    Bt = 2                        # batch rows per grid step -> grid = (2,)
    dim_k = D // H                # per-head key dim used for the 1/sqrt scale

    key = jax.random.PRNGKey(0)
    kx, km, kp = jax.random.split(key, 3)

    x = jax.random.normal(kx, (B, S, D), jnp.float32)
    mask = (jax.random.uniform(km, (B, S, S)) > 0.2).astype(jnp.float32)
    mask = mask.at[:, :, 0].set(1.0)   # avoid fully-masked rows

    params = init_params(kp, D, FF, L)
    packed = pack_params(params, num_heads=H, dim_k=dim_k, seq_len=S, dim_model=D)

    out = run_trans_encoder(x, mask, packed,
                            num_layers=L, num_heads=H, dim_model=D, block_b=Bt)
    out = jax.block_until_ready(out)

    ref = reference_forward(x, mask, params, packed["pe"],
                            num_heads=H, dim_k=dim_k)

    assert out.shape == (B, S, D)
    assert bool(jnp.all(jnp.isfinite(out)))
    assert float(jnp.max(jnp.abs(out - ref))) < 1e-2
    print("KERNEL_OK")
</pallas_src>

<mosaic_0001>
module attributes {stable_mosaic.version = 11 : i64} {
  func.func @fused_encoder_kernel(%arg0: i32, %arg1: memref<2x16x128xf32, #tpu.memory_space<vmem>>, %arg2: memref<2x16x16xf32, #tpu.memory_space<vmem>>, %arg3: memref<16x128xf32, #tpu.memory_space<vmem>>, %arg4: memref<2x128x384xf32, #tpu.memory_space<vmem>>, %arg5: memref<2x128x128xf32, #tpu.memory_space<vmem>>, %arg6: memref<2x1x128xf32, #tpu.memory_space<vmem>>, %arg7: memref<2x1x128xf32, #tpu.memory_space<vmem>>, %arg8: memref<2x1x128xf32, #tpu.memory_space<vmem>>, %arg9: memref<2x1x128xf32, #tpu.memory_space<vmem>>, %arg10: memref<2x128x256xf32, #tpu.memory_space<vmem>>, %arg11: memref<2x1x256xf32, #tpu.memory_space<vmem>>, %arg12: memref<2x256x128xf32, #tpu.memory_space<vmem>>, %arg13: memref<2x1x128xf32, #tpu.memory_space<vmem>>, %arg14: memref<1x128xf32, #tpu.memory_space<vmem>>, %arg15: memref<1x128xf32, #tpu.memory_space<vmem>>, %arg16: memref<2x16x128xf32, #tpu.memory_space<vmem>>) attributes {dimension_semantics = [#tpu.dimension_semantics<parallel>], iteration_bounds = array<i64: 2>, scalar_prefetch = 0 : i64, scratch_operands = 0 : i64, tpu.core_type = #tpu.core_type<tc>, window_params = [{transform_indices = @transform_0, window_bounds = array<i64: 2, 16, 128>}, {transform_indices = @transform_1, window_bounds = array<i64: 2, 16, 16>}, {pipeline_mode = #tpu.pipeline_mode<synchronous>, transform_indices = @transform_2, window_bounds = array<i64: 16, 128>}, {pipeline_mode = #tpu.pipeline_mode<synchronous>, transform_indices = @transform_3, window_bounds = array<i64: 2, 128, 384>}, {pipeline_mode = #tpu.pipeline_mode<synchronous>, transform_indices = @transform_4, window_bounds = array<i64: 2, 128, 128>}, {pipeline_mode = #tpu.pipeline_mode<synchronous>, transform_indices = @transform_5, window_bounds = array<i64: 2, 1, 128>}, {pipeline_mode = #tpu.pipeline_mode<synchronous>, transform_indices = @transform_6, window_bounds = array<i64: 2, 1, 128>}, {pipeline_mode = #tpu.pipeline_mode<synchronous>, transform_indices = @transform_7, window_bounds = array<i64: 2, 1, 128>}, {pipeline_mode = #tpu.pipeline_mode<synchronous>, transform_indices = @transform_8, window_bounds = array<i64: 2, 1, 128>}, {pipeline_mode = #tpu.pipeline_mode<synchronous>, transform_indices = @transform_9, window_bounds = array<i64: 2, 128, 256>}, {pipeline_mode = #tpu.pipeline_mode<synchronous>, transform_indices = @transform_10, window_bounds = array<i64: 2, 1, 256>}, {pipeline_mode = #tpu.pipeline_mode<synchronous>, transform_indices = @transform_11, window_bounds = array<i64: 2, 256, 128>}, {pipeline_mode = #tpu.pipeline_mode<synchronous>, transform_indices = @transform_12, window_bounds = array<i64: 2, 1, 128>}, {pipeline_mode = #tpu.pipeline_mode<synchronous>, transform_indices = @transform_13, window_bounds = array<i64: 1, 128>}, {pipeline_mode = #tpu.pipeline_mode<synchronous>, transform_indices = @transform_14, window_bounds = array<i64: 1, 128>}, {transform_indices = @transform_15, window_bounds = array<i64: 2, 16, 128>}]} {
    %c0 = arith.constant 0 : index
    %c0_0 = arith.constant 0 : index
    %c0_1 = arith.constant 0 : index
    %0 = vector.load %arg1[%c0, %c0_0, %c0_1] : memref<2x16x128xf32, #tpu.memory_space<vmem>>, vector<2x16x128xf32>
    %cst = arith.constant 11.3137083 : f32
    %1 = vector.broadcast %cst : f32 to vector<2x16x128xf32>
    %2 = arith.mulf %0, %1 : vector<2x16x128xf32>
    %c0_2 = arith.constant 0 : index
    %c0_3 = arith.constant 0 : index
    %3 = vector.load %arg3[%c0_2, %c0_3] : memref<16x128xf32, #tpu.memory_space<vmem>>, vector<16x128xf32>
    %4 = vector.shape_cast %3 : vector<16x128xf32> to vector<1x16x128xf32>
    %5 = vector.broadcast %4 : vector<1x16x128xf32> to vector<2x16x128xf32>
    %6 = arith.addf %2, %5 : vector<2x16x128xf32>
    %7 = vector.shape_cast %6 : vector<2x16x128xf32> to vector<32x128xf32>
    %c0_4 = arith.constant 0 : index
    %c0_5 = arith.constant 0 : index
    %c0_6 = arith.constant 0 : index
    %8 = vector.load %arg6[%c0_4, %c0_5, %c0_6] : memref<2x1x128xf32, #tpu.memory_space<vmem>>, vector<1x1x128xf32>
    %9 = vector.shape_cast %8 : vector<1x1x128xf32> to vector<1x128xf32>
    %c0_7 = arith.constant 0 : index
    %c0_8 = arith.constant 0 : index
    %c0_9 = arith.constant 0 : index
    %10 = vector.load %arg7[%c0_7, %c0_8, %c0_9] : memref<2x1x128xf32, #tpu.memory_space<vmem>>, vector<1x1x128xf32>
    %11 = vector.shape_cast %10 : vector<1x1x128xf32> to vector<1x128xf32>
    %cst_10 = arith.constant dense<0.000000e+00> : vector<32xf32>
    %12 = vector.multi_reduction <add>, %7, %cst_10 [1] : vector<32x128xf32> to vector<32xf32>
    %13 = vector.shape_cast %12 : vector<32xf32> to vector<32x1xf32>
    %cst_11 = arith.constant 1.280000e+02 : f32
    %14 = vector.broadcast %cst_11 : f32 to vector<32x1xf32>
    %15 = arith.divf %13, %14 : vector<32x1xf32>
    %16 = vector.broadcast %15 : vector<32x1xf32> to vector<32x128xf32>
    %17 = arith.subf %7, %16 : vector<32x128xf32>
    %18 = arith.mulf %17, %17 : vector<32x128xf32>
    %cst_12 = arith.constant dense<0.000000e+00> : vector<32xf32>
    %19 = vector.multi_reduction <add>, %18, %cst_12 [1] : vector<32x128xf32> to vector<32xf32>
    %20 = vector.shape_cast %19 : vector<32xf32> to vector<32x1xf32>
    %cst_13 = arith.constant 0.00787401571 : f32
    %21 = vector.broadcast %cst_13 : f32 to vector<32x1xf32>
    %22 = arith.mulf %20, %21 : vector<32x1xf32>
    %23 = math.sqrt %22 : vector<32x1xf32>
    %cst_14 = arith.constant 9.99999997E-7 : f32
    %24 = vector.broadcast %cst_14 : f32 to vector<32x1xf32>
    %25 = arith.addf %23, %24 : vector<32x1xf32>
    %cst_15 = arith.constant 1.000000e+00 : f32
    %26 = vector.broadcast %cst_15 : f32 to vector<32x1xf32>
    %27 = arith.divf %26, %25 : vector<32x1xf32>
    %28 = vector.broadcast %27 : vector<32x1xf32> to vector<32x128xf32>
    %29 = arith.mulf %17, %28 : vector<32x128xf32>
    %30 = vector.broadcast %9 : vector<1x128xf32> to vector<32x128xf32>
    %31 = arith.mulf %30, %29 : vector<32x128xf32>
    %32 = vector.broadcast %11 : vector<1x128xf32> to vector<32x128xf32>
    %33 = arith.addf %31, %32 : vector<32x128xf32>
    %c0_16 = arith.constant 0 : index
    %c0_17 = arith.constant 0 : index
    %c0_18 = arith.constant 0 : index
    %34 = vector.load %arg4[%c0_16, %c0_17, %c0_18] : memref<2x128x384xf32, #tpu.memory_space<vmem>>, vector<1x128x384xf32>
    %35 = vector.shape_cast %34 : vector<1x128x384xf32> to vector<128x384xf32>
    %cst_19 = arith.constant dense<0.000000e+00> : vector<32x384xf32>
    %36 = tpu.matmul %33, %35, %cst_19 {dimension_numbers = #tpu.dot_dimension_numbers<[1], [0], [0], [1], [0, 0, 1, 1], [], []>} : vector<32x128xf32>, vector<128x384xf32>, vector<32x384xf32> -> vector<32x384xf32>
    %c0_20 = arith.constant 0 : index
    %c0_21 = arith.constant 0 : index
    %c0_22 = arith.constant 0 : index
    %37 = vector.load %arg2[%c0_20, %c0_21, %c0_22] : memref<2x16x16xf32, #tpu.memory_space<vmem>>, vector<1x16x16xf32>
    %38 = vector.shape_cast %37 : vector<1x16x16xf32> to vector<16x16xf32>
    %39 = vector.extract_strided_slice %36 {offsets = [0, 0], sizes = [16, 32], strides = [1, 1]} : vector<32x384xf32> to vector<16x32xf32>
    %40 = vector.extract_strided_slice %36 {offsets = [0, 128], sizes = [16, 32], strides = [1, 1]} : vector<32x384xf32> to vector<16x32xf32>
    %41 = vector.extract_strided_slice %36 {offsets = [0, 256], sizes = [16, 32], strides = [1, 1]} : vector<32x384xf32> to vector<16x32xf32>
    %42 = tpu.transpose %40, [1, 0] : vector<16x32xf32> -> vector<32x16xf32>
    %cst_23 = arith.constant dense<0.000000e+00> : vector<16x16xf32>
    %43 = tpu.matmul %39, %42, %cst_23 {dimension_numbers = #tpu.dot_dimension_numbers<[1], [0], [0], [1], [0, 0, 1, 1], [], []>} : vector<16x32xf32>, vector<32x16xf32>, vector<16x16xf32> -> vector<16x16xf32>
    %44 = arith.addf %43, %38 : vector<16x16xf32>
    %cst_24 = arith.constant dense<0xFF800000> : vector<16xf32>
    %45 = vector.multi_reduction <maximumf>, %44, %cst_24 [1] : vector<16x16xf32> to vector<16xf32>
    %46 = vector.shape_cast %45 : vector<16xf32> to vector<16x1xf32>
    %47 = vector.broadcast %46 : vector<16x1xf32> to vector<16x16xf32>
    %48 = arith.subf %44, %47 : vector<16x16xf32>
    %49 = math.exp %48 : vector<16x16xf32>
    %cst_25 = arith.constant dense<0.000000e+00> : vector<16xf32>
    %50 = vector.multi_reduction <add>, %49, %cst_25 [1] : vector<16x16xf32> to vector<16xf32>
    %51 = vector.shape_cast %50 : vector<16xf32> to vector<16x1xf32>
    %52 = vector.broadcast %51 : vector<16x1xf32> to vector<16x16xf32>
    %53 = arith.divf %49, %52 : vector<16x16xf32>
    %cst_26 = arith.constant dense<0.000000e+00> : vector<16x32xf32>
    %54 = tpu.matmul %53, %41, %cst_26 {dimension_numbers = #tpu.dot_dimension_numbers<[1], [0], [0], [1], [0, 0, 1, 1], [], []>} : vector<16x16xf32>, vector<16x32xf32>, vector<16x32xf32> -> vector<16x32xf32>
    %55 = vector.extract_strided_slice %36 {offsets = [0, 32], sizes = [16, 32], strides = [1, 1]} : vector<32x384xf32> to vector<16x32xf32>
    %56 = vector.extract_strided_slice %36 {offsets = [0, 160], sizes = [16, 32], strides = [1, 1]} : vector<32x384xf32> to vector<16x32xf32>
    %57 = vector.extract_strided_slice %36 {offsets = [0, 288], sizes = [16, 32], strides = [1, 1]} : vector<32x384xf32> to vector<16x32xf32>
    %58 = tpu.transpose %56, [1, 0] : vector<16x32xf32> -> vector<32x16xf32>
    %cst_27 = arith.constant dense<0.000000e+00> : vector<16x16xf32>
    %59 = tpu.matmul %55, %58, %cst_27 {dimension_numbers = #tpu.dot_dimension_numbers<[1], [0], [0], [1], [0, 0, 1, 1], [], []>} : vector<16x32xf32>, vector<32x16xf32>, vector<16x16xf32> -> vector<16x16xf32>
    %60 = arith.addf %59, %38 : vector<16x16xf32>
    %cst_28 = arith.constant dense<0xFF800000> : vector<16xf32>
    %61 = vector.multi_reduction <maximumf>, %60, %cst_28 [1] : vector<16x16xf32> to vector<16xf32>
    %62 = vector.shape_cast %61 : vector<16xf32> to vector<16x1xf32>
    %63 = vector.broadcast %62 : vector<16x1xf32> to vector<16x16xf32>
    %64 = arith.subf %60, %63 : vector<16x16xf32>
    %65 = math.exp %64 : vector<16x16xf32>
    %cst_29 = arith.constant dense<0.000000e+00> : vector<16xf32>
    %66 = vector.multi_reduction <add>, %65, %cst_29 [1] : vector<16x16xf32> to vector<16xf32>
    %67 = vector.shape_cast %66 : vector<16xf32> to vector<16x1xf32>
    %68 = vector.broadcast %67 : vector<16x1xf32> to vector<16x16xf32>
    %69 = arith.divf %65, %68 : vector<16x16xf32>
    %cst_30 = arith.constant dense<0.000000e+00> : vector<16x32xf32>
    %70 = tpu.matmul %69, %57, %cst_30 {dimension_numbers = #tpu.dot_dimension_numbers<[1], [0], [0], [1], [0, 0, 1, 1], [], []>} : vector<16x16xf32>, vector<16x32xf32>, vector<16x32xf32> -> vector<16x32xf32>
    %71 = vector.extract_strided_slice %36 {offsets = [0, 64], sizes = [16, 32], strides = [1, 1]} : vector<32x384xf32> to vector<16x32xf32>
    %72 = vector.extract_strided_slice %36 {offsets = [0, 192], sizes = [16, 32], strides = [1, 1]} : vector<32x384xf32> to vector<16x32xf32>
    %73 = vector.extract_strided_slice %36 {offsets = [0, 320], sizes = [16, 32], strides = [1, 1]} : vector<32x384xf32> to vector<16x32xf32>
    %74 = tpu.transpose %72, [1, 0] : vector<16x32xf32> -> vector<32x16xf32>
    %cst_31 = arith.constant dense<0.000000e+00> : vector<16x16xf32>
    %75 = tpu.matmul %71, %74, %cst_31 {dimension_numbers = #tpu.dot_dimension_numbers<[1], [0], [0], [1], [0, 0, 1, 1], [], []>} : vector<16x32xf32>, vector<32x16xf32>, vector<16x16xf32> -> vector<16x16xf32>
    %76 = arith.addf %75, %38 : vector<16x16xf32>
    %cst_32 = arith.constant dense<0xFF800000> : vector<16xf32>
    %77 = vector.multi_reduction <maximumf>, %76, %cst_32 [1] : vector<16x16xf32> to vector<16xf32>
    %78 = vector.shape_cast %77 : vector<16xf32> to vector<16x1xf32>
    %79 = vector.broadcast %78 : vector<16x1xf32> to vector<16x16xf32>
    %80 = arith.subf %76, %79 : vector<16x16xf32>
    %81 = math.exp %80 : vector<16x16xf32>
    %cst_33 = arith.constant dense<0.000000e+00> : vector<16xf32>
    %82 = vector.multi_reduction <add>, %81, %cst_33 [1] : vector<16x16xf32> to vector<16xf32>
    %83 = vector.shape_cast %82 : vector<16xf32> to vector<16x1xf32>
    %84 = vector.broadcast %83 : vector<16x1xf32> to vector<16x16xf32>
    %85 = arith.divf %81, %84 : vector<16x16xf32>
    %cst_34 = arith.constant dense<0.000000e+00> : vector<16x32xf32>
    %86 = tpu.matmul %85, %73, %cst_34 {dimension_numbers = #tpu.dot_dimension_numbers<[1], [0], [0], [1], [0, 0, 1, 1], [], []>} : vector<16x16xf32>, vector<16x32xf32>, vector<16x32xf32> -> vector<16x32xf32>
    %87 = vector.extract_strided_slice %36 {offsets = [0, 96], sizes = [16, 32], strides = [1, 1]} : vector<32x384xf32> to vector<16x32xf32>
    %88 = vector.extract_strided_slice %36 {offsets = [0, 224], sizes = [16, 32], strides = [1, 1]} : vector<32x384xf32> to vector<16x32xf32>
    %89 = vector.extract_strided_slice %36 {offsets = [0, 352], sizes = [16, 32], strides = [1, 1]} : vector<32x384xf32> to vector<16x32xf32>
    %90 = tpu.transpose %88, [1, 0] : vector<16x32xf32> -> vector<32x16xf32>
    %cst_35 = arith.constant dense<0.000000e+00> : vector<16x16xf32>
    %91 = tpu.matmul %87, %90, %cst_35 {dimension_numbers = #tpu.dot_dimension_numbers<[1], [0], [0], [1], [0, 0, 1, 1], [], []>} : vector<16x32xf32>, vector<32x16xf32>, vector<16x16xf32> -> vector<16x16xf32>
    %92 = arith.addf %91, %38 : vector<16x16xf32>
    %cst_36 = arith.constant dense<0xFF800000> : vector<16xf32>
    %93 = vector.multi_reduction <maximumf>, %92, %cst_36 [1] : vector<16x16xf32> to vector<16xf32>
    %94 = vector.shape_cast %93 : vector<16xf32> to vector<16x1xf32>
    %95 = vector.broadcast %94 : vector<16x1xf32> to vector<16x16xf32>
    %96 = arith.subf %92, %95 : vector<16x16xf32>
    %97 = math.exp %96 : vector<16x16xf32>
    %cst_37 = arith.constant dense<0.000000e+00> : vector<16xf32>
    %98 = vector.multi_reduction <add>, %97, %cst_37 [1] : vector<16x16xf32> to vector<16xf32>
    %99 = vector.shape_cast %98 : vector<16xf32> to vector<16x1xf32>
    %100 = vector.broadcast %99 : vector<16x1xf32> to vector<16x16xf32>
    %101 = arith.divf %97, %100 : vector<16x16xf32>
    %cst_38 = arith.constant dense<0.000000e+00> : vector<16x32xf32>
    %102 = tpu.matmul %101, %89, %cst_38 {dimension_numbers = #tpu.dot_dimension_numbers<[1], [0], [0], [1], [0, 0, 1, 1], [], []>} : vector<16x16xf32>, vector<16x32xf32>, vector<16x32xf32> -> vector<16x32xf32>
    %103 = tpu.concatenate %54, %70, %86, %102 in 1 : vector<16x32xf32>, vector<16x32xf32>, vector<16x32xf32>, vector<16x32xf32> -> vector<16x128xf32>
    %c1 = arith.constant 1 : index
    %c0_39 = arith.constant 0 : index
    %c0_40 = arith.constant 0 : index
    %104 = vector.load %arg2[%c1, %c0_39, %c0_40] : memref<2x16x16xf32, #tpu.memory_space<vmem>>, vector<1x16x16xf32>
    %105 = vector.shape_cast %104 : vector<1x16x16xf32> to vector<16x16xf32>
    %106 = vector.extract_strided_slice %36 {offsets = [16, 0], sizes = [16, 32], strides = [1, 1]} : vector<32x384xf32> to vector<16x32xf32>
    %107 = vector.extract_strided_slice %36 {offsets = [16, 128], sizes = [16, 32], strides = [1, 1]} : vector<32x384xf32> to vector<16x32xf32>
    %108 = vector.extract_strided_slice %36 {offsets = [16, 256], sizes = [16, 32], strides = [1, 1]} : vector<32x384xf32> to vector<16x32xf32>
    %109 = tpu.transpose %107, [1, 0] : vector<16x32xf32> -> vector<32x16xf32>
    %cst_41 = arith.constant dense<0.000000e+00> : vector<16x16xf32>
    %110 = tpu.matmul %106, %109, %cst_41 {dimension_numbers = #tpu.dot_dimension_numbers<[1], [0], [0], [1], [0, 0, 1, 1], [], []>} : vector<16x32xf32>, vector<32x16xf32>, vector<16x16xf32> -> vector<16x16xf32>
    %111 = arith.addf %110, %105 : vector<16x16xf32>
    %cst_42 = arith.constant dense<0xFF800000> : vector<16xf32>
    %112 = vector.multi_reduction <maximumf>, %111, %cst_42 [1] : vector<16x16xf32> to vector<16xf32>
    %113 = vector.shape_cast %112 : vector<16xf32> to vector<16x1xf32>
    %114 = vector.broadcast %113 : vector<16x1xf32> to vector<16x16xf32>
    %115 = arith.subf %111, %114 : vector<16x16xf32>
    %116 = math.exp %115 : vector<16x16xf32>
    %cst_43 = arith.constant dense<0.000000e+00> : vector<16xf32>
    %117 = vector.multi_reduction <add>, %116, %cst_43 [1] : vector<16x16xf32> to vector<16xf32>
    %118 = vector.shape_cast %117 : vector<16xf32> to vector<16x1xf32>
    %119 = vector.broadcast %118 : vector<16x1xf32> to vector<16x16xf32>
    %120 = arith.divf %116, %119 : vector<16x16xf32>
    %cst_44 = arith.constant dense<0.000000e+00> : vector<16x32xf32>
    %121 = tpu.matmul %120, %108, %cst_44 {dimension_numbers = #tpu.dot_dimension_numbers<[1], [0], [0], [1], [0, 0, 1, 1], [], []>} : vector<16x16xf32>, vector<16x32xf32>, vector<16x32xf32> -> vector<16x32xf32>
    %122 = vector.extract_strided_slice %36 {offsets = [16, 32], sizes = [16, 32], strides = [1, 1]} : vector<32x384xf32> to vector<16x32xf32>
    %123 = vector.extract_strided_slice %36 {offsets = [16, 160], sizes = [16, 32], strides = [1, 1]} : vector<32x384xf32> to vector<16x32xf32>
    %124 = vector.extract_strided_slice %36 {offsets = [16, 288], sizes = [16, 32], strides = [1, 1]} : vector<32x384xf32> to vector<16x32xf32>
    %125 = tpu.transpose %123, [1, 0] : vector<16x32xf32> -> vector<32x16xf32>
    %cst_45 = arith.constant dense<0.000000e+00> : vector<16x16xf32>
    %126 = tpu.matmul %122, %125, %cst_45 {dimension_numbers = #tpu.dot_dimension_numbers<[1], [0], [0], [1], [0, 0, 1, 1], [], []>} : vector<16x32xf32>, vector<32x16xf32>, vector<16x16xf32> -> vector<16x16xf32>
    %127 = arith.addf %126, %105 : vector<16x16xf32>
    %cst_46 = arith.constant dense<0xFF800000> : vector<16xf32>
    %128 = vector.multi_reduction <maximumf>, %127, %cst_46 [1] : vector<16x16xf32> to vector<16xf32>
    %129 = vector.shape_cast %128 : vector<16xf32> to vector<16x1xf32>
    %130 = vector.broadcast %129 : vector<16x1xf32> to vector<16x16xf32>
    %131 = arith.subf %127, %130 : vector<16x16xf32>
    %132 = math.exp %131 : vector<16x16xf32>
    %cst_47 = arith.constant dense<0.000000e+00> : vector<16xf32>
    %133 = vector.multi_reduction <add>, %132, %cst_47 [1] : vector<16x16xf32> to vector<16xf32>
    %134 = vector.shape_cast %133 : vector<16xf32> to vector<16x1xf32>
    %135 = vector.broadcast %134 : vector<16x1xf32> to vector<16x16xf32>
    %136 = arith.divf %132, %135 : vector<16x16xf32>
    %cst_48 = arith.constant dense<0.000000e+00> : vector<16x32xf32>
    %137 = tpu.matmul %136, %124, %cst_48 {dimension_numbers = #tpu.dot_dimension_numbers<[1], [0], [0], [1], [0, 0, 1, 1], [], []>} : vector<16x16xf32>, vector<16x32xf32>, vector<16x32xf32> -> vector<16x32xf32>
    %138 = vector.extract_strided_slice %36 {offsets = [16, 64], sizes = [16, 32], strides = [1, 1]} : vector<32x384xf32> to vector<16x32xf32>
    %139 = vector.extract_strided_slice %36 {offsets = [16, 192], sizes = [16, 32], strides = [1, 1]} : vector<32x384xf32> to vector<16x32xf32>
    %140 = vector.extract_strided_slice %36 {offsets = [16, 320], sizes = [16, 32], strides = [1, 1]} : vector<32x384xf32> to vector<16x32xf32>
    %141 = tpu.transpose %139, [1, 0] : vector<16x32xf32> -> vector<32x16xf32>
    %cst_49 = arith.constant dense<0.000000e+00> : vector<16x16xf32>
    %142 = tpu.matmul %138, %141, %cst_49 {dimension_numbers = #tpu.dot_dimension_numbers<[1], [0], [0], [1], [0, 0, 1, 1], [], []>} : vector<16x32xf32>, vector<32x16xf32>, vector<16x16xf32> -> vector<16x16xf32>
    %143 = arith.addf %142, %105 : vector<16x16xf32>
    %cst_50 = arith.constant dense<0xFF800000> : vector<16xf32>
    %144 = vector.multi_reduction <maximumf>, %143, %cst_50 [1] : vector<16x16xf32> to vector<16xf32>
    %145 = vector.shape_cast %144 : vector<16xf32> to vector<16x1xf32>
    %146 = vector.broadcast %145 : vector<16x1xf32> to vector<16x16xf32>
    %147 = arith.subf %143, %146 : vector<16x16xf32>
    %148 = math.exp %147 : vector<16x16xf32>
    %cst_51 = arith.constant dense<0.000000e+00> : vector<16xf32>
    %149 = vector.multi_reduction <add>, %148, %cst_51 [1] : vector<16x16xf32> to vector<16xf32>
    %150 = vector.shape_cast %149 : vector<16xf32> to vector<16x1xf32>
    %151 = vector.broadcast %150 : vector<16x1xf32> to vector<16x16xf32>
    %152 = arith.divf %148, %151 : vector<16x16xf32>
    %cst_52 = arith.constant dense<0.000000e+00> : vector<16x32xf32>
    %153 = tpu.matmul %152, %140, %cst_52 {dimension_numbers = #tpu.dot_dimension_numbers<[1], [0], [0], [1], [0, 0, 1, 1], [], []>} : vector<16x16xf32>, vector<16x32xf32>, vector<16x32xf32> -> vector<16x32xf32>
    %154 = vector.extract_strided_slice %36 {offsets = [16, 96], sizes = [16, 32], strides = [1, 1]} : vector<32x384xf32> to vector<16x32xf32>
    %155 = vector.extract_strided_slice %36 {offsets = [16, 224], sizes = [16, 32], strides = [1, 1]} : vector<32x384xf32> to vector<16x32xf32>
    %156 = vector.extract_strided_slice %36 {offsets = [16, 352], sizes = [16, 32], strides = [1, 1]} : vector<32x384xf32> to vector<16x32xf32>
    %157 = tpu.transpose %155, [1, 0] : vector<16x32xf32> -> vector<32x16xf32>
    %cst_53 = arith.constant dense<0.000000e+00> : vector<16x16xf32>
    %158 = tpu.matmul %154, %157, %cst_53 {dimension_numbers = #tpu.dot_dimension_numbers<[1], [0], [0], [1], [0, 0, 1, 1], [], []>} : vector<16x32xf32>, vector<32x16xf32>, vector<16x16xf32> -> vector<16x16xf32>
    %159 = arith.addf %158, %105 : vector<16x16xf32>
    %cst_54 = arith.constant dense<0xFF800000> : vector<16xf32>
    %160 = vector.multi_reduction <maximumf>, %159, %cst_54 [1] : vector<16x16xf32> to vector<16xf32>
    %161 = vector.shape_cast %160 : vector<16xf32> to vector<16x1xf32>
    %162 = vector.broadcast %161 : vector<16x1xf32> to vector<16x16xf32>
    %163 = arith.subf %159, %162 : vector<16x16xf32>
    %164 = math.exp %163 : vector<16x16xf32>
    %cst_55 = arith.constant dense<0.000000e+00> : vector<16xf32>
    %165 = vector.multi_reduction <add>, %164, %cst_55 [1] : vector<16x16xf32> to vector<16xf32>
    %166 = vector.shape_cast %165 : vector<16xf32> to vector<16x1xf32>
    %167 = vector.broadcast %166 : vector<16x1xf32> to vector<16x16xf32>
    %168 = arith.divf %164, %167 : vector<16x16xf32>
    %cst_56 = arith.constant dense<0.000000e+00> : vector<16x32xf32>
    %169 = tpu.matmul %168, %156, %cst_56 {dimension_numbers = #tpu.dot_dimension_numbers<[1], [0], [0], [1], [0, 0, 1, 1], [], []>} : vector<16x16xf32>, vector<16x32xf32>, vector<16x32xf32> -> vector<16x32xf32>
    %170 = tpu.concatenate %121, %137, %153, %169 in 1 : vector<16x32xf32>, vector<16x32xf32>, vector<16x32xf32>, vector<16x32xf32> -> vector<16x128xf32>
    %171 = tpu.concatenate %103, %170 in 0 : vector<16x128xf32>, vector<16x128xf32> -> vector<32x128xf32>
    %c0_57 = arith.constant 0 : index
    %c0_58 = arith.constant 0 : index
    %c0_59 = arith.constant 0 : index
    %172 = vector.load %arg5[%c0_57, %c0_58, %c0_59] : memref<2x128x128xf32, #tpu.memory_space<vmem>>, vector<1x128x128xf32>
    %173 = vector.shape_cast %172 : vector<1x128x128xf32> to vector<128x128xf32>
    %cst_60 = arith.constant dense<0.000000e+00> : vector<32x128xf32>
    %174 = tpu.matmul %171, %173, %cst_60 {dimension_numbers = #tpu.dot_dimension_numbers<[1], [0], [0], [1], [0, 0, 1, 1], [], []>} : vector<32x128xf32>, vector<128x128xf32>, vector<32x128xf32> -> vector<32x128xf32>
    %175 = arith.addf %174, %7 : vector<32x128xf32>
    %c0_61 = arith.constant 0 : index
    %c0_62 = arith.constant 0 : index
    %c0_63 = arith.constant 0 : index
    %176 = vector.load %arg8[%c0_61, %c0_62, %c0_63] : memref<2x1x128xf32, #tpu.memory_space<vmem>>, vector<1x1x128xf32>
    %177 = vector.shape_cast %176 : vector<1x1x128xf32> to vector<1x128xf32>
    %c0_64 = arith.constant 0 : index
    %c0_65 = arith.constant 0 : index
    %c0_66 = arith.constant 0 : index
    %178 = vector.load %arg9[%c0_64, %c0_65, %c0_66] : memref<2x1x128xf32, #tpu.memory_space<vmem>>, vector<1x1x128xf32>
    %179 = vector.shape_cast %178 : vector<1x1x128xf32> to vector<1x128xf32>
    %cst_67 = arith.constant dense<0.000000e+00> : vector<32xf32>
    %180 = vector.multi_reduction <add>, %175, %cst_67 [1] : vector<32x128xf32> to vector<32xf32>
    %181 = vector.shape_cast %180 : vector<32xf32> to vector<32x1xf32>
    %cst_68 = arith.constant 1.280000e+02 : f32
    %182 = vector.broadcast %cst_68 : f32 to vector<32x1xf32>
    %183 = arith.divf %181, %182 : vector<32x1xf32>
    %184 = vector.broadcast %183 : vector<32x1xf32> to vector<32x128xf32>
    %185 = arith.subf %175, %184 : vector<32x128xf32>
    %186 = arith.mulf %185, %185 : vector<32x128xf32>
    %cst_69 = arith.constant dense<0.000000e+00> : vector<32xf32>
    %187 = vector.multi_reduction <add>, %186, %cst_69 [1] : vector<32x128xf32> to vector<32xf32>
    %188 = vector.shape_cast %187 : vector<32xf32> to vector<32x1xf32>
    %cst_70 = arith.constant 0.00787401571 : f32
    %189 = vector.broadcast %cst_70 : f32 to vector<32x1xf32>
    %190 = arith.mulf %188, %189 : vector<32x1xf32>
    %191 = math.sqrt %190 : vector<32x1xf32>
    %cst_71 = arith.constant 9.99999997E-7 : f32
    %192 = vector.broadcast %cst_71 : f32 to vector<32x1xf32>
    %193 = arith.addf %191, %192 : vector<32x1xf32>
    %cst_72 = arith.constant 1.000000e+00 : f32
    %194 = vector.broadcast %cst_72 : f32 to vector<32x1xf32>
    %195 = arith.divf %194, %193 : vector<32x1xf32>
    %196 = vector.broadcast %195 : vector<32x1xf32> to vector<32x128xf32>
    %197 = arith.mulf %185, %196 : vector<32x128xf32>
    %198 = vector.broadcast %177 : vector<1x128xf32> to vector<32x128xf32>
    %199 = arith.mulf %198, %197 : vector<32x128xf32>
    %200 = vector.broadcast %179 : vector<1x128xf32> to vector<32x128xf32>
    %201 = arith.addf %199, %200 : vector<32x128xf32>
    %c0_73 = arith.constant 0 : index
    %c0_74 = arith.constant 0 : index
    %c0_75 = arith.constant 0 : index
    %202 = vector.load %arg10[%c0_73, %c0_74, %c0_75] : memref<2x128x256xf32, #tpu.memory_space<vmem>>, vector<1x128x256xf32>
    %203 = vector.shape_cast %202 : vector<1x128x256xf32> to vector<128x256xf32>
    %cst_76 = arith.constant dense<0.000000e+00> : vector<32x256xf32>
    %204 = tpu.matmul %201, %203, %cst_76 {dimension_numbers = #tpu.dot_dimension_numbers<[1], [0], [0], [1], [0, 0, 1, 1], [], []>} : vector<32x128xf32>, vector<128x256xf32>, vector<32x256xf32> -> vector<32x256xf32>
    %c0_77 = arith.constant 0 : index
    %c0_78 = arith.constant 0 : index
    %c0_79 = arith.constant 0 : index
    %205 = vector.load %arg11[%c0_77, %c0_78, %c0_79] : memref<2x1x256xf32, #tpu.memory_space<vmem>>, vector<1x1x256xf32>
    %206 = vector.shape_cast %205 : vector<1x1x256xf32> to vector<1x256xf32>
    %207 = vector.broadcast %206 : vector<1x256xf32> to vector<32x256xf32>
    %208 = arith.addf %204, %207 : vector<32x256xf32>
    %cst_80 = arith.constant 0.000000e+00 : f32
    %209 = vector.broadcast %cst_80 : f32 to vector<32x256xf32>
    %210 = arith.maximumf %208, %209 : vector<32x256xf32>
    %c0_81 = arith.constant 0 : index
    %c0_82 = arith.constant 0 : index
    %c0_83 = arith.constant 0 : index
    %211 = vector.load %arg12[%c0_81, %c0_82, %c0_83] : memref<2x256x128xf32, #tpu.memory_space<vmem>>, vector<1x256x128xf32>
    %212 = vector.shape_cast %211 : vector<1x256x128xf32> to vector<256x128xf32>
    %cst_84 = arith.constant dense<0.000000e+00> : vector<32x128xf32>
    %213 = tpu.matmul %210, %212, %cst_84 {dimension_numbers = #tpu.dot_dimension_numbers<[1], [0], [0], [1], [0, 0, 1, 1], [], []>} : vector<32x256xf32>, vector<256x128xf32>, vector<32x128xf32> -> vector<32x128xf32>
    %c0_85 = arith.constant 0 : index
    %c0_86 = arith.constant 0 : index
    %c0_87 = arith.constant 0 : index
    %214 = vector.load %arg13[%c0_85, %c0_86, %c0_87] : memref<2x1x128xf32, #tpu.memory_space<vmem>>, vector<1x1x128xf32>
    %215 = vector.shape_cast %214 : vector<1x1x128xf32> to vector<1x128xf32>
    %216 = vector.broadcast %215 : vector<1x128xf32> to vector<32x128xf32>
    %217 = arith.addf %213, %216 : vector<32x128xf32>
    %218 = arith.addf %217, %175 : vector<32x128xf32>
    %c1_88 = arith.constant 1 : index
    %c0_89 = arith.constant 0 : index
    %c0_90 = arith.constant 0 : index
    %219 = vector.load %arg6[%c1_88, %c0_89, %c0_90] : memref<2x1x128xf32, #tpu.memory_space<vmem>>, vector<1x1x128xf32>
    %220 = vector.shape_cast %219 : vector<1x1x128xf32> to vector<1x128xf32>
    %c1_91 = arith.constant 1 : index
    %c0_92 = arith.constant 0 : index
    %c0_93 = arith.constant 0 : index
    %221 = vector.load %arg7[%c1_91, %c0_92, %c0_93] : memref<2x1x128xf32, #tpu.memory_space<vmem>>, vector<1x1x128xf32>
    %222 = vector.shape_cast %221 : vector<1x1x128xf32> to vector<1x128xf32>
    %cst_94 = arith.constant dense<0.000000e+00> : vector<32xf32>
    %223 = vector.multi_reduction <add>, %218, %cst_94 [1] : vector<32x128xf32> to vector<32xf32>
    %224 = vector.shape_cast %223 : vector<32xf32> to vector<32x1xf32>
    %cst_95 = arith.constant 1.280000e+02 : f32
    %225 = vector.broadcast %cst_95 : f32 to vector<32x1xf32>
    %226 = arith.divf %224, %225 : vector<32x1xf32>
    %227 = vector.broadcast %226 : vector<32x1xf32> to vector<32x128xf32>
    %228 = arith.subf %218, %227 : vector<32x128xf32>
    %229 = arith.mulf %228, %228 : vector<32x128xf32>
    %cst_96 = arith.constant dense<0.000000e+00> : vector<32xf32>
    %230 = vector.multi_reduction <add>, %229, %cst_96 [1] : vector<32x128xf32> to vector<32xf32>
    %231 = vector.shape_cast %230 : vector<32xf32> to vector<32x1xf32>
    %cst_97 = arith.constant 0.00787401571 : f32
    %232 = vector.broadcast %cst_97 : f32 to vector<32x1xf32>
    %233 = arith.mulf %231, %232 : vector<32x1xf32>
    %234 = math.sqrt %233 : vector<32x1xf32>
    %cst_98 = arith.constant 9.99999997E-7 : f32
    %235 = vector.broadcast %cst_98 : f32 to vector<32x1xf32>
    %236 = arith.addf %234, %235 : vector<32x1xf32>
    %cst_99 = arith.constant 1.000000e+00 : f32
    %237 = vector.broadcast %cst_99 : f32 to vector<32x1xf32>
    %238 = arith.divf %237, %236 : vector<32x1xf32>
    %239 = vector.broadcast %238 : vector<32x1xf32> to vector<32x128xf32>
    %240 = arith.mulf %228, %239 : vector<32x128xf32>
    %241 = vector.broadcast %220 : vector<1x128xf32> to vector<32x128xf32>
    %242 = arith.mulf %241, %240 : vector<32x128xf32>
    %243 = vector.broadcast %222 : vector<1x128xf32> to vector<32x128xf32>
    %244 = arith.addf %242, %243 : vector<32x128xf32>
    %c1_100 = arith.constant 1 : index
    %c0_101 = arith.constant 0 : index
    %c0_102 = arith.constant 0 : index
    %245 = vector.load %arg4[%c1_100, %c0_101, %c0_102] : memref<2x128x384xf32, #tpu.memory_space<vmem>>, vector<1x128x384xf32>
    %246 = vector.shape_cast %245 : vector<1x128x384xf32> to vector<128x384xf32>
    %cst_103 = arith.constant dense<0.000000e+00> : vector<32x384xf32>
    %247 = tpu.matmul %244, %246, %cst_103 {dimension_numbers = #tpu.dot_dimension_numbers<[1], [0], [0], [1], [0, 0, 1, 1], [], []>} : vector<32x128xf32>, vector<128x384xf32>, vector<32x384xf32> -> vector<32x384xf32>
    %c0_104 = arith.constant 0 : index
    %c0_105 = arith.constant 0 : index
    %c0_106 = arith.constant 0 : index
    %248 = vector.load %arg2[%c0_104, %c0_105, %c0_106] : memref<2x16x16xf32, #tpu.memory_space<vmem>>, vector<1x16x16xf32>
    %249 = vector.shape_cast %248 : vector<1x16x16xf32> to vector<16x16xf32>
    %250 = vector.extract_strided_slice %247 {offsets = [0, 0], sizes = [16, 32], strides = [1, 1]} : vector<32x384xf32> to vector<16x32xf32>
    %251 = vector.extract_strided_slice %247 {offsets = [0, 128], sizes = [16, 32], strides = [1, 1]} : vector<32x384xf32> to vector<16x32xf32>
    %252 = vector.extract_strided_slice %247 {offsets = [0, 256], sizes = [16, 32], strides = [1, 1]} : vector<32x384xf32> to vector<16x32xf32>
    %253 = tpu.transpose %251, [1, 0] : vector<16x32xf32> -> vector<32x16xf32>
    %cst_107 = arith.constant dense<0.000000e+00> : vector<16x16xf32>
    %254 = tpu.matmul %250, %253, %cst_107 {dimension_numbers = #tpu.dot_dimension_numbers<[1], [0], [0], [1], [0, 0, 1, 1], [], []>} : vector<16x32xf32>, vector<32x16xf32>, vector<16x16xf32> -> vector<16x16xf32>
    %255 = arith.addf %254, %249 : vector<16x16xf32>
    %cst_108 = arith.constant dense<0xFF800000> : vector<16xf32>
    %256 = vector.multi_reduction <maximumf>, %255, %cst_108 [1] : vector<16x16xf32> to vector<16xf32>
    %257 = vector.shape_cast %256 : vector<16xf32> to vector<16x1xf32>
    %258 = vector.broadcast %257 : vector<16x1xf32> to vector<16x16xf32>
    %259 = arith.subf %255, %258 : vector<16x16xf32>
    %260 = math.exp %259 : vector<16x16xf32>
    %cst_109 = arith.constant dense<0.000000e+00> : vector<16xf32>
    %261 = vector.multi_reduction <add>, %260, %cst_109 [1] : vector<16x16xf32> to vector<16xf32>
    %262 = vector.shape_cast %261 : vector<16xf32> to vector<16x1xf32>
    %263 = vector.broadcast %262 : vector<16x1xf32> to vector<16x16xf32>
    %264 = arith.divf %260, %263 : vector<16x16xf32>
    %cst_110 = arith.constant dense<0.000000e+00> : vector<16x32xf32>
    %265 = tpu.matmul %264, %252, %cst_110 {dimension_numbers = #tpu.dot_dimension_numbers<[1], [0], [0], [1], [0, 0, 1, 1], [], []>} : vector<16x16xf32>, vector<16x32xf32>, vector<16x32xf32> -> vector<16x32xf32>
    %266 = vector.extract_strided_slice %247 {offsets = [0, 32], sizes = [16, 32], strides = [1, 1]} : vector<32x384xf32> to vector<16x32xf32>
    %267 = vector.extract_strided_slice %247 {offsets = [0, 160], sizes = [16, 32], strides = [1, 1]} : vector<32x384xf32> to vector<16x32xf32>
    %268 = vector.extract_strided_slice %247 {offsets = [0, 288], sizes = [16, 32], strides = [1, 1]} : vector<32x384xf32> to vector<16x32xf32>
    %269 = tpu.transpose %267, [1, 0] : vector<16x32xf32> -> vector<32x16xf32>
    %cst_111 = arith.constant dense<0.000000e+00> : vector<16x16xf32>
    %270 = tpu.matmul %266, %269, %cst_111 {dimension_numbers = #tpu.dot_dimension_numbers<[1], [0], [0], [1], [0, 0, 1, 1], [], []>} : vector<16x32xf32>, vector<32x16xf32>, vector<16x16xf32> -> vector<16x16xf32>
    %271 = arith.addf %270, %249 : vector<16x16xf32>
    %cst_112 = arith.constant dense<0xFF800000> : vector<16xf32>
    %272 = vector.multi_reduction <maximumf>, %271, %cst_112 [1] : vector<16x16xf32> to vector<16xf32>
    %273 = vector.shape_cast %272 : vector<16xf32> to vector<16x1xf32>
    %274 = vector.broadcast %273 : vector<16x1xf32> to vector<16x16xf32>
    %275 = arith.subf %271, %274 : vector<16x16xf32>
    %276 = math.exp %275 : vector<16x16xf32>
    %cst_113 = arith.constant dense<0.000000e+00> : vector<16xf32>
    %277 = vector.multi_reduction <add>, %276, %cst_113 [1] : vector<16x16xf32> to vector<16xf32>
    %278 = vector.shape_cast %277 : vector<16xf32> to vector<16x1xf32>
    %279 = vector.broadcast %278 : vector<16x1xf32> to vector<16x16xf32>
    %280 = arith.divf %276, %279 : vector<16x16xf32>
    %cst_114 = arith.constant dense<0.000000e+00> : vector<16x32xf32>
    %281 = tpu.matmul %280, %268, %cst_114 {dimension_numbers = #tpu.dot_dimension_numbers<[1], [0], [0], [1], [0, 0, 1, 1], [], []>} : vector<16x16xf32>, vector<16x32xf32>, vector<16x32xf32> -> vector<16x32xf32>
    %282 = vector.extract_strided_slice %247 {offsets = [0, 64], sizes = [16, 32], strides = [1, 1]} : vector<32x384xf32> to vector<16x32xf32>
    %283 = vector.extract_strided_slice %247 {offsets = [0, 192], sizes = [16, 32], strides = [1, 1]} : vector<32x384xf32> to vector<16x32xf32>
    %284 = vector.extract_strided_slice %247 {offsets = [0, 320], sizes = [16, 32], strides = [1, 1]} : vector<32x384xf32> to vector<16x32xf32>
    %285 = tpu.transpose %283, [1, 0] : vector<16x32xf32> -> vector<32x16xf32>
    %cst_115 = arith.constant dense<0.000000e+00> : vector<16x16xf32>
    %286 = tpu.matmul %282, %285, %cst_115 {dimension_numbers = #tpu.dot_dimension_numbers<[1], [0], [0], [1], [0, 0, 1, 1], [], []>} : vector<16x32xf32>, vector<32x16xf32>, vector<16x16xf32> -> vector<16x16xf32>
    %287 = arith.addf %286, %249 : vector<16x16xf32>
    %cst_116 = arith.constant dense<0xFF800000> : vector<16xf32>
    %288 = vector.multi_reduction <maximumf>, %287, %cst_116 [1] : vector<16x16xf32> to vector<16xf32>
    %289 = vector.shape_cast %288 : vector<16xf32> to vector<16x1xf32>
    %290 = vector.broadcast %289 : vector<16x1xf32> to vector<16x16xf32>
    %291 = arith.subf %287, %290 : vector<16x16xf32>
    %292 = math.exp %291 : vector<16x16xf32>
    %cst_117 = arith.constant dense<0.000000e+00> : vector<16xf32>
    %293 = vector.multi_reduction <add>, %292, %cst_117 [1] : vector<16x16xf32> to vector<16xf32>
    %294 = vector.shape_cast %293 : vector<16xf32> to vector<16x1xf32>
    %295 = vector.broadcast %294 : vector<16x1xf32> to vector<16x16xf32>
    %296 = arith.divf %292, %295 : vector<16x16xf32>
    %cst_118 = arith.constant dense<0.000000e+00> : vector<16x32xf32>
    %297 = tpu.matmul %296, %284, %cst_118 {dimension_numbers = #tpu.dot_dimension_numbers<[1], [0], [0], [1], [0, 0, 1, 1], [], []>} : vector<16x16xf32>, vector<16x32xf32>, vector<16x32xf32> -> vector<16x32xf32>
    %298 = vector.extract_strided_slice %247 {offsets = [0, 96], sizes = [16, 32], strides = [1, 1]} : vector<32x384xf32> to vector<16x32xf32>
    %299 = vector.extract_strided_slice %247 {offsets = [0, 224], sizes = [16, 32], strides = [1, 1]} : vector<32x384xf32> to vector<16x32xf32>
    %300 = vector.extract_strided_slice %247 {offsets = [0, 352], sizes = [16, 32], strides = [1, 1]} : vector<32x384xf32> to vector<16x32xf32>
    %301 = tpu.transpose %299, [1, 0] : vector<16x32xf32> -> vector<32x16xf32>
    %cst_119 = arith.constant dense<0.000000e+00> : vector<16x16xf32>
    %302 = tpu.matmul %298, %301, %cst_119 {dimension_numbers = #tpu.dot_dimension_numbers<[1], [0], [0], [1], [0, 0, 1, 1], [], []>} : vector<16x32xf32>, vector<32x16xf32>, vector<16x16xf32> -> vector<16x16xf32>
    %303 = arith.addf %302, %249 : vector<16x16xf32>
    %cst_120 = arith.constant dense<0xFF800000> : vector<16xf32>
    %304 = vector.multi_reduction <maximumf>, %303, %cst_120 [1] : vector<16x16xf32> to vector<16xf32>
    %305 = vector.shape_cast %304 : vector<16xf32> to vector<16x1xf32>
    %306 = vector.broadcast %305 : vector<16x1xf32> to vector<16x16xf32>
    %307 = arith.subf %303, %306 : vector<16x16xf32>
    %308 = math.exp %307 : vector<16x16xf32>
    %cst_121 = arith.constant dense<0.000000e+00> : vector<16xf32>
    %309 = vector.multi_reduction <add>, %308, %cst_121 [1] : vector<16x16xf32> to vector<16xf32>
    %310 = vector.shape_cast %309 : vector<16xf32> to vector<16x1xf32>
    %311 = vector.broadcast %310 : vector<16x1xf32> to vector<16x16xf32>
    %312 = arith.divf %308, %311 : vector<16x16xf32>
    %cst_122 = arith.constant dense<0.000000e+00> : vector<16x32xf32>
    %313 = tpu.matmul %312, %300, %cst_122 {dimension_numbers = #tpu.dot_dimension_numbers<[1], [0], [0], [1], [0, 0, 1, 1], [], []>} : vector<16x16xf32>, vector<16x32xf32>, vector<16x32xf32> -> vector<16x32xf32>
    %314 = tpu.concatenate %265, %281, %297, %313 in 1 : vector<16x32xf32>, vector<16x32xf32>, vector<16x32xf32>, vector<16x32xf32> -> vector<16x128xf32>
    %c1_123 = arith.constant 1 : index
    %c0_124 = arith.constant 0 : index
    %c0_125 = arith.constant 0 : index
    %315 = vector.load %arg2[%c1_123, %c0_124, %c0_125] : memref<2x16x16xf32, #tpu.memory_space<vmem>>, vector<1x16x16xf32>
    %316 = vector.shape_cast %315 : vector<1x16x16xf32> to vector<16x16xf32>
    %317 = vector.extract_strided_slice %247 {offsets = [16, 0], sizes = [16, 32], strides = [1, 1]} : vector<32x384xf32> to vector<16x32xf32>
    %318 = vector.extract_strided_slice %247 {offsets = [16, 128], sizes = [16, 32], strides = [1, 1]} : vector<32x384xf32> to vector<16x32xf32>
    %319 = vector.extract_strided_slice %247 {offsets = [16, 256], sizes = [16, 32], strides = [1, 1]} : vector<32x384xf32> to vector<16x32xf32>
    %320 = tpu.transpose %318, [1, 0] : vector<16x32xf32> -> vector<32x16xf32>
    %cst_126 = arith.constant dense<0.000000e+00> : vector<16x16xf32>
    %321 = tpu.matmul %317, %320, %cst_126 {dimension_numbers = #tpu.dot_dimension_numbers<[1], [0], [0], [1], [0, 0, 1, 1], [], []>} : vector<16x32xf32>, vector<32x16xf32>, vector<16x16xf32> -> vector<16x16xf32>
    %322 = arith.addf %321, %316 : vector<16x16xf32>
    %cst_127 = arith.constant dense<0xFF800000> : vector<16xf32>
    %323 = vector.multi_reduction <maximumf>, %322, %cst_127 [1] : vector<16x16xf32> to vector<16xf32>
    %324 = vector.shape_cast %323 : vector<16xf32> to vector<16x1xf32>
    %325 = vector.broadcast %324 : vector<16x1xf32> to vector<16x16xf32>
    %326 = arith.subf %322, %325 : vector<16x16xf32>
    %327 = math.exp %326 : vector<16x16xf32>
    %cst_128 = arith.constant dense<0.000000e+00> : vector<16xf32>
    %328 = vector.multi_reduction <add>, %327, %cst_128 [1] : vector<16x16xf32> to vector<16xf32>
    %329 = vector.shape_cast %328 : vector<16xf32> to vector<16x1xf32>
    %330 = vector.broadcast %329 : vector<16x1xf32> to vector<16x16xf32>
    %331 = arith.divf %327, %330 : vector<16x16xf32>
    %cst_129 = arith.constant dense<0.000000e+00> : vector<16x32xf32>
    %332 = tpu.matmul %331, %319, %cst_129 {dimension_numbers = #tpu.dot_dimension_numbers<[1], [0], [0], [1], [0, 0, 1, 1], [], []>} : vector<16x16xf32>, vector<16x32xf32>, vector<16x32xf32> -> vector<16x32xf32>
    %333 = vector.extract_strided_slice %247 {offsets = [16, 32], sizes = [16, 32], strides = [1, 1]} : vector<32x384xf32> to vector<16x32xf32>
    %334 = vector.extract_strided_slice %247 {offsets = [16, 160], sizes = [16, 32], strides = [1, 1]} : vector<32x384xf32> to vector<16x32xf32>
    %335 = vector.extract_strided_slice %247 {offsets = [16, 288], sizes = [16, 32], strides = [1, 1]} : vector<32x384xf32> to vector<16x32xf32>
    %336 = tpu.transpose %334, [1, 0] : vector<16x32xf32> -> vector<32x16xf32>
    %cst_130 = arith.constant dense<0.000000e+00> : vector<16x16xf32>
    %337 = tpu.matmul %333, %336, %cst_130 {dimension_numbers = #tpu.dot_dimension_numbers<[1], [0], [0], [1], [0, 0, 1, 1], [], []>} : vector<16x32xf32>, vector<32x16xf32>, vector<16x16xf32> -> vector<16x16xf32>
    %338 = arith.addf %337, %316 : vector<16x16xf32>
    %cst_131 = arith.constant dense<0xFF800000> : vector<16xf32>
    %339 = vector.multi_reduction <maximumf>, %338, %cst_131 [1] : vector<16x16xf32> to vector<16xf32>
    %340 = vector.shape_cast %339 : vector<16xf32> to vector<16x1xf32>
    %341 = vector.broadcast %340 : vector<16x1xf32> to vector<16x16xf32>
    %342 = arith.subf %338, %341 : vector<16x16xf32>
    %343 = math.exp %342 : vector<16x16xf32>
    %cst_132 = arith.constant dense<0.000000e+00> : vector<16xf32>
    %344 = vector.multi_reduction <add>, %343, %cst_132 [1] : vector<16x16xf32> to vector<16xf32>
    %345 = vector.shape_cast %344 : vector<16xf32> to vector<16x1xf32>
    %346 = vector.broadcast %345 : vector<16x1xf32> to vector<16x16xf32>
    %347 = arith.divf %343, %346 : vector<16x16xf32>
    %cst_133 = arith.constant dense<0.000000e+00> : vector<16x32xf32>
    %348 = tpu.matmul %347, %335, %cst_133 {dimension_numbers = #tpu.dot_dimension_numbers<[1], [0], [0], [1], [0, 0, 1, 1], [], []>} : vector<16x16xf32>, vector<16x32xf32>, vector<16x32xf32> -> vector<16x32xf32>
    %349 = vector.extract_strided_slice %247 {offsets = [16, 64], sizes = [16, 32], strides = [1, 1]} : vector<32x384xf32> to vector<16x32xf32>
    %350 = vector.extract_strided_slice %247 {offsets = [16, 192], sizes = [16, 32], strides = [1, 1]} : vector<32x384xf32> to vector<16x32xf32>
    %351 = vector.extract_strided_slice %247 {offsets = [16, 320], sizes = [16, 32], strides = [1, 1]} : vector<32x384xf32> to vector<16x32xf32>
    %352 = tpu.transpose %350, [1, 0] : vector<16x32xf32> -> vector<32x16xf32>
    %cst_134 = arith.constant dense<0.000000e+00> : vector<16x16xf32>
    %353 = tpu.matmul %349, %352, %cst_134 {dimension_numbers = #tpu.dot_dimension_numbers<[1], [0], [0], [1], [0, 0, 1, 1], [], []>} : vector<16x32xf32>, vector<32x16xf32>, vector<16x16xf32> -> vector<16x16xf32>
    %354 = arith.addf %353, %316 : vector<16x16xf32>
    %cst_135 = arith.constant dense<0xFF800000> : vector<16xf32>
    %355 = vector.multi_reduction <maximumf>, %354, %cst_135 [1] : vector<16x16xf32> to vector<16xf32>
    %356 = vector.shape_cast %355 : vector<16xf32> to vector<16x1xf32>
    %357 = vector.broadcast %356 : vector<16x1xf32> to vector<16x16xf32>
    %358 = arith.subf %354, %357 : vector<16x16xf32>
    %359 = math.exp %358 : vector<16x16xf32>
    %cst_136 = arith.constant dense<0.000000e+00> : vector<16xf32>
    %360 = vector.multi_reduction <add>, %359, %cst_136 [1] : vector<16x16xf32> to vector<16xf32>
    %361 = vector.shape_cast %360 : vector<16xf32> to vector<16x1xf32>
    %362 = vector.broadcast %361 : vector<16x1xf32> to vector<16x16xf32>
    %363 = arith.divf %359, %362 : vector<16x16xf32>
    %cst_137 = arith.constant dense<0.000000e+00> : vector<16x32xf32>
    %364 = tpu.matmul %363, %351, %cst_137 {dimension_numbers = #tpu.dot_dimension_numbers<[1], [0], [0], [1], [0, 0, 1, 1], [], []>} : vector<16x16xf32>, vector<16x32xf32>, vector<16x32xf32> -> vector<16x32xf32>
    %365 = vector.extract_strided_slice %247 {offsets = [16, 96], sizes = [16, 32], strides = [1, 1]} : vector<32x384xf32> to vector<16x32xf32>
    %366 = vector.extract_strided_slice %247 {offsets = [16, 224], sizes = [16, 32], strides = [1, 1]} : vector<32x384xf32> to vector<16x32xf32>
    %367 = vector.extract_strided_slice %247 {offsets = [16, 352], sizes = [16, 32], strides = [1, 1]} : vector<32x384xf32> to vector<16x32xf32>
    %368 = tpu.transpose %366, [1, 0] : vector<16x32xf32> -> vector<32x16xf32>
    %cst_138 = arith.constant dense<0.000000e+00> : vector<16x16xf32>
    %369 = tpu.matmul %365, %368, %cst_138 {dimension_numbers = #tpu.dot_dimension_numbers<[1], [0], [0], [1], [0, 0, 1, 1], [], []>} : vector<16x32xf32>, vector<32x16xf32>, vector<16x16xf32> -> vector<16x16xf32>
    %370 = arith.addf %369, %316 : vector<16x16xf32>
    %cst_139 = arith.constant dense<0xFF800000> : vector<16xf32>
    %371 = vector.multi_reduction <maximumf>, %370, %cst_139 [1] : vector<16x16xf32> to vector<16xf32>
    %372 = vector.shape_cast %371 : vector<16xf32> to vector<16x1xf32>
    %373 = vector.broadcast %372 : vector<16x1xf32> to vector<16x16xf32>
    %374 = arith.subf %370, %373 : vector<16x16xf32>
    %375 = math.exp %374 : vector<16x16xf32>
    %cst_140 = arith.constant dense<0.000000e+00> : vector<16xf32>
    %376 = vector.multi_reduction <add>, %375, %cst_140 [1] : vector<16x16xf32> to vector<16xf32>
    %377 = vector.shape_cast %376 : vector<16xf32> to vector<16x1xf32>
    %378 = vector.broadcast %377 : vector<16x1xf32> to vector<16x16xf32>
    %379 = arith.divf %375, %378 : vector<16x16xf32>
    %cst_141 = arith.constant dense<0.000000e+00> : vector<16x32xf32>
    %380 = tpu.matmul %379, %367, %cst_141 {dimension_numbers = #tpu.dot_dimension_numbers<[1], [0], [0], [1], [0, 0, 1, 1], [], []>} : vector<16x16xf32>, vector<16x32xf32>, vector<16x32xf32> -> vector<16x32xf32>
    %381 = tpu.concatenate %332, %348, %364, %380 in 1 : vector<16x32xf32>, vector<16x32xf32>, vector<16x32xf32>, vector<16x32xf32> -> vector<16x128xf32>
    %382 = tpu.concatenate %314, %381 in 0 : vector<16x128xf32>, vector<16x128xf32> -> vector<32x128xf32>
    %c1_142 = arith.constant 1 : index
    %c0_143 = arith.constant 0 : index
    %c0_144 = arith.constant 0 : index
    %383 = vector.load %arg5[%c1_142, %c0_143, %c0_144] : memref<2x128x128xf32, #tpu.memory_space<vmem>>, vector<1x128x128xf32>
    %384 = vector.shape_cast %383 : vector<1x128x128xf32> to vector<128x128xf32>
    %cst_145 = arith.constant dense<0.000000e+00> : vector<32x128xf32>
    %385 = tpu.matmul %382, %384, %cst_145 {dimension_numbers = #tpu.dot_dimension_numbers<[1], [0], [0], [1], [0, 0, 1, 1], [], []>} : vector<32x128xf32>, vector<128x128xf32>, vector<32x128xf32> -> vector<32x128xf32>
    %386 = arith.addf %385, %218 : vector<32x128xf32>
    %c1_146 = arith.constant 1 : index
    %c0_147 = arith.constant 0 : index
    %c0_148 = arith.constant 0 : index
    %387 = vector.load %arg8[%c1_146, %c0_147, %c0_148] : memref<2x1x128xf32, #tpu.memory_space<vmem>>, vector<1x1x128xf32>
    %388 = vector.shape_cast %387 : vector<1x1x128xf32> to vector<1x128xf32>
    %c1_149 = arith.constant 1 : index
    %c0_150 = arith.constant 0 : index
    %c0_151 = arith.constant 0 : index
    %389 = vector.load %arg9[%c1_149, %c0_150, %c0_151] : memref<2x1x128xf32, #tpu.memory_space<vmem>>, vector<1x1x128xf32>
    %390 = vector.shape_cast %389 : vector<1x1x128xf32> to vector<1x128xf32>
    %cst_152 = arith.constant dense<0.000000e+00> : vector<32xf32>
    %391 = vector.multi_reduction <add>, %386, %cst_152 [1] : vector<32x128xf32> to vector<32xf32>
    %392 = vector.shape_cast %391 : vector<32xf32> to vector<32x1xf32>
    %cst_153 = arith.constant 1.280000e+02 : f32
    %393 = vector.broadcast %cst_153 : f32 to vector<32x1xf32>
    %394 = arith.divf %392, %393 : vector<32x1xf32>
    %395 = vector.broadcast %394 : vector<32x1xf32> to vector<32x128xf32>
    %396 = arith.subf %386, %395 : vector<32x128xf32>
    %397 = arith.mulf %396, %396 : vector<32x128xf32>
    %cst_154 = arith.constant dense<0.000000e+00> : vector<32xf32>
    %398 = vector.multi_reduction <add>, %397, %cst_154 [1] : vector<32x128xf32> to vector<32xf32>
    %399 = vector.shape_cast %398 : vector<32xf32> to vector<32x1xf32>
    %cst_155 = arith.constant 0.00787401571 : f32
    %400 = vector.broadcast %cst_155 : f32 to vector<32x1xf32>
    %401 = arith.mulf %399, %400 : vector<32x1xf32>
    %402 = math.sqrt %401 : vector<32x1xf32>
    %cst_156 = arith.constant 9.99999997E-7 : f32
    %403 = vector.broadcast %cst_156 : f32 to vector<32x1xf32>
    %404 = arith.addf %402, %403 : vector<32x1xf32>
    %cst_157 = arith.constant 1.000000e+00 : f32
    %405 = vector.broadcast %cst_157 : f32 to vector<32x1xf32>
    %406 = arith.divf %405, %404 : vector<32x1xf32>
    %407 = vector.broadcast %406 : vector<32x1xf32> to vector<32x128xf32>
    %408 = arith.mulf %396, %407 : vector<32x128xf32>
    %409 = vector.broadcast %388 : vector<1x128xf32> to vector<32x128xf32>
    %410 = arith.mulf %409, %408 : vector<32x128xf32>
    %411 = vector.broadcast %390 : vector<1x128xf32> to vector<32x128xf32>
    %412 = arith.addf %410, %411 : vector<32x128xf32>
    %c1_158 = arith.constant 1 : index
    %c0_159 = arith.constant 0 : index
    %c0_160 = arith.constant 0 : index
    %413 = vector.load %arg10[%c1_158, %c0_159, %c0_160] : memref<2x128x256xf32, #tpu.memory_space<vmem>>, vector<1x128x256xf32>
    %414 = vector.shape_cast %413 : vector<1x128x256xf32> to vector<128x256xf32>
    %cst_161 = arith.constant dense<0.000000e+00> : vector<32x256xf32>
    %415 = tpu.matmul %412, %414, %cst_161 {dimension_numbers = #tpu.dot_dimension_numbers<[1], [0], [0], [1], [0, 0, 1, 1], [], []>} : vector<32x128xf32>, vector<128x256xf32>, vector<32x256xf32> -> vector<32x256xf32>
    %c1_162 = arith.constant 1 : index
    %c0_163 = arith.constant 0 : index
    %c0_164 = arith.constant 0 : index
    %416 = vector.load %arg11[%c1_162, %c0_163, %c0_164] : memref<2x1x256xf32, #tpu.memory_space<vmem>>, vector<1x1x256xf32>
    %417 = vector.shape_cast %416 : vector<1x1x256xf32> to vector<1x256xf32>
    %418 = vector.broadcast %417 : vector<1x256xf32> to vector<32x256xf32>
    %419 = arith.addf %415, %418 : vector<32x256xf32>
    %cst_165 = arith.constant 0.000000e+00 : f32
    %420 = vector.broadcast %cst_165 : f32 to vector<32x256xf32>
    %421 = arith.maximumf %419, %420 : vector<32x256xf32>
    %c1_166 = arith.constant 1 : index
    %c0_167 = arith.constant 0 : index
    %c0_168 = arith.constant 0 : index
    %422 = vector.load %arg12[%c1_166, %c0_167, %c0_168] : memref<2x256x128xf32, #tpu.memory_space<vmem>>, vector<1x256x128xf32>
    %423 = vector.shape_cast %422 : vector<1x256x128xf32> to vector<256x128xf32>
    %cst_169 = arith.constant dense<0.000000e+00> : vector<32x128xf32>
    %424 = tpu.matmul %421, %423, %cst_169 {dimension_numbers = #tpu.dot_dimension_numbers<[1], [0], [0], [1], [0, 0, 1, 1], [], []>} : vector<32x256xf32>, vector<256x128xf32>, vector<32x128xf32> -> vector<32x128xf32>
    %c1_170 = arith.constant 1 : index
    %c0_171 = arith.constant 0 : index
    %c0_172 = arith.constant 0 : index
    %425 = vector.load %arg13[%c1_170, %c0_171, %c0_172] : memref<2x1x128xf32, #tpu.memory_space<vmem>>, vector<1x1x128xf32>
    %426 = vector.shape_cast %425 : vector<1x1x128xf32> to vector<1x128xf32>
    %427 = vector.broadcast %426 : vector<1x128xf32> to vector<32x128xf32>
    %428 = arith.addf %424, %427 : vector<32x128xf32>
    %429 = arith.addf %428, %386 : vector<32x128xf32>
    %c0_173 = arith.constant 0 : index
    %c0_174 = arith.constant 0 : index
    %430 = vector.load %arg14[%c0_173, %c0_174] : memref<1x128xf32, #tpu.memory_space<vmem>>, vector<1x128xf32>
    %c0_175 = arith.constant 0 : index
    %c0_176 = arith.constant 0 : index
    %431 = vector.load %arg15[%c0_175, %c0_176] : memref<1x128xf32, #tpu.memory_space<vmem>>, vector<1x128xf32>
    %cst_177 = arith.constant dense<0.000000e+00> : vector<32xf32>
    %432 = vector.multi_reduction <add>, %429, %cst_177 [1] : vector<32x128xf32> to vector<32xf32>
    %433 = vector.shape_cast %432 : vector<32xf32> to vector<32x1xf32>
    %cst_178 = arith.constant 1.280000e+02 : f32
    %434 = vector.broadcast %cst_178 : f32 to vector<32x1xf32>
    %435 = arith.divf %433, %434 : vector<32x1xf32>
    %436 = vector.broadcast %435 : vector<32x1xf32> to vector<32x128xf32>
    %437 = arith.subf %429, %436 : vector<32x128xf32>
    %438 = arith.mulf %437, %437 : vector<32x128xf32>
    %cst_179 = arith.constant dense<0.000000e+00> : vector<32xf32>
    %439 = vector.multi_reduction <add>, %438, %cst_179 [1] : vector<32x128xf32> to vector<32xf32>
    %440 = vector.shape_cast %439 : vector<32xf32> to vector<32x1xf32>
    %cst_180 = arith.constant 0.00787401571 : f32
    %441 = vector.broadcast %cst_180 : f32 to vector<32x1xf32>
    %442 = arith.mulf %440, %441 : vector<32x1xf32>
    %443 = math.sqrt %442 : vector<32x1xf32>
    %cst_181 = arith.constant 9.99999997E-7 : f32
    %444 = vector.broadcast %cst_181 : f32 to vector<32x1xf32>
    %445 = arith.addf %443, %444 : vector<32x1xf32>
    %cst_182 = arith.constant 1.000000e+00 : f32
    %446 = vector.broadcast %cst_182 : f32 to vector<32x1xf32>
    %447 = arith.divf %446, %445 : vector<32x1xf32>
    %448 = vector.broadcast %447 : vector<32x1xf32> to vector<32x128xf32>
    %449 = arith.mulf %437, %448 : vector<32x128xf32>
    %450 = vector.broadcast %430 : vector<1x128xf32> to vector<32x128xf32>
    %451 = arith.mulf %450, %449 : vector<32x128xf32>
    %452 = vector.broadcast %431 : vector<1x128xf32> to vector<32x128xf32>
    %453 = arith.addf %451, %452 : vector<32x128xf32>
    %454 = vector.shape_cast %453 : vector<32x128xf32> to vector<2x16x128xf32>
    %c0_183 = arith.constant 0 : index
    %c0_184 = arith.constant 0 : index
    %c0_185 = arith.constant 0 : index
    %455 = vector.load %arg16[%c0_183, %c0_184, %c0_185] : memref<2x16x128xf32, #tpu.memory_space<vmem>>, vector<2x16x128xf32>
    tpu.vector_store %arg16[%c0_183, %c0_184, %c0_185], %454 {strides = array<i32>} : memref<2x16x128xf32, #tpu.memory_space<vmem>>, vector<2x16x128xf32>,
    return
  }
  func.func @transform_0(%arg0: i32) -> (i32, i32, i32) {
    %c0_i32 = arith.constant 0 : i32
    %c0_i32_0 = arith.constant 0 : i32
    %c0_i32_1 = arith.constant 0 : i32
    return %arg0, %c0_i32, %c0_i32_0 : i32, i32, i32
  }
  func.func @transform_1(%arg0: i32) -> (i32, i32, i32) {
    %c0_i32 = arith.constant 0 : i32
    %c0_i32_0 = arith.constant 0 : i32
    %c0_i32_1 = arith.constant 0 : i32
    return %arg0, %c0_i32, %c0_i32_0 : i32, i32, i32
  }
  func.func @transform_2(%arg0: i32) -> (i32, i32) {
    %c0_i32 = arith.constant 0 : i32
    %c0_i32_0 = arith.constant 0 : i32
    %c0_i32_1 = arith.constant 0 : i32
    return %c0_i32, %c0_i32_0 : i32, i32
  }
  func.func @transform_3(%arg0: i32) -> (i32, i32, i32) {
    %c0_i32 = arith.constant 0 : i32
    %c0_i32_0 = arith.constant 0 : i32
    %c0_i32_1 = arith.constant 0 : i32
    %c0_i32_2 = arith.constant 0 : i32
    return %c0_i32, %c0_i32_0, %c0_i32_1 : i32, i32, i32
  }
  func.func @transform_4(%arg0: i32) -> (i32, i32, i32) {
    %c0_i32 = arith.constant 0 : i32
    %c0_i32_0 = arith.constant 0 : i32
    %c0_i32_1 = arith.constant 0 : i32
    %c0_i32_2 = arith.constant 0 : i32
    return %c0_i32, %c0_i32_0, %c0_i32_1 : i32, i32, i32
  }
  func.func @transform_5(%arg0: i32) -> (i32, i32, i32) {
    %c0_i32 = arith.constant 0 : i32
    %c0_i32_0 = arith.constant 0 : i32
    %c0_i32_1 = arith.constant 0 : i32
    %c0_i32_2 = arith.constant 0 : i32
    return %c0_i32, %c0_i32_0, %c0_i32_1 : i32, i32, i32
  }
  func.func @transform_6(%arg0: i32) -> (i32, i32, i32) {
    %c0_i32 = arith.constant 0 : i32
    %c0_i32_0 = arith.constant 0 : i32
    %c0_i32_1 = arith.constant 0 : i32
    %c0_i32_2 = arith.constant 0 : i32
    return %c0_i32, %c0_i32_0, %c0_i32_1 : i32, i32, i32
  }
  func.func @transform_7(%arg0: i32) -> (i32, i32, i32) {
    %c0_i32 = arith.constant 0 : i32
    %c0_i32_0 = arith.constant 0 : i32
    %c0_i32_1 = arith.constant 0 : i32
    %c0_i32_2 = arith.constant 0 : i32
    return %c0_i32, %c0_i32_0, %c0_i32_1 : i32, i32, i32
  }
  func.func @transform_8(%arg0: i32) -> (i32, i32, i32) {
    %c0_i32 = arith.constant 0 : i32
    %c0_i32_0 = arith.constant 0 : i32
    %c0_i32_1 = arith.constant 0 : i32
    %c0_i32_2 = arith.constant 0 : i32
    return %c0_i32, %c0_i32_0, %c0_i32_1 : i32, i32, i32
  }
  func.func @transform_9(%arg0: i32) -> (i32, i32, i32) {
    %c0_i32 = arith.constant 0 : i32
    %c0_i32_0 = arith.constant 0 : i32
    %c0_i32_1 = arith.constant 0 : i32
    %c0_i32_2 = arith.constant 0 : i32
    return %c0_i32, %c0_i32_0, %c0_i32_1 : i32, i32, i32
  }
  func.func @transform_10(%arg0: i32) -> (i32, i32, i32) {
    %c0_i32 = arith.constant 0 : i32
    %c0_i32_0 = arith.constant 0 : i32
    %c0_i32_1 = arith.constant 0 : i32
    %c0_i32_2 = arith.constant 0 : i32
    return %c0_i32, %c0_i32_0, %c0_i32_1 : i32, i32, i32
  }
  func.func @transform_11(%arg0: i32) -> (i32, i32, i32) {
    %c0_i32 = arith.constant 0 : i32
    %c0_i32_0 = arith.constant 0 : i32
    %c0_i32_1 = arith.constant 0 : i32
    %c0_i32_2 = arith.constant 0 : i32
    return %c0_i32, %c0_i32_0, %c0_i32_1 : i32, i32, i32
  }
  func.func @transform_12(%arg0: i32) -> (i32, i32, i32) {
    %c0_i32 = arith.constant 0 : i32
    %c0_i32_0 = arith.constant 0 : i32
    %c0_i32_1 = arith.constant 0 : i32
    %c0_i32_2 = arith.constant 0 : i32
    return %c0_i32, %c0_i32_0, %c0_i32_1 : i32, i32, i32
  }
  func.func @transform_13(%arg0: i32) -> (i32, i32) {
    %c0_i32 = arith.constant 0 : i32
    %c0_i32_0 = arith.constant 0 : i32
    %c0_i32_1 = arith.constant 0 : i32
    return %c0_i32, %c0_i32_0 : i32, i32
  }
  func.func @transform_14(%arg0: i32) -> (i32, i32) {
    %c0_i32 = arith.constant 0 : i32
    %c0_i32_0 = arith.constant 0 : i32
    %c0_i32_1 = arith.constant 0 : i32
    return %c0_i32, %c0_i32_0 : i32, i32
  }
  func.func @transform_15(%arg0: i32) -> (i32, i32, i32) {
    %c0_i32 = arith.constant 0 : i32
    %c0_i32_0 = arith.constant 0 : i32
    %c0_i32_1 = arith.constant 0 : i32
    return %arg0, %c0_i32, %c0_i32_0 : i32, i32, i32
  }
}

</mosaic_0001>

<bundles_post_ra>
// kernel: tpu_custom_call.1
= control target key start
LH: loop header
LB: loop body
LE: loop exit
PB: predicated region body
PF: predicated region fallthrough
CT: control target
= control target key end

     0   :  { %s9871_s0 = inlined_call_operand.hbm [shape: f32[4,16,128], index: 0, kind: input, shape index: {}]   ;;  %s9872_s1 = inlined_call_operand.hbm [shape: f32[4,16,16], index: 1, kind: input, shape index: {}]   ;;  %s9873_s2 = inlined_call_operand.hbm [shape: f32[16,128], index: 2, kind: input, shape index: {}]   ;;  %s9874_s3 = inlined_call_operand.hbm [shape: f32[2,128,384], index: 3, kind: input, shape index: {}]   ;;  %s9875_s4 = inlined_call_operand.hbm [shape: f32[2,128,128], index: 4, kind: input, shape index: {}]   ;;  %s9876_s5 = inlined_call_operand.hbm [shape: f32[2,1,128], index: 5, kind: input, shape index: {}]   ;;  %s9877_s6 = inlined_call_operand.hbm [shape: f32[2,1,128], index: 6, kind: input, shape index: {}]   ;;  %s9878_s7 = inlined_call_operand.hbm [shape: f32[2,1,128], index: 7, kind: input, shape index: {}]   ;;  %s9879_s8 = inlined_call_operand.hbm [shape: f32[2,1,128], index: 8, kind: input, shape index: {}]   ;;  %s9880_s9 = inlined_call_operand.hbm [shape: f32[2,128,256], index: 9, kind: input, shape index: {}]   ;;  %s9881_s10 = inlined_call_operand.hbm [shape: f32[2,1,256], index: 10, kind: input, shape index: {}]   ;;  %s9882_s11 = inlined_call_operand.hbm [shape: f32[2,256,128], index: 11, kind: input, shape index: {}]   ;;  %s9883_s12 = inlined_call_operand.hbm [shape: f32[2,1,128], index: 12, kind: input, shape index: {}]   ;;  %s9884_s13 = inlined_call_operand.hbm [shape: f32[1,128], index: 13, kind: input, shape index: {}]   ;;  %s9885_s14 = inlined_call_operand.hbm [shape: f32[1,128], index: 14, kind: input, shape index: {}]   ;;  %s9886_s15 = inlined_call_operand.hbm [shape: f32[4,16,128], index: 15, kind: output, shape index: {}]  }
   0x1   :  { %9904 = sst [smem:[#allocation41_spill]] %s9871_s0 }
   0x2   :  { %9905 = sst [smem:[#allocation42_spill]] %s9872_s1 }
   0x3   :  { %9906 = sst [smem:[#allocation43_spill]] %s9873_s2 }
   0x4   :  { %9907 = sst [smem:[#allocation44_spill]] %s9874_s3 }
   0x5   :  { %9908 = sst [smem:[#allocation45_spill]] %s9875_s4 }
   0x6   :  { %9909 = sst [smem:[#allocation46_spill]] %s9876_s5 }
   0x7   :  { %9910 = sst [smem:[#allocation47_spill]] %s9877_s6 }
   0x8   :  { %9911 = sst [smem:[#allocation48_spill]] %s9878_s7 }
   0x9   :  { %9912 = sst [smem:[#allocation49_spill]] %s9879_s8 }
   0xa   :  { %9913 = sst [smem:[#allocation50_spill]] %s9880_s9 }
   0xb   :  { %9914 = sst [smem:[#allocation51_spill]] %s9886_s15 }
   0xc   :  { %20 = vsyncpa [#allocation3], 0 }
   0xd   :  { %22 = vsyncpa [#allocation3 + $0x1], 0 }
   0xe   :  { %23 = vsyncpa [#allocation6], 0 }
   0xf   :  { %25 = vsyncpa [#allocation6 + $0x1], 0 }
  0x10   :  { %26 = vsyncpa [#allocation9], 0 }
  0x11   :  { %27 = vsyncpa [#allocation12], 0 }
  0x12   :  { %28 = vsyncpa [#allocation15], 0 }
  0x13   :  { %29 = vsyncpa [#allocation18], 0 }
  0x14   :  { %30 = vsyncpa [#allocation21], 0 }
  0x15   :  { %31 = vsyncpa [#allocation24], 0 }
  0x16   :  { %32 = vsyncpa [#allocation4], 0 }
  0x17   :  { %34 = vsyncpa [#allocation4 + $0x1], 0  ;;  %s8515_s18 = smov 0   ;;  %s8517_s19 = smov 0  }
  0x18   :  { %s8519_s20 = smov 0   ;;  %s8521_s21 = smov 0  }
  0x19 LB: > { %9915 = sst [smem:[#allocation37_spill]] %s8390_s18  ;;  %s8404_s22 = smov [#allocation7]   ;;  %s8402_s21 = sphi %s8521_s21, %s9973_s21   ;;  %s8398_s20 = sphi %s8519_s20, %s9972_s20   ;;  %s8394_s19 = sphi %s8517_s19, %s9971_s19   ;;  %s8390_s18 = sphi %s8515_s18, %s9970_s18  }
  0x1a   : > { %9916 = sst [smem:[#allocation38_spill]] %s8394_s19  ;;  %s408_s23 = sshll.u32 %s8404_s22, 4  ;;  %s8541_s23 = int_to_ptr.vmem [resolvable:$true] %s408_s23 }
  0x1b   : > { %s8536_s24 = sadd.s32 4294967295, %s8402_s21   ;;  %p5977_p0 = scmp.ge.s32.totalorder %s8402_s21, 1 }
  0x1c   : > { %9917 = sst [smem:[#allocation39_spill]] %s8536_s24  ;;  %p9897_p1 = scmp.eq.s32.totalorder %s8536_s24, 0 }
  0x1d   : > { %p396_p2 = scmp.lt.s32.totalorder %s8402_s21, 3  ;;  %s8405_s26 = smov [#allocation8]  }
  0x1e   : > { %s421_s27 = sshll.u32 %s8405_s26, 4  ;;  %s8406_s29 = smov [#allocation11]   ;;  %s8556_s27 = int_to_ptr.vmem [resolvable:$true] %s421_s27 }
  0x1f   : > { %p8543_p3 = pnand %p5977_p0, %p396_p2  ;;  %s8558_s30 = sshll.u32 %s8406_s29, 4  ;;  %s448_s30 = int_to_ptr.vmem [resolvable:$true] %s8558_s30 }
  0x20   : > { %s9921_s2 = sld [smem:[#allocation43_spill]] }
  0x21   : > { %s9918_s25 = scalar_select %p8543_p3, 1, 0 }
  0x22   : > { %p7349_p5 = pneg %p8543_p3 }
  0x23   : > { %9919 = sst [smem:[#allocation40_spill]] %s9918_s25 }
  0x24   : > { %p8552_p6 = pnand %p7349_p5, %p9897_p1 }
  0x26   : > { %s7880_s22 = scalar_lea.hbm %s9921_s2, 256  ;;  %p8568_p8 = pneg %p8552_p6 }
  0x27   : > { %p7881_p7 = scmp.ne.s32.totalorder %s9921_s2, %s7880_s22  ;;  %p7887_p11 = scmp.lt.u32.totalorder %s7880_s22, %s9921_s2 }
  0x29   : > { %p7883_p9 = pnand %p8568_p8, %p7881_p7 }
  0x2b   : > { %p7884_p10 = pneg %p7883_p9 }
  0x2d   : > { %p7889_p12 = pnand %p7887_p11, %p7884_p10 }
  0x2f   : > { %7892 = shalt.err (!%p7889_p12)
}
  0x30   : > { %s7893_s15 = scalar_lea.vmem %s8541_s23, 256  ;;  %p7901_p5 = scmp.lt.s32.totalorder %s8541_s23, %s8541_s23 }
  0x31   : > { %p7894_p13 = scmp.ne.s32.totalorder %s8541_s23, %s7893_s15  ;;  %p7902_p4 = scmp.lt.s32.totalorder %s7893_s15, %s7893_s15 }
  0x33   : > { %p7896_p0 = pnand %p7894_p13, %p8568_p8  ;;  %p7903_p7 = por %p7902_p4, %p7901_p5 }
  0x35   : > { %p7897_p2 = pneg %p7896_p0 }
  0x37   : > { %p7904_p9 = pnand %p7903_p7, %p7897_p2 }
  0x39   : > { %7907 = shalt.err (!%p7904_p9)
}
  0x3a   : > { %s9895_s25 = smov 128   ;;  %s9899_s1 = smov 8  }
  0x3b   : > { %7352 = dma.hbm_to_vmem [thread:$0]  (!%p8552_p6), %s9921_s2, 256, %s8541_s23, [#allocation6], %s9895_s25, %s9895_s25, %s9899_s1  }
  0x3c   : > { %s9923_s3 = sld [smem:[#allocation44_spill]] }
  0x42   : > { %s7908_s15 = scalar_lea.hbm %s9923_s3, 12288 }
  0x43   : > { %p7909_p4 = scmp.ne.s32.totalorder %s9923_s3, %s7908_s15  ;;  %p7915_p12 = scmp.lt.u32.totalorder %s7908_s15, %s9923_s3 }
  0x45   : > { %p7911_p10 = pnand %p7909_p4, %p8568_p8 }
  0x47   : > { %p7912_p11 = pneg %p7911_p10 }
  0x49   : > { %p7917_p13 = pnand %p7915_p12, %p7912_p11 }
  0x4b   : > { %7920 = shalt.err (!%p7917_p13)
}
  0x4c   : > { %s7921_s23 = scalar_lea.vmem %s8556_s27, 12288  ;;  %p7929_p7 = scmp.lt.s32.totalorder %s8556_s27, %s8556_s27 }
  0x4d   : > { %p7922_p0 = scmp.ne.s32.totalorder %s8556_s27, %s7921_s23  ;;  %p7930_p9 = scmp.lt.s32.totalorder %s7921_s23, %s7921_s23 }
  0x4f   : > { %p7924_p2 = pnand %p7922_p0, %p8568_p8  ;;  %p7931_p4 = por %p7930_p9, %p7929_p7 }
  0x51   : > { %p7925_p5 = pneg %p7924_p2 }
  0x53   : > { %p7932_p10 = pnand %p7931_p4, %p7925_p5 }
  0x55   : > { %7935 = shalt.err (!%p7932_p10)
}
  0x56   : > { %s8409_s0 = smov 384   ;;  %s8410_s18 = smov 24  }
  0x57   : > { %7355 = dma.hbm_to_vmem [thread:$0]  (!%p8552_p6), %s9923_s3, 12288, %s8556_s27, [#allocation9], %s8409_s0, %s8409_s0, %s8410_s18  }
  0x58   : > { %s9924_s5 = sld [smem:[#allocation46_spill]] }
  0x5e   : > { %s7936_s22 = scalar_lea.hbm %s9924_s5, 32 }
  0x5f   : > { %p7937_p11 = scmp.ne.s32.totalorder %s9924_s5, %s7936_s22  ;;  %p7943_p0 = scmp.lt.u32.totalorder %s7936_s22, %s9924_s5 }
  0x61   : > { %p7939_p12 = pnand %p7937_p11, %p8568_p8 }
  0x63   : > { %p7940_p13 = pneg %p7939_p12 }
  0x65   : > { %p7945_p2 = pnand %p7943_p0, %p7940_p13 }
  0x67   : > { %7948 = shalt.err (!%p7945_p2)
}
  0x68   : > { %s7949_s19 = scalar_lea.vmem %s448_s30, 32  ;;  %p7957_p4 = scmp.lt.s32.totalorder %s448_s30, %s448_s30 }
  0x69   : > { %p7950_p5 = scmp.ne.s32.totalorder %s448_s30, %s7949_s19  ;;  %p7958_p10 = scmp.lt.s32.totalorder %s7949_s19, %s7949_s19 }
  0x6b   : > { %p7952_p7 = pnand %p7950_p5, %p8568_p8  ;;  %p7959_p1 = por %p7958_p10, %p7957_p4 }
  0x6d   : > { %p7953_p9 = pneg %p7952_p7 }
  0x6f   : > { %p7960_p3 = pnand %p7959_p1, %p7953_p9 }
  0x71   : > { %7963 = shalt.err (!%p7960_p3)
}
  0x72   : > { %s9901_s27 = smov 16   ;;  %s9902_s0 = smov 1  }
  0x73   : > { %7361 = dma.hbm_to_vmem [thread:$0]  (!%p8552_p6), %s9924_s5, 32, %s448_s30, [#allocation12], %s9901_s27, %s9901_s27, %s9902_s0  }
  0x74   : > { %s8413_s24 = smov [#allocation14]   ;;  %s8414_s17 = smov [#allocation17]  }
  0x75   : > { %s473_s16 = sshll.u32 %s8413_s24, 4  ;;  %s499_s22 = sshll.u32 %s8414_s17, 4  ;;  %s474_s16 = int_to_ptr.vmem [resolvable:$true] %s473_s16  ;;  %s500_s22 = int_to_ptr.vmem [resolvable:$true] %s499_s22 }
  0x76   : > { %s9925_s7 = sld [smem:[#allocation48_spill]] }
  0x7c   : > { %s7964_s23 = scalar_lea.hbm %s9925_s7, 32 }
  0x7d   : > { %p7965_p1 = scmp.ne.s32.totalorder %s9925_s7, %s7964_s23  ;;  %p7971_p12 = scmp.lt.u32.totalorder %s7964_s23, %s9925_s7 }
  0x7f   : > { %p7967_p3 = pnand %p7965_p1, %p8568_p8 }
  0x81   : > { %p7968_p11 = pneg %p7967_p3 }
  0x83   : > { %p7973_p13 = pnand %p7971_p12, %p7968_p11 }
  0x85   : > { %7976 = shalt.err (!%p7973_p13)
}
  0x86   : > { %s7977_s30 = scalar_lea.vmem %s474_s16, 32  ;;  %p7985_p7 = scmp.lt.s32.totalorder %s474_s16, %s474_s16 }
  0x87   : > { %p7978_p0 = scmp.ne.s32.totalorder %s474_s16, %s7977_s30  ;;  %p7986_p9 = scmp.lt.s32.totalorder %s7977_s30, %s7977_s30 }
  0x89   : > { %p7980_p2 = pnand %p7978_p0, %p8568_p8  ;;  %p7987_p4 = por %p7986_p9, %p7985_p7 }
  0x8b   : > { %p7981_p5 = pneg %p7980_p2 }
  0x8d   : > { %p7988_p10 = pnand %p7987_p4, %p7981_p5 }
  0x8f   : > { %7991 = shalt.err (!%p7988_p10)
}
  0x90   : > { %7367 = dma.hbm_to_vmem [thread:$0]  (!%p8552_p6), %s9925_s7, 32, %s474_s16, [#allocation15], %s9901_s27, %s9901_s27, %s9902_s0  }
  0x91   : > { %s9926_s9 = sld [smem:[#allocation50_spill]] }
  0x97   : > { %s7992_s18 = scalar_lea.hbm %s9926_s9, 8192 }
  0x98   : > { %p7993_p1 = scmp.ne.s32.totalorder %s9926_s9, %s7992_s18  ;;  %p7999_p12 = scmp.lt.u32.totalorder %s7992_s18, %s9926_s9 }
  0x9a   : > { %p7995_p3 = pnand %p7993_p1, %p8568_p8 }
  0x9c   : > { %p7996_p11 = pneg %p7995_p3 }
  0x9e   : > { %p8001_p13 = pnand %p7999_p12, %p7996_p11 }
  0xa0   : > { %8004 = shalt.err (!%p8001_p13)
}
  0xa1   : > { %s8005_s23 = scalar_lea.vmem %s500_s22, 8192  ;;  %p8013_p7 = scmp.lt.s32.totalorder %s500_s22, %s500_s22 }
  0xa2   : > { %p8006_p0 = scmp.ne.s32.totalorder %s500_s22, %s8005_s23  ;;  %p8014_p9 = scmp.lt.s32.totalorder %s8005_s23, %s8005_s23 }
  0xa4   : > { %p8008_p2 = pnand %p8006_p0, %p8568_p8  ;;  %p8015_p4 = por %p8014_p9, %p8013_p7 }
  0xa6   : > { %p8009_p5 = pneg %p8008_p2 }
  0xa8   : > { %p8016_p10 = pnand %p8015_p4, %p8009_p5 }
  0xaa   : > { %8019 = shalt.err (!%p8016_p10)
}
  0xab   : > { %s8415_s16 = smov 256   ;;  %s8416_s2 = smov [#allocation20]  }
  0xac   : > { %7373 = dma.hbm_to_vmem [thread:$0]  (!%p8552_p6), %s9926_s9, 8192, %s500_s22, [#allocation18], %s8415_s16, %s8415_s16, %s9901_s27  }
  0xad   : > { %s525_s3 = sshll.u32 %s8416_s2, 4  ;;  %s8417_s1 = smov [#allocation23]   ;;  %s526_s3 = int_to_ptr.vmem [resolvable:$true] %s525_s3 }
  0xae   : > { %s552_s25 = sshll.u32 %s8417_s1, 4  ;;  %s8020_s17 = scalar_lea.hbm %s9882_s11, 8192  ;;  %s8677_s25 = int_to_ptr.vmem [resolvable:$true] %s552_s25 }
  0xaf   : > { %p8021_p1 = scmp.ne.s32.totalorder %s9882_s11, %s8020_s17  ;;  %p8027_p12 = scmp.lt.u32.totalorder %s8020_s17, %s9882_s11 }
  0xb1   : > { %p8023_p3 = pnand %p8021_p1, %p8568_p8 }
  0xb3   : > { %p8024_p11 = pneg %p8023_p3 }
  0xb5   : > { %p8029_p13 = pnand %p8027_p12, %p8024_p11 }
  0xb7   : > { %8032 = shalt.err (!%p8029_p13)
}
  0xb8   : > { %s8033_s16 = scalar_lea.vmem %s526_s3, 8192  ;;  %p8041_p7 = scmp.lt.s32.totalorder %s526_s3, %s526_s3 }
  0xb9   : > { %p8034_p0 = scmp.ne.s32.totalorder %s526_s3, %s8033_s16  ;;  %p8042_p9 = scmp.lt.s32.totalorder %s8033_s16, %s8033_s16 }
  0xbb   : > { %p8036_p2 = pnand %p8034_p0, %p8568_p8  ;;  %p8043_p4 = por %p8042_p9, %p8041_p7 }
  0xbd   : > { %p8037_p5 = pneg %p8036_p2 }
  0xbf   : > { %p8044_p10 = pnand %p8043_p4, %p8037_p5 }
  0xc1   : > { %8047 = shalt.err (!%p8044_p10)
}
  0xc2   : > { %s9927_s19 = smov 8   ;;  %s9928_s30 = smov 128  }
  0xc3   : > { %7379 = dma.hbm_to_vmem [thread:$0]  (!%p8552_p6), %s9882_s11, 8192, %s526_s3, [#allocation21], %s9928_s30, %s9928_s30, %s9927_s19  }
  0xc4   : > { %s8048_s17 = scalar_lea.hbm %s9884_s13, 16 }
  0xc5   : > { %p8049_p1 = scmp.ne.s32.totalorder %s9884_s13, %s8048_s17  ;;  %p8055_p12 = scmp.lt.u32.totalorder %s8048_s17, %s9884_s13 }
  0xc7   : > { %p8051_p3 = pnand %p8049_p1, %p8568_p8 }
  0xc9   : > { %p8052_p11 = pneg %p8051_p3 }
  0xcb   : > { %p8057_p13 = pnand %p8055_p12, %p8052_p11 }
  0xcd   : > { %8060 = shalt.err (!%p8057_p13)
}
  0xce   : > { %s8061_s3 = scalar_lea.vmem %s8677_s25, 16  ;;  %s8068_s16 = scalar_lea.vmem %s8677_s25, 32 }
  0xcf   : > { %p8062_p0 = scmp.ne.s32.totalorder %s8677_s25, %s8061_s3  ;;  %p8069_p7 = scmp.lt.s32.totalorder %s8677_s25, %s8677_s25 }
  0xd0   : > { %p8070_p9 = scmp.lt.s32.totalorder %s8068_s16, %s8061_s3 }
  0xd1   : > { %p8064_p2 = pnand %p8062_p0, %p8568_p8 }
  0xd2   : > { %p8071_p4 = por %p8070_p9, %p8069_p7 }
  0xd3   : > { %p8065_p5 = pneg %p8064_p2 }
  0xd5   : > { %p8072_p10 = pnand %p8071_p4, %p8065_p5 }
  0xd7   : > { %8075 = shalt.err (!%p8072_p10)
}
  0xd8   : > { %7385 = dma.hbm_to_vmem [thread:$0]  (!%p8552_p6), %s9884_s13, 16, %s8677_s25, [#allocation24]  }
  0xd9   : > { %s8418_s18 = smov [#allocation10]   ;;  %s8419_s17 = smov [#allocation13]  }
  0xda   : > { %s434_s24 = sshll.u32 %s8418_s18, 4  ;;  %s460_s29 = sshll.u32 %s8419_s17, 4  ;;  %s435_s24 = int_to_ptr.vmem [resolvable:$true] %s434_s24  ;;  %s8724_s29 = int_to_ptr.vmem [resolvable:$true] %s460_s29 }
  0xdb   : > { %s9929_s4 = sld [smem:[#allocation45_spill]] }
  0xe1   : > { %s8076_s22 = scalar_lea.hbm %s9929_s4, 4096 }
  0xe2   : > { %p8077_p1 = scmp.ne.s32.totalorder %s9929_s4, %s8076_s22  ;;  %p8083_p12 = scmp.lt.u32.totalorder %s8076_s22, %s9929_s4 }
  0xe4   : > { %p8079_p3 = pnand %p8077_p1, %p8568_p8 }
  0xe6   : > { %p8080_p11 = pneg %p8079_p3 }
  0xe8   : > { %p8085_p13 = pnand %p8083_p12, %p8080_p11 }
  0xea   : > { %8088 = shalt.err (!%p8085_p13)
}
  0xeb   : > { %s8089_s1 = scalar_lea.vmem %s435_s24, 4096  ;;  %p8097_p7 = scmp.lt.s32.totalorder %s435_s24, %s435_s24 }
  0xec   : > { %p8090_p0 = scmp.ne.s32.totalorder %s435_s24, %s8089_s1  ;;  %p8098_p9 = scmp.lt.s32.totalorder %s8089_s1, %s8089_s1 }
  0xee   : > { %p8092_p2 = pnand %p8090_p0, %p8568_p8  ;;  %p8099_p4 = por %p8098_p9, %p8097_p7 }
  0xf0   : > { %p8093_p5 = pneg %p8092_p2 }
  0xf2   : > { %p8100_p10 = pnand %p8099_p4, %p8093_p5 }
  0xf4   : > { %8103 = shalt.err (!%p8100_p10)
}
  0xf5   : > { %7358 = dma.hbm_to_vmem [thread:$0]  (!%p8552_p6), %s9929_s4, 4096, %s435_s24, [#allocation9], %s9928_s30, %s9928_s30, %s9927_s19  }
  0xf6   : > { %s9930_s6 = sld [smem:[#allocation47_spill]] }
  0xfc   : > { %s8104_s22 = scalar_lea.hbm %s9930_s6, 32 }
  0xfd   : > { %p8105_p1 = scmp.ne.s32.totalorder %s9930_s6, %s8104_s22  ;;  %p8111_p12 = scmp.lt.u32.totalorder %s8104_s22, %s9930_s6 }
  0xff   : > { %p8107_p3 = pnand %p8105_p1, %p8568_p8 }
 0x101   : > { %p8108_p11 = pneg %p8107_p3 }
 0x103   : > { %p8113_p13 = pnand %p8111_p12, %p8108_p11 }
 0x105   : > { %8116 = shalt.err (!%p8113_p13)
}
 0x106   : > { %s8117_s24 = scalar_lea.vmem %s8724_s29, 32  ;;  %p8125_p7 = scmp.lt.s32.totalorder %s8724_s29, %s8724_s29 }
 0x107   : > { %p8118_p0 = scmp.ne.s32.totalorder %s8724_s29, %s8117_s24  ;;  %p8126_p9 = scmp.lt.s32.totalorder %s8117_s24, %s8117_s24 }
 0x109   : > { %p8120_p2 = pnand %p8118_p0, %p8568_p8  ;;  %p8127_p4 = por %p8126_p9, %p8125_p7 }
 0x10b   : > { %p8121_p5 = pneg %p8120_p2 }
 0x10d   : > { %p8128_p10 = pnand %p8127_p4, %p8121_p5 }
 0x10f   : > { %8131 = shalt.err (!%p8128_p10)
}
 0x110   : > { %7364 = dma.hbm_to_vmem [thread:$0]  (!%p8552_p6), %s9930_s6, 32, %s8724_s29, [#allocation12], %s9901_s27, %s9901_s27, %s9902_s0  }
 0x111   : > { %s8420_s17 = smov [#allocation16]   ;;  %s8421_s23 = smov [#allocation19]  }
 0x112   : > { %s486_s15 = sshll.u32 %s8420_s17, 4  ;;  %s512_s22 = sshll.u32 %s8421_s23, 4  ;;  %s487_s15 = int_to_ptr.vmem [resolvable:$true] %s486_s15  ;;  %s8773_s22 = int_to_ptr.vmem [resolvable:$true] %s512_s22 }
 0x113   : > { %s9931_s8 = sld [smem:[#allocation49_spill]] }
 0x119   : > { %s8132_s2 = scalar_lea.hbm %s9931_s8, 32 }
 0x11a   : > { %p8133_p1 = scmp.ne.s32.totalorder %s9931_s8, %s8132_s2  ;;  %p8139_p12 = scmp.lt.u32.totalorder %s8132_s2, %s9931_s8 }
 0x11c   : > { %p8135_p3 = pnand %p8133_p1, %p8568_p8 }
 0x11e   : > { %p8136_p11 = pneg %p8135_p3 }
 0x120   : > { %p8141_p13 = pnand %p8139_p12, %p8136_p11 }
 0x122   : > { %8144 = shalt.err (!%p8141_p13)
}
 0x123   : > { %s8145_s18 = scalar_lea.vmem %s487_s15, 32  ;;  %p8153_p7 = scmp.lt.s32.totalorder %s487_s15, %s487_s15 }
 0x124   : > { %p8146_p0 = scmp.ne.s32.totalorder %s487_s15, %s8145_s18  ;;  %p8154_p9 = scmp.lt.s32.totalorder %s8145_s18, %s8145_s18 }
 0x126   : > { %p8148_p2 = pnand %p8146_p0, %p8568_p8  ;;  %p8155_p4 = por %p8154_p9, %p8153_p7 }
 0x128   : > { %p8149_p5 = pneg %p8148_p2 }
 0x12a   : > { %p8156_p10 = pnand %p8155_p4, %p8149_p5 }
 0x12c   : > { %8159 = shalt.err (!%p8156_p10)
}
 0x12d   : > { %7370 = dma.hbm_to_vmem [thread:$0]  (!%p8552_p6), %s9931_s8, 32, %s487_s15, [#allocation15], %s9901_s27, %s9901_s27, %s9902_s0  }
 0x12e   : > { %s8160_s2 = scalar_lea.hbm %s9881_s10, 64 }
 0x12f   : > { %p8161_p1 = scmp.ne.s32.totalorder %s9881_s10, %s8160_s2  ;;  %p8167_p12 = scmp.lt.u32.totalorder %s8160_s2, %s9881_s10 }
 0x131   : > { %p8163_p3 = pnand %p8161_p1, %p8568_p8 }
 0x133   : > { %p8164_p11 = pneg %p8163_p3 }
 0x135   : > { %p8169_p13 = pnand %p8167_p12, %p8164_p11 }
 0x137   : > { %8172 = shalt.err (!%p8169_p13)
}
 0x138   : > { %s8173_s15 = scalar_lea.vmem %s8773_s22, 64  ;;  %p8181_p7 = scmp.lt.s32.totalorder %s8773_s22, %s8773_s22 }
 0x139   : > { %p8174_p0 = scmp.ne.s32.totalorder %s8773_s22, %s8173_s15  ;;  %p8182_p9 = scmp.lt.s32.totalorder %s8173_s15, %s8173_s15 }
 0x13b   : > { %p8176_p2 = pnand %p8174_p0, %p8568_p8  ;;  %p8183_p4 = por %p8182_p9, %p8181_p7 }
 0x13d   : > { %p8177_p5 = pneg %p8176_p2 }
 0x13f   : > { %p8184_p10 = pnand %p8183_p4, %p8177_p5 }
 0x141   : > { %8187 = shalt.err (!%p8184_p10)
}
 0x142   : > { %s8422_s18 = smov 32   ;;  %s8423_s17 = smov 2  }
 0x143   : > { %7376 = dma.hbm_to_vmem [thread:$0]  (!%p8552_p6), %s9881_s10, 64, %s8773_s22, [#allocation18], %s8422_s18, %s8422_s18, %s8423_s17  }
 0x144   : > { %s8424_s16 = smov [#allocation22]   ;;  %s8425_s25 = smov [#allocation25]  }
 0x145   : > { %s538_s2 = sshll.u32 %s8424_s16, 4  ;;  %s563_s24 = sshll.u32 %s8425_s25, 4  ;;  %s539_s2 = int_to_ptr.vmem [resolvable:$true] %s538_s2  ;;  %s8819_s24 = int_to_ptr.vmem [resolvable:$true] %s563_s24 }
 0x146   : > { %s8188_s15 = scalar_lea.hbm %s9883_s12, 32 }
 0x147   : > { %p8189_p1 = scmp.ne.s32.totalorder %s9883_s12, %s8188_s15  ;;  %p8195_p12 = scmp.lt.u32.totalorder %s8188_s15, %s9883_s12 }
 0x149   : > { %p8191_p3 = pnand %p8189_p1, %p8568_p8 }
 0x14b   : > { %p8192_p11 = pneg %p8191_p3 }
 0x14d   : > { %p8197_p13 = pnand %p8195_p12, %p8192_p11 }
 0x14f   : > { %8200 = shalt.err (!%p8197_p13)
}
 0x150   : > { %s8201_s18 = scalar_lea.vmem %s539_s2, 32  ;;  %p8209_p7 = scmp.lt.s32.totalorder %s539_s2, %s539_s2 }
 0x151   : > { %p8202_p0 = scmp.ne.s32.totalorder %s539_s2, %s8201_s18  ;;  %p8210_p9 = scmp.lt.s32.totalorder %s8201_s18, %s8201_s18 }
 0x153   : > { %p8204_p2 = pnand %p8202_p0, %p8568_p8  ;;  %p8211_p4 = por %p8210_p9, %p8209_p7 }
 0x155   : > { %p8205_p5 = pneg %p8204_p2 }
 0x157   : > { %p8212_p10 = pnand %p8211_p4, %p8205_p5 }
 0x159   : > { %8215 = shalt.err (!%p8212_p10)
}
 0x15a   : > { %s9932_s27 = smov 1   ;;  %s9933_s0 = smov 16  }
 0x15b   : > { %7382 = dma.hbm_to_vmem [thread:$0]  (!%p8552_p6), %s9883_s12, 32, %s539_s2, [#allocation21], %s9933_s0, %s9933_s0, %s9932_s27  }
 0x15c   : > { %s8216_s1 = scalar_lea.hbm %s9885_s14, 16 }
 0x15d   : > { %p8217_p1 = scmp.ne.s32.totalorder %s9885_s14, %s8216_s1  ;;  %p8223_p12 = scmp.lt.u32.totalorder %s8216_s1, %s9885_s14 }
 0x15f   : > { %p8219_p3 = pnand %p8217_p1, %p8568_p8 }
 0x161   : > { %p8220_p11 = pneg %p8219_p3 }
 0x163   : > { %p8225_p13 = pnand %p8223_p12, %p8220_p11 }
 0x165   : > { %8228 = shalt.err (!%p8225_p13)
}
 0x166   : > { %s8229_s2 = scalar_lea.vmem %s8819_s24, 16  ;;  %s8236_s18 = scalar_lea.vmem %s8819_s24, 32 }
 0x167   : > { %p8230_p0 = scmp.ne.s32.totalorder %s8819_s24, %s8229_s2  ;;  %p8237_p7 = scmp.lt.s32.totalorder %s8819_s24, %s8819_s24 }
 0x168   : > { %p8238_p9 = scmp.lt.s32.totalorder %s8236_s18, %s8229_s2 }
 0x169   : > { %p8232_p2 = pnand %p8230_p0, %p8568_p8 }
 0x16a   : > { %p8239_p4 = por %p8238_p9, %p8237_p7 }
 0x16b   : > { %p8233_p5 = pneg %p8232_p2 }
 0x16d   : > { %p8240_p10 = pnand %p8239_p4, %p8233_p5 }
 0x16f   : > { %8243 = shalt.err (!%p8240_p10)
}
 0x170   : > { %s9934_s26 = sld [smem:[#allocation38_spill]]  ;;  %s9935_s17 = sld [smem:[#allocation37_spill]] }
 0x171   : > { %s9936_s3 = sld [smem:[#allocation39_spill]]  ;;  %s5976_s28 = sadd.s32 4294967294, %s8402_s21  }
 0x172   : > { %7388 = dma.hbm_to_vmem [thread:$0]  (!%p8552_p6), %s9885_s14, 16, %s8819_s24, [#allocation24]  }
 0x173   : > { %s8868_s16 = sadd.s32 1, %s8402_s21   ;;  %s47_s1 = sadd.s32 1, %s8398_s20 }
 0x174   : > { %s44_s25 = ssub.s32 %s8402_s21, %s8868_s16  ;;  %p55_p3 = scmp.eq.s32.totalorder %s8402_s21, 0 }
 0x175   : > { %p45_p8 = scmp.eq.s32.totalorder %s44_s25, 0  ;;  %p389_p2 = scmp.eq.s32.totalorder %s5976_s28, 1 }
 0x176   : > { %p54_p1 = scmp.ne.s32.totalorder %s8398_s20, %s9934_s26  ;;  %p60_p11 = scmp.ne.s32.totalorder %s9934_s26, %s9935_s17 }
 0x177   : > { %s8879_s29 = scalar_select %p45_p8, %s8398_s20, %s47_s1  }
 0x178   : > { %p8881_p12 = por %p55_p3, %p54_p1  ;;  %p9938_p13 = scmp.eq.s32.totalorder %s9936_s3, 0 }
 0x179   : > { %p383_p0 = scmp.eq.s32.totalorder %s9936_s3, 1  ;;  %p7413_p5 = scmp.lt.s32.totalorder %s8402_s21, 2 }
 0x17a   : > { %p8887_p6 = por %p9938_p13, %p60_p11  ;;  %s574_s23 = sand.u32 1, %s8398_s20  }
 0x17b   : > { %p8894_p7 = por %p383_p0, %p54_p1  ;;  %p8898_p9 = por %p389_p2, %p60_p11 }
 0x17c   : > { %s5992_s18 = sshll.u32 %s574_s23, 5  ;;  %s6134_s27 = sshll.u32 %s8402_s21, 9 }
 0x17d   : > { %s9940_s22 = scalar_select %p8894_p7, 1, 0 }
 0x17e   : > { %s9941_s2 = scalar_select %p8898_p9, 1, 0 }
 0x17f   : > { %s9942_s17 = sld [smem:[#allocation41_spill]]  ;;  %s578_s3 = scalar_lea.vmem [#allocation2], %s5992_s18 }
 0x180   : > { %s586_s28 = sshll.u32 %s578_s3, 4  ;;  %p8912_p4 = pnand %p7413_p5, %p8881_p12  ;;  %s8908_s28 = int_to_ptr.vmem [resolvable:$true] %s586_s28 }
 0x181   : > { %s9944_s6 = sld [smem:[#allocation42_spill]]  ;;  %s600_s26 = scalar_lea.vmem [#allocation5], %s5992_s18 }
 0x182   : > { %s8921_s7 = sshll.u32 %s600_s26, 4  ;;  %s8923_s8 = scalar_lea.sflag [#allocation3], %s574_s23  ;;  %s8955_s7 = int_to_ptr.vmem [resolvable:$true] %s8921_s7 }
 0x183   : > { %p8246_p8 = pneg %p8912_p4 }
 0x185   : > { %s8906_s25 = scalar_lea.hbm %s9942_s17, %s6134_s27  ;;  %s8249_s4 = scalar_lea.hbm %s9942_s17, 1024 }
 0x186   : > { %s8244_s3 = scalar_lea.hbm %s8906_s25, 512  ;;  %p8250_p11 = scmp.lt.u32.totalorder %s8906_s25, %s9942_s17 }
 0x187   : > { %s8919_s0 = scalar_lea.hbm %s9944_s6, %s6134_s27  ;;  %p8245_p10 = scmp.ne.s32.totalorder %s8906_s25, %s8244_s3 }
 0x188   : > { %p8251_p12 = scmp.lt.u32.totalorder %s8249_s4, %s8244_s3  ;;  %p8253_p0 = scmp.lt.u32.totalorder %s8244_s3, %s8906_s25 }
 0x189   : > { %p8247_p1 = pnand %p8246_p8, %p8245_p10 }
 0x18a   : > { %p8252_p13 = por %p8251_p12, %p8250_p11 }
 0x18b   : > { %p8248_p3 = pneg %p8247_p1 }
 0x18c   : > { %p8254_p2 = por %p8253_p0, %p8252_p13 }
 0x18e   : > { %p8255_p5 = pnand %p8254_p2, %p8248_p3 }
 0x190   : > { %8258 = shalt.err (!%p8255_p5)
}
 0x191   : > { %s8259_s23 = scalar_lea.vmem %s8908_s28, 512  ;;  %s8426_s9 = smov [#allocation2]  }
 0x192   : > { %p8260_p10 = scmp.ne.s32.totalorder %s8908_s28, %s8259_s23  ;;  %s8264_s18 = sshll.u32 %s8426_s9, 4  ;;  %s8265_s18 = int_to_ptr.vmem [resolvable:$false] %s8264_s18 }
 0x193   : > { %s8266_s26 = scalar_lea.vmem %s8265_s18, 1024  ;;  %p8267_p7 = scmp.lt.s32.totalorder %s8908_s28, %s8265_s18 }
 0x194   : > { %p8262_p1 = pnand %p8260_p10, %p8246_p8  ;;  %p8268_p11 = scmp.lt.s32.totalorder %s8266_s26, %s8259_s23 }
 0x196   : > { %p8263_p9 = pneg %p8262_p1  ;;  %p8269_p12 = por %p8268_p11, %p8267_p7 }
 0x198   : > { %p8270_p13 = pnand %p8269_p12, %p8263_p9 }
 0x19a   : > { %8273 = shalt.err (!%p8270_p13)
}
 0x19b   : > { %7392 = dma.hbm_to_vmem [thread:$0]  (!%p8912_p4), %s8906_s25, 512, %s8908_s28, %s8923_s8, %s9928_s30, %s9928_s30, %s9927_s19  }
 0x19c   : > { %s596_s3 = sand.u32 1, %s8402_s21   ;;  %s8274_s4 = scalar_lea.hbm %s8919_s0, 512 }
 0x19d   : > { %s8958_s15 = scalar_lea.sflag [#allocation6], %s596_s3  ;;  %p8275_p7 = scmp.ne.s32.totalorder %s8919_s0, %s8274_s4 }
 0x19e   : > { %s8279_s23 = scalar_lea.hbm %s9944_s6, 1024  ;;  %p8280_p0 = scmp.lt.u32.totalorder %s8919_s0, %s9944_s6 }
 0x19f   : > { %p8277_p9 = pnand %p8275_p7, %p8246_p8  ;;  %p8281_p2 = scmp.lt.u32.totalorder %s8279_s23, %s8274_s4 }
 0x1a0   : > { %p8283_p10 = scmp.lt.u32.totalorder %s8274_s4, %s8919_s0 }
 0x1a1   : > { %p8278_p3 = pneg %p8277_p9  ;;  %p8282_p5 = por %p8281_p2, %p8280_p0 }
 0x1a3   : > { %p8284_p1 = por %p8283_p10, %p8282_p5 }
 0x1a5   : > { %p8285_p11 = pnand %p8284_p1, %p8278_p3 }
 0x1a7   : > { %8288 = shalt.err (!%p8285_p11)
}
 0x1a8   : > { %s8289_s8 = scalar_lea.vmem %s8955_s7, 512  ;;  %s8427_s25 = smov [#allocation5]  }
 0x1a9   : > { %p8290_p12 = scmp.ne.s32.totalorder %s8955_s7, %s8289_s8  ;;  %s8294_s28 = sshll.u32 %s8427_s25, 4  ;;  %s8295_s28 = int_to_ptr.vmem [resolvable:$false] %s8294_s28 }
 0x1aa   : > { %s8296_s26 = scalar_lea.vmem %s8295_s28, 1024  ;;  %p8297_p9 = scmp.lt.s32.totalorder %s8955_s7, %s8295_s28 }
 0x1ab   : > { %p8292_p13 = pnand %p8290_p12, %p8246_p8  ;;  %p8298_p0 = scmp.lt.s32.totalorder %s8296_s26, %s8289_s8 }
 0x1ad   : > { %p8293_p7 = pneg %p8292_p13  ;;  %p8299_p2 = por %p8298_p0, %p8297_p9 }
 0x1af   : > { %p8300_p5 = pnand %p8299_p2, %p8293_p7 }
 0x1b1   : > { %8303 = shalt.err (!%p8300_p5)
}
 0x1b2   : > { %7395 = dma.hbm_to_vmem [thread:$0]  (!%p8912_p4), %s8919_s0, 512, %s8955_s7, %s8958_s15, %s9928_s30, %s9928_s30, %s9927_s19  }
 0x1b3   : > { %s9945_s3 = sld [smem:[#allocation40_spill]] }
 0x1b9   : > { %p9946_p8 = scmp.ne.s32.totalorder %s9945_s3, 0 }
 0x1ba   : > { %s9947_s4 = sld [smem:[#allocation38_spill]] (!%p9946_p8) }
 0x1bb   : > { %620 = sbr.rel (%p9946_p8) target bundleno = 11401 (0x2c89), region = 80 }
 0x1c0   : > { %s8990_s5 = sand.u32 (!%p9946_p8), 1, %s9947_s4  }
 0x1c1   : > { %s8993_s27 = sshll.u32 (!%p9946_p8), %s8990_s5, 5  ;;  %s623_s1 = scalar_lea.sflag (!%p9946_p8), [#allocation3], %s8990_s5 }
 0x1c2   : > { %s8997_s23 = scalar_lea.vmem [#allocation2], %s8993_s27 }
 0x1c3   : > { %8349 = dma.done.wait (%p8887_p6), %s623_s1, 512  }
 0x1c4   : > { %8351 = vsyncadd (%p8887_p6), %s623_s1, 4294966784  ;;  %s9948_s7 = sld [smem:[#allocation39_spill]]  ;;  %s9005_s0 = scalar_lea.vmem [#allocation5], %s8993_s27 }
 0x1ca   : > { %s631_s19 = sand.u32 1, %s9948_s7  }
 0x1cb   : > { %s632_s30 = scalar_lea.sflag [#allocation6], %s631_s19 }
 0x1cc   : > { %8353 = dma.done.wait (%p8887_p6), %s632_s30, 512  }
 0x1cd   : > { %8355 = vsyncadd (%p8887_p6), %s632_s30, 4294966784  ;;  %p9949_p4 = scmp.eq.s32.totalorder %s9948_s7, 0 }
 0x1cf   : > { %8357 = dma.done.wait (%p9949_p4), [#allocation6], 256   ;;  %p9950_p3 = pmov %p9949_p4 }
 0x1d1   : > { %8359 = vsyncadd (%p9950_p3), [#allocation6], 4294967040  ;;  %p9951_p10 = pmov %p9950_p3 }
 0x1d2   : > { %p9952_p1 = pmov %p9950_p3 }
 0x1d3   : > { %8361 = dma.done.wait (%p9951_p10), [#allocation9], 16384  }
 0x1d4   : > { %8363 = vsyncadd (%p9952_p1), [#allocation9], 4294950912  ;;  %p9953_p11 = pmov %p9952_p1 }
 0x1d5   : > { %p9954_p12 = pmov %p9952_p1 }
 0x1d6   : > { %8365 = dma.done.wait (%p9953_p11), [#allocation12], 64  }
 0x1d7   : > { %8367 = vsyncadd (%p9954_p12), [#allocation12], 4294967232  ;;  %p9955_p6 = pmov %p9952_p1 }
 0x1d8   : > { %p9956_p13 = pmov %p9952_p1 }
 0x1d9   : > { %8369 = dma.done.wait (%p9955_p6), [#allocation15], 64  }
 0x1da   : > { %8371 = vsyncadd (%p9956_p13), [#allocation15], 4294967232  ;;  %p9957_p7 = pmov %p9952_p1 }
 0x1db   : > { %p9958_p9 = pmov %p9952_p1 }
 0x1dc   : > { %8373 = dma.done.wait (%p9957_p7), [#allocation18], 8256  }
 0x1dd   : > { %8375 = vsyncadd (%p9958_p9), [#allocation18], 4294959040  ;;  %p9959_p0 = pmov %p9952_p1 }
 0x1df   : > { %8377 = dma.done.wait (%p9959_p0), [#allocation21], 8224   ;;  %p9960_p2 = pmov %p9959_p0 }
 0x1e0   : > { %p9961_p5 = pmov %p9959_p0 }
 0x1e1   : > { %8379 = vsyncadd (%p9960_p2), [#allocation21], 4294959072 }
 0x1e2   : > { %8381 = dma.done.wait (%p9961_p5), [#allocation24], 32   ;;  %p9962_p8 = pmov %p9959_p0 }
 0x1e3   : > { %v742_v0 = vld [vmem:[%s8997_s23] sm:$0xff]  ;;  %v743_v2 = vld [vmem:[%s8997_s23 + $0x8] sm:$0xff]  ;;  %v744_v6 = vld [vmem:[%s8997_s23 + $0x10] sm:$0xff]  ;;  %vm1079_vm8 = vcmask 261120   ;;  %vm1167_vm10 = vcmask 130048   ;;  %s8429_s24 = smov 96  }
 0x1e4   : > { %8383 = vsyncadd (%p9962_p8), [#allocation24], 4294967264  ;;  %v750_v1 = vld [vmem:[#allocation7] sm:$0xff]  ;;  %v746_v3 = vmul.f32 11.313708, %v742_v0  ;;  %v751_v5 = vld [vmem:[#allocation7 + $0x8] sm:$0xff] }
 0x1e5   : > { %v747_v4 = vmul.f32 11.313708, %v743_v2  ;;  %v748_v9 = vmul.f32 11.313708, %v744_v6  ;;  %v745_v15 = vld [vmem:[%s8997_s23 + $0x18] sm:$0xff]  ;;  %v859_v27 = vld [vmem:[#allocation8 + $0x20] sm:$0xff]  ;;  %vm9091_vm9 = vmpackc.low %vm1079_vm8, %vm1079_vm8 }
 0x1e6   : > { %v9042_v7 = vadd.f32 %v750_v1, %v746_v3  ;;  %v749_v19 = vmul.f32 11.313708, %v745_v15  ;;  %v856_v26 = vld [vmem:[#allocation8 + $0x8] sm:$0xff]  ;;  %v855_v29 = vld [vmem:[#allocation8] sm:$0xff]  ;;  %v858_v30 = vld [vmem:[#allocation8 + $0x18] sm:$0xff]  ;;  %v8428_v15 = vmov 0.0  }
 0x1e7   : > { %v9045_v8 = vadd.f32 %v751_v5, %v747_v4  ;;  %v9048_v10 = vadd.f32 %v750_v1, %v748_v9  ;;  %v6811_v28 = vpack.c.bf16 %v859_v27, %v856_v26  ;;  %v6813_v31 = vpack.c.bf16 %v858_v30, %v855_v29  ;;  %v862_v32 = vld [vmem:[#allocation8 + $0x38] sm:$0xff]  ;;  %v865_v33 = vld [vmem:[#allocation8 + $0x50] sm:$0xff]  ;;  %v860_v36 = vld [vmem:[#allocation8 + $0x28] sm:$0xff]  ;;  %967 = vmatprep.mubr.f32.mxu0 %v8428_v15  ;;  %s8430_s15 = smov 64   ;;  %s8431_s9 = smov 32  }
 0x1e8   : > { %758 = vadd.xlane.f32.xlu0 %v9042_v7  ;;  %v9062_v23 = vadd.f32 %v751_v5, %v749_v19  ;;  %v857_v34 = vld [vmem:[#allocation8 + $0x10] sm:$0xff]  ;;  %v6815_v35 = vpack.c.bf16 %v865_v33, %v862_v32  ;;  %v864_v38 = vld [vmem:[#allocation8 + $0x48] sm:$0xff]  ;;  %v871_v42 = vld [vmem:[#allocation8 + $0x80] sm:$0xff]  ;;  %vm1899_vm11 = vcmask 523264   ;;  %vm1902_vm12 = vcmask 785408   ;;  %s9812_s18 = scalar_lea.vmem [#allocation26], %s8993_s27 }
 0x1e9   : > { %6812 = vmatprep.subr.bf16.mxu0 %v6811_v28  ;;  %v861_v37 = vld [vmem:[#allocation8 + $0x30] sm:$0xff]  ;;  %v6843_v39 = vpack.c.bf16 %v860_v36, %v857_v34  ;;  %v868_v41 = vld [vmem:[#allocation8 + $0x68] sm:$0xff]  ;;  %v863_v43 = vld [vmem:[#allocation8 + $0x40] sm:$0xff]  ;;  %s6138_s8 = sshll.u32 %s9948_s7, 9  ;;  %s5757_s25 = sshll.u32 %s9812_s18, 4  ;;  %s9826_s25 = int_to_ptr.vmem [resolvable:$true] %s5757_s25 }
 0x1ea   : > { %6814 = vmatpush1.bf16.msra.mxu0 %v6813_v31  ;;  %v6817_v40 = vpack.c.bf16 %v864_v38, %v861_v37  ;;  %v6819_v44 = vpack.c.bf16 %v871_v42, %v868_v41  ;;  %v866_v45 = vld [vmem:[#allocation8 + $0x58] sm:$0xff]  ;;  %v867_v46 = vld [vmem:[#allocation8 + $0x60] sm:$0xff]  ;;  %v877_v51 = vld [vmem:[#allocation8 + $0xb0] sm:$0xff]  ;;  %s9965_s3 = sld [smem:[#allocation51_spill]]  ;;  %s5743_s27 = scalar_lea.sflag [#allocation4], %s8990_s5 }
 0x1eb   : > { %6816 = vmatprep.subr.bf16.mxu0 %v6815_v35  ;;  %6844 = vmatprep.subr.bf16.mxu1 %v6843_v39  ;;  %v870_v47 = vld [vmem:[#allocation8 + $0x78] sm:$0xff]  ;;  %v6847_v48 = vpack.c.bf16 %v866_v45, %v863_v43  ;;  %v869_v52 = vld [vmem:[#allocation8 + $0x70] sm:$0xff]  ;;  %v872_v54 = vld [vmem:[#allocation8 + $0x88] sm:$0xff]  ;;  %s8304_s1 = scalar_lea.vmem %s9826_s25, 512  ;;  %p9966_p3 = scmp.ne.s32.totalorder %s9940_s22, 0 }
 0x1ec   : > { %760 = vadd.xlane.f32.xlu0 %v9045_v8  ;;  %6846 = vmatpush3.bf16.msra.mxu1 %v6843_v39  ;;  %v6821_v49 = vpack.c.bf16 %v870_v47, %v867_v46  ;;  %v874_v50 = vld [vmem:[#allocation8 + $0x98] sm:$0xff]  ;;  %v873_v55 = vld [vmem:[#allocation8 + $0x90] sm:$0xff]  ;;  %v876_v56 = vld [vmem:[#allocation8 + $0xa8] sm:$0xff]  ;;  %v6851_v57 = vpack.c.bf16 %v872_v54, %v869_v52  ;;  %p8305_p4 = scmp.ne.s32.totalorder %s9826_s25, %s8304_s1  ;;  %s8432_s23 = smov [#allocation26]  }
 0x1ed   : > { %6848 = vmatprep.subr.bf16.mxu1 %v6847_v48  ;;  %v6823_v53 = vpack.c.bf16 %v877_v51, %v874_v50  ;;  %v6825_v58 = vpack.c.bf16 %v876_v56, %v873_v55  ;;  %v880_v59 = vld [vmem:[#allocation8 + $0xc8] sm:$0xff]  ;;  %v883_v60 = vld [vmem:[#allocation8 + $0xe0] sm:$0xff]  ;;  %v878_v63 = vld [vmem:[#allocation8 + $0xb8] sm:$0xff]  ;;  %s8308_s7 = sshll.u32 %s8432_s23, 4  ;;  %s8309_s7 = int_to_ptr.vmem [resolvable:$false] %s8308_s7 }
 0x1ee   : > { %6818 = vmatpush1.bf16.msra.mxu0 %v6817_v40  ;;  %v875_v61 = vld [vmem:[#allocation8 + $0xa0] sm:$0xff]  ;;  %v6827_v62 = vpack.c.bf16 %v883_v60, %v880_v59  ;;  %v882_v1 = vld [vmem:[#allocation8 + $0xd8] sm:$0xff]  ;;  %v889_v5 = vld [vmem:[#allocation8 + $0x110] sm:$0xff]  ;;  %p8306_p10 = pnand %p8305_p4, %p9966_p3  ;;  %s8310_s19 = scalar_lea.vmem %s8309_s7, 1024 }
 0x1ef   : > { %6820 = vmatprep.subr.bf16.mxu0 %v6819_v44  ;;  %v879_v0 = vld [vmem:[#allocation8 + $0xc0] sm:$0xff]  ;;  %v6855_v2 = vpack.c.bf16 %v878_v63, %v875_v61  ;;  %v886_v4 = vld [vmem:[#allocation8 + $0xf8] sm:$0xff]  ;;  %v881_v6 = vld [vmem:[#allocation8 + $0xd0] sm:$0xff]  ;;  %p8311_p11 = scmp.lt.s32.totalorder %s9826_s25, %s8309_s7  ;;  %p8312_p12 = scmp.lt.s32.totalorder %s8310_s19, %s8304_s1 }
 0x1f0   : > { %762 = vadd.xlane.f32.xlu0 %v9048_v10  ;;  %6850 = vmatpush3.bf16.msra.mxu1 %v6847_v48  ;;  %v6829_v3 = vpack.c.bf16 %v882_v1, %v879_v0  ;;  %v6831_v9 = vpack.c.bf16 %v889_v5, %v886_v4  ;;  %v892_v19 = vld [vmem:[#allocation8 + $0x128] sm:$0xff]  ;;  %v891_v26 = vld [vmem:[#allocation8 + $0x120] sm:$0xff]  ;;  %v894_v27 = vld [vmem:[#allocation8 + $0x138] sm:$0xff]  ;;  %s9824_s4 = scalar_lea.hbm %s9965_s3, %s6138_s8  ;;  %p8307_p1 = pneg %p8306_p10 }
 0x1f1   : > { %6852 = vmatprep.subr.bf16.mxu1 %v6851_v57  ;;  %v898_v29 = vld [vmem:[#allocation8 + $0x158] sm:$0xff]  ;;  %v901_v30 = vld [vmem:[#allocation8 + $0x170] sm:$0xff]  ;;  %v896_v32 = vld [vmem:[#allocation8 + $0x148] sm:$0xff]  ;;  %v6837_v33 = vpack.c.bf16 %v894_v27, %v891_v26  ;;  %p8313_p6 = por %p8312_p12, %p8311_p11 }
 0x1f2   : > { %6822 = vmatpush1.bf16.msra.mxu0 %v6821_v49  ;;  %v893_v31 = vld [vmem:[#allocation8 + $0x130] sm:$0xff]  ;;  %v6839_v34 = vpack.c.bf16 %v901_v30, %v898_v29  ;;  %v900_v36 = vld [vmem:[#allocation8 + $0x168] sm:$0xff]  ;;  %v899_v39 = vld [vmem:[#allocation8 + $0x160] sm:$0xff] }
 0x1f3   : > { %6824 = vmatprep.subr.bf16.mxu0 %v6823_v53  ;;  %v897_v35 = vld [vmem:[#allocation8 + $0x150] sm:$0xff]  ;;  %v6867_v37 = vpack.c.bf16 %v896_v32, %v893_v31  ;;  %v902_v40 = vld [vmem:[#allocation8 + $0x178] sm:$0xff]  ;;  %p8314_p13 = pnand %p8313_p6, %p8307_p1 }
 0x1f4   : > { %6854 = vmatpush3.bf16.msra.mxu1 %v6851_v57  ;;  %v6841_v38 = vpack.c.bf16 %v900_v36, %v897_v35  ;;  %v6871_v41 = vpack.c.bf16 %v902_v40, %v899_v39 }
 0x1f5   : > { %6856 = vmatprep.subr.bf16.mxu1 %v6855_v2 }
 0x1f6   : > { %6826 = vmatpush1.bf16.msra.mxu0 %v6825_v58 }
 0x1f7   : > { %6828 = vmatprep.subr.bf16.mxu0 %v6827_v62 }
 0x1f8   : > { %6858 = vmatpush3.bf16.msra.mxu1 %v6855_v2 }
 0x1fa   : > { %6830 = vmatpush1.bf16.msra.mxu0 %v6829_v3 }
 0x1fb   : > { %6832 = vmatprep.subr.bf16.mxu0 %v6831_v9  ;;  %v6017_v9 = vld [vmem:[#allocation11] ss:$0 sm:$0xff] }
 0x275   : > { %v759_v11 = vpop.xlane.xlu0 %758 }
 0x276   : > { %v767_v12 = vmul.f32 0.0078125, %v759_v11  ;;  %v884_v11 = vld [vmem:[#allocation8 + $0xe8] sm:$0xff] }
 0x278   : > { %v9052_v13 = vsub.f32 %v9042_v7, %v767_v12  ;;  %v885_v12 = vld [vmem:[#allocation8 + $0xf0] sm:$0xff] }
 0x279   : > { %v761_v14 = vpop.xlane.xlu0 %760 }
 0x27a   : > { %v768_v16 = vmul.f32 0.0078125, %v761_v14  ;;  %v775_v17 = vmul.f32 %v9052_v13, %v9052_v13  ;;  %v888_v14 = vld [vmem:[#allocation8 + $0x108] sm:$0xff] }
 0x27c   : > { %779 = vadd.xlane.f32.xlu1 %v775_v17  ;;  %v9058_v18 = vsub.f32 %v9045_v8, %v768_v16  ;;  %v6859_v16 = vpack.c.bf16 %v884_v11, %v881_v6  ;;  %v6833_v17 = vpack.c.bf16 %v888_v14, %v885_v12  ;;  %v6018_v12 = vld [vmem:[#allocation13] ss:$0 sm:$0xff] }
 0x27d   : > { %v763_v20 = vpop.xlane.xlu0 %762 }
 0x27e   : > { %v776_v21 = vmul.f32 %v9058_v18, %v9058_v18  ;;  %v769_v22 = vmul.f32 0.0078125, %v763_v20  ;;  %v895_v20 = vld [vmem:[#allocation8 + $0x140] sm:$0xff]  ;;  %6860 = vmatprep.subr.bf16.mxu1 %v6859_v16  ;;  %6834 = vmatpush1.bf16.msra.mxu0 %v6833_v17 }
 0x27f   : > { %6862 = vmatpush3.bf16.msra.mxu1 %v6859_v16 }
 0x280   : > { %781 = vadd.xlane.f32.xlu1 %v776_v21  ;;  %v9065_v24 = vsub.f32 %v9048_v10, %v769_v22  ;;  %v887_v21 = vld [vmem:[#allocation8 + $0x100] sm:$0xff]  ;;  %v6835_v22 = vpack.c.bf16 %v895_v20, %v892_v19 }
 0x282   : > { %v777_v25 = vmul.f32 %v9065_v24, %v9065_v24  ;;  %6836 = vmatprep.subr.bf16.mxu0 %v6835_v22 }
 0x283   : > { %6838 = vmatpush1.bf16.msra.mxu0 %v6837_v33 }
 0x284   : > { %764 = vadd.xlane.f32.xlu1 %v9062_v23  ;;  %783 = vadd.xlane.f32.xlu0 %v777_v25  ;;  %v890_v25 = vld [vmem:[#allocation8 + $0x118] sm:$0xff] }
 0x285   : > { %v6863_v28 = vpack.c.bf16 %v890_v25, %v887_v21  ;;  %6840 = vmatprep.subr.bf16.mxu0 %v6839_v34 }
 0x287   : > { %6864 = vmatprep.subr.bf16.mxu1 %v6863_v28  ;;  %6842 = vmatpush1.bf16.msra.mxu0 %v6841_v38 }
 0x288   : > { %6866 = vmatpush3.bf16.msra.mxu1 %v6863_v28 }
 0x289   : > { %6868 = vmatprep.subr.bf16.mxu1 %v6867_v37 }
 0x28c   : > { %6870 = vmatpush3.bf16.msra.mxu1 %v6867_v37 }
 0x28d   : > { %6872 = vmatprep.subr.bf16.mxu1 %v6871_v41 }
 0x290   : > { %6874 = vmatpush3.bf16.msra.mxu1 %v6871_v41 }
 0x309   : > { %v780_v42 = vpop.xlane.xlu1 %779 }
 0x30a   : > { %v787_v43 = vmul.f32 0.007874016, %v780_v42 }
 0x30c   : > { %7668 = vrsqrt.f32 %v787_v43  ;;  %vm793_vm0 = vcmp.eq.f32.partialorder %v787_v43, inf  ;;  %v796_v54 = vand.u32 2147483648, %v787_v43  ;;  %vm795_vm1 = vcmp.eq.f32.partialorder %v787_v43, 0.0 }
 0x30d   : > { %v782_v44 = vpop.xlane.xlu1 %781 }
 0x30e   : > { %v788_v45 = vmul.f32 0.007874016, %v782_v44 }
 0x310   : > { %7670 = vrsqrt.f32 %v788_v45  ;;  %vm800_vm2 = vcmp.eq.f32.partialorder %v788_v45, inf  ;;  %v803_v60 = vand.u32 2147483648, %v788_v45  ;;  %vm802_vm3 = vcmp.eq.f32.partialorder %v788_v45, 0.0 }
 0x311   : > { %v765_v46 = vpop.xlane.xlu1 %764  ;;  %v784_v47 = vpop.xlane.xlu0 %783 }
 0x312   : > { %v770_v48 = vmul.f32 0.0078125, %v765_v46  ;;  %v789_v49 = vmul.f32 0.007874016, %v784_v47 }
 0x314   : > { %v9072_v50 = vsub.f32 %v9062_v23, %v770_v48  ;;  %7672 = vrsqrt.f32 %v789_v49  ;;  %vm807_vm4 = vcmp.eq.f32.partialorder %v789_v49, inf  ;;  %v810_v0 = vand.u32 2147483648, %v789_v49 }
 0x315   : > { %vm809_vm5 = vcmp.eq.f32.partialorder %v789_v49, 0.0 }
 0x316   : > { %v7669_v51 = vpop.eup %7668  ;;  %v778_v52 = vmul.f32 %v9072_v50, %v9072_v50 }
 0x317   : > { %v792_v53 = vmul.f32 %v7669_v51, %v787_v43 }
 0x318   : > { %785 = vadd.xlane.f32.xlu1 %v778_v52 }
 0x319   : > { %v794_v55 = vsel %vm793_vm0, %v787_v43, %v792_v53 }
 0x31a   : > { %v7671_v56 = vpop.eup %7670  ;;  %v797_v57 = vsel %vm795_vm1, %v796_v54, %v794_v55 }
 0x31b   : > { %v799_v58 = vmul.f32 %v7671_v56, %v788_v45  ;;  %v819_v59 = vadd.f32 1e-06, %v797_v57 }
 0x31d   : > { %v801_v61 = vsel %vm800_vm2, %v788_v45, %v799_v58  ;;  %7674 = vrcp.f32 %v819_v59  ;;  %v9118_v58 = vld [vmem:[%s9005_s0 + $0x8] sm:$0xff]  ;;  %v9121_v59 = vld [vmem:[%s9005_s0] sm:$0xff] }
 0x31e   : > { %v7673_v62 = vpop.eup %7672  ;;  %v804_v63 = vsel %vm802_vm3, %v803_v60, %v801_v61 }
 0x31f   : > { %v820_v1 = vadd.f32 1e-06, %v804_v63  ;;  %v806_v2 = vmul.f32 %v7673_v62, %v789_v49 }
 0x321   : > { %7676 = vrcp.f32 %v820_v1  ;;  %v808_v3 = vsel %vm807_vm4, %v789_v49, %v806_v2 }
 0x322   : > { %v811_v4 = vsel %vm809_vm5, %v810_v0, %v808_v3 }
 0x323   : > { %v821_v5 = vadd.f32 1e-06, %v811_v4 }
 0x325   : > { %7678 = vrcp.f32 %v821_v5 }
 0x327   : > { %v7675_v6 = vpop.eup %7674 }
 0x328   : > { %v831_v11 = vmul.f32 %v7675_v6, %v9052_v13 }
 0x32a   : > { %v841_v14 = vmul.f32 %v6017_v9, %v831_v11 }
 0x32b   : > { %v7677_v16 = vpop.eup %7676 }
 0x32c   : > { %v851_v17 = vadd.f32 %v6018_v12, %v841_v14  ;;  %v832_v19 = vmul.f32 %v7677_v16, %v9058_v18 }
 0x32e   : > { %968 = vmatmul.mubr.f32.vlgmr.msra.gmra.mrb[0].mxu0 %v851_v17  ;;  %6467 = vmatprep.mubr.f32.mxu1 %v851_v17  ;;  %v842_v20 = vmul.f32 %v6017_v9, %v832_v19 }
 0x32f   : > { %v7679_v21 = vpop.eup %7678  ;;  %973 = vmatprep.mubr.f32.mxu0 %v8428_v15 }
 0x330   : > { %v852_v22 = vadd.f32 %v6018_v12, %v842_v20  ;;  %v833_v25 = vmul.f32 %v7679_v21, %v9065_v24 }
 0x332   : > { %974 = vmatmul.mubr.f32.gmra.mrb[2].mxu0 %v852_v22  ;;  %6468 = vmatmul.mubr.f32.vlgmr.msra.gmra.mrb[0].mxu1 %v852_v22  ;;  %v843_v26 = vmul.f32 %v6017_v9, %v833_v25 }
 0x333   : > { %979 = vmatprep.mubr.f32.mxu0 %v8428_v15 }
 0x334   : > { %v853_v13 = vadd.f32 %v6018_v12, %v843_v26 }
 0x336   : > { %980 = vmatmul.mubr.f32.gmra.mrb[4].mxu0 %v853_v13  ;;  %6470 = vmatprep.mubr.f32.mxu1 %v853_v13 }
 0x337   : > { %985 = vmatprep.mubr.f32.mxu0 %v8428_v15 }
 0x3a5   : > { %v786_v18 = vpop.xlane.xlu1 %785 }
 0x3a6   : > { %v790_v27 = vmul.f32 0.007874016, %v786_v18 }
 0x3a8   : > { %7680 = vrsqrt.f32 %v790_v27  ;;  %vm814_vm6 = vcmp.eq.f32.partialorder %v790_v27, inf  ;;  %v817_v29 = vand.u32 2147483648, %v790_v27  ;;  %vm816_vm7 = vcmp.eq.f32.partialorder %v790_v27, 0.0 }
 0x3b2   : > { %v7681_v28 = vpop.eup %7680 }
 0x3b3   : > { %v813_v30 = vmul.f32 %v7681_v28, %v790_v27 }
 0x3b5   : > { %v815_v31 = vsel %vm814_vm6, %v790_v27, %v813_v30 }
 0x3b6   : > { %v818_v24 = vsel %vm816_vm7, %v817_v29, %v815_v31 }
 0x3b7   : > { %v822_v32 = vadd.f32 1e-06, %v818_v24 }
 0x3b9   : > { %7682 = vrcp.f32 %v822_v32 }
 0x3c3   : > { %v7683_v33 = vpop.eup %7682 }
 0x3c4   : > { %v834_v34 = vmul.f32 %v7683_v33, %v9072_v50 }
 0x3c6   : > { %v844_v35 = vmul.f32 %v6017_v9, %v834_v34 }
 0x3c8   : > { %v854_v36 = vadd.f32 %v6018_v12, %v844_v35 }
 0x3ca   : > { %986 = vmatmul.mubr.f32.gmra.mrb[6].mxu0 %v854_v36  ;;  %6471 = vmatmul.mubr.f32.gmra.mrb[2].mxu1 %v854_v36 }
 0x401   : > { %v9083_v37 = vpop.f32.mrb[0].mxu0 }
 0x402   : > { %v971_v38 = vpop.f32.mrb[1].mxu0  ;;  %6477 = vmatprep.mubr.msk.f32.mxu1 %vm1079_vm8, %v9083_v37 }
 0x405   : > { %v9087_v39 = vpop.f32.mrb[2].mxu0  ;;  %v6469_v40 = vpop.f32.mrb[0].mxu1 }
 0x406   : > { %v977_v41 = vpop.f32.mrb[3].mxu0  ;;  %v1058_v42 = vpop.f32.mrb[1].mxu1 }
 0x407   : > { %v6875_v44 = vpack.c.bf16 %v977_v41, %v971_v38  ;;  %v6881_v45 = vpack.c.bf16 %v6469_v40, %v1058_v42  ;;  %v9095_v46 = vpack.i.bf16 %v977_v41, %v971_v38  ;;  %v9097_v47 = vpack.i.bf16 %v6469_v40, %v1058_v42 }
 0x409   : > { %6877 = vmatprep.subr.msk.bf16.mxu1 %vm9091_vm9, %v6875_v44  ;;  %v9101_v48 = vpop.f32.mrb[4].mxu0 }
 0x40a   : > { %6880 = vmatpush3.bf16.xpose.msk.msra.mxu1 %vm9091_vm9, %v6875_v44  ;;  %v983_v49 = vpop.f32.mrb[5].mxu0 }
 0x40b   : > { %6882 = vmatprep.subr.bf16.mxu1 %v6881_v45 }
 0x411   : > { %6478 = vmatmul.mubr.msk.f32.vlgmr.msra.gmra.mrb[4].mxu1 %vm1079_vm8, %v9087_v39 }
 0x412   : > { %6884 = vmatpush3.bf16.msra.mxu1 %v6881_v45 }
 0x49d   : > { %v9107_v50 = vpop.f32.mrb[6].mxu0  ;;  %v6472_v51 = vpop.f32.mrb[2].mxu1 }
 0x49e   : > { %v989_v52 = vpop.f32.mrb[7].mxu0  ;;  %v1068_v53 = vpop.f32.mrb[3].mxu1 }
 0x49f   : > { %v9109_v54 = vpack.c.bf16 %v989_v52, %v983_v49  ;;  %v9111_v55 = vpack.c.bf16 %v6472_v51, %v1068_v53  ;;  %v9113_v56 = vpack.i.bf16 %v989_v52, %v983_v49  ;;  %v9115_v57 = vpack.i.bf16 %v6472_v51, %v1068_v53 }
 0x4e4   : > { %v6479_v60 = vpop.f32.mrb[4].mxu1 }
 0x4e5   : > { %v1164_v61 = vadd.f32 %v6479_v60, %v9118_v58  ;;  %v1158_v62 = vpop.f32.mrb[5].mxu1 }
 0x4e6   : > { %v1159_v63 = vadd.f32 %v1158_v62, %v9121_v59 }
 0x4e7   : > { %v1171_v0 = vsel %vm1167_vm10, %v1164_v61, -inf }
 0x4e8   : > { %1172 = vmax.xlane.f32.xlu1 %v1171_v0  ;;  %v1168_v1 = vsel %vm1167_vm10, %v1159_v63, -inf }
 0x4e9   : > { %1169 = vmax.xlane.f32.xlu0 %v1168_v1 }
 0x575   : > { %v1173_v2 = vpop.xlane.xlu1 %1172 }
 0x576   : > { %v1175_v3 = vsub.f32 %v1164_v61, %v1173_v2  ;;  %v1170_v4 = vpop.xlane.xlu0 %1169 }
 0x577   : > { %v1174_v5 = vsub.f32 %v1159_v63, %v1170_v4 }
 0x578   : > { %v1178_v6 = vmul.f32 1.442695, %v1175_v3 }
 0x579   : > { %v1176_v9 = vmul.f32 1.442695, %v1174_v5 }
 0x57a   : > { %7684 = vpow2.f32 %v1178_v6 }
 0x57b   : > { %7686 = vpow2.f32 %v1176_v9 }
 0x584   : > { %v7685_v11 = vpop.eup %7684 }
 0x585   : > { %v7687_v12 = vpop.eup %7686  ;;  %v1183_v14 = vsel %vm1167_vm10, %v7685_v11, 0.0 }
 0x586   : > { %1184 = vadd.xlane.f32.xlu1 %v1183_v14  ;;  %v1180_v16 = vsel %vm1167_vm10, %v7687_v12, 0.0 }
 0x587   : > { %1181 = vadd.xlane.f32.xlu0 %v1180_v16 }
 0x597   : > { %1271 = vrot.lane.b32.xlu1 %v9083_v37, %s8429_s24 }
 0x59b   : > { %7494 = vrot.lane.b32.xlu1 %v9095_v46, %s8430_s15 }
 0x59d   : > { %7489 = vrot.lane.b32.xlu0 %v9095_v46, %s8429_s24 }
 0x59f   : > { %1273 = vrot.lane.b32.xlu1 %v9087_v39, %s8429_s24 }
 0x5a1   : > { %1473 = vrot.lane.b32.xlu0 %v9083_v37, %s8430_s15 }
 0x5a3   : > { %1475 = vrot.lane.b32.xlu1 %v9087_v39, %s8430_s15 }
 0x613   : > { %v1185_v17 = vpop.xlane.xlu1 %1184 }
 0x614   : > { %7688 = vrcp.f32 %v1185_v17  ;;  %v1182_v19 = vpop.xlane.xlu0 %1181 }
 0x615   : > { %7690 = vrcp.f32 %v1182_v19 }
 0x617   : > { %v1272_v20 = vpop.permute.xlu1 %1271 }
 0x618   : > { %v7490_v21 = vpop.permute.xlu0 %7489 }
 0x619   : > { %v7492_v22 = vunpack.i.h.bf16 %v7490_v21  ;;  %v7491_v25 = vunpack.i.l.bf16 %v7490_v21 }
 0x61b   : > { %v6885_v26 = vpack.c.bf16 %v7492_v22, %v7491_v25  ;;  %v7495_v13 = vpop.permute.xlu1 %7494 }
 0x61c   : > { %v7497_v18 = vunpack.i.h.bf16 %v7495_v13  ;;  %v7496_v27 = vunpack.i.l.bf16 %v7495_v13  ;;  %v1474_v28 = vpop.permute.xlu0 %1473 }
 0x61d   : > { %6887 = vmatprep.subr.msk.bf16.mxu1 %vm9091_vm9, %v6885_v26  ;;  %6505 = vmatprep.mubr.msk.f32.mxu0 %vm1079_vm8, %v1474_v28 }
 0x61e   : > { %v7689_v29 = vpop.eup %7688  ;;  %v6895_v30 = vpack.c.bf16 %v7497_v18, %v7496_v27 }
 0x61f   : > { %v7691_v31 = vpop.eup %7690  ;;  %v1274_v32 = vpop.permute.xlu1 %1273  ;;  %v1189_v33 = vmul.f32 %v7689_v29, %v7685_v11 }
 0x620   : > { %6897 = vmatprep.subr.msk.bf16.mxu0 %vm9091_vm9, %v6895_v30  ;;  %v1187_v24 = vmul.f32 %v7691_v31, %v7687_v12 }
 0x621   : > { %6900 = vmatpush3.bf16.xpose.msk.msra.mxu0 %vm9091_vm9, %v6895_v30 }
 0x622   : > { %6484 = vmatprep.mubr.msk.f32.mxu1 %vm1167_vm10, %v1187_v24 }
 0x623   : > { %6485 = vmatmul.mubr.msk.f32.vlgmr.msra.gmra.mrb[6].mxu1 %vm1167_vm10, %v1189_v33  ;;  %v1476_v34 = vpop.permute.xlu1 %1475 }
 0x624   : > { %6890 = vmatpush3.bf16.xpose.msk.msra.mxu1 %vm9091_vm9, %v6885_v26  ;;  %6491 = vmatprep.mubr.msk.f32.mxu1 %vm1079_vm8, %v1272_v20 }
 0x628   : > { %6506 = vmatmul.mubr.msk.f32.vlgmr.msra.gmra.mrb[8].mxu0 %vm1079_vm8, %v1476_v34 }
 0x62b   : > { %6492 = vmatmul.mubr.msk.f32.vlgmr.msra.gmra.mrb[8].mxu1 %vm1079_vm8, %v1274_v32 }
 0x6f6   : > { %v9155_v35 = vpop.f32.mrb[6].mxu1 }
 0x6f7   : > { %v9157_v36 = vpop.f32.mrb[7].mxu1 }
 0x6fb   : > { %v6507_v38 = vpop.f32.mrb[8].mxu0 }
 0x6fc   : > { %v1555_v40 = vpop.f32.mrb[9].mxu0  ;;  %v1561_v53 = vadd.f32 %v6507_v38, %v9118_v58 }
 0x6fd   : > { %v1556_v51 = vadd.f32 %v1555_v40, %v9121_v59 }
 0x6fe   : > { %v6493_v41 = vpop.f32.mrb[8].mxu1  ;;  %v1567_v61 = vsel %vm1167_vm10, %v1561_v53, -inf }
 0x6ff   : > { %v1359_v42 = vadd.f32 %v6493_v41, %v9118_v58  ;;  %v1353_v44 = vpop.f32.mrb[9].mxu1  ;;  %v1564_v60 = vsel %vm1167_vm10, %v1556_v51, -inf }
 0x700   : > { %v1354_v45 = vadd.f32 %v1353_v44, %v9121_v59 }
 0x701   : > { %v1365_v49 = vsel %vm1167_vm10, %v1359_v42, -inf }
 0x702   : > { %1366 = vmax.xlane.f32.xlu1 %v1365_v49  ;;  %v1362_v52 = vsel %vm1167_vm10, %v1354_v45, -inf }
 0x703   : > { %1363 = vmax.xlane.f32.xlu0 %v1362_v52 }
 0x707   : > { %1565 = vmax.xlane.f32.xlu0 %v1564_v60 }
 0x70b   : > { %1568 = vmax.xlane.f32.xlu0 %v1567_v61 }
 0x78f   : > { %v1367_v0 = vpop.xlane.xlu1 %1366 }
 0x790   : > { %v1364_v62 = vpop.xlane.xlu0 %1363  ;;  %v1369_v3 = vsub.f32 %v1359_v42, %v1367_v0 }
 0x791   : > { %v1368_v63 = vsub.f32 %v1354_v45, %v1364_v62 }
 0x792   : > { %v1372_v11 = vmul.f32 1.442695, %v1369_v3 }
 0x793   : > { %v1370_v4 = vmul.f32 1.442695, %v1368_v63 }
 0x794   : > { %v1566_v1 = vpop.xlane.xlu0 %1565 }
 0x795   : > { %v1570_v2 = vsub.f32 %v1556_v51, %v1566_v1 }
 0x797   : > { %v1572_v5 = vmul.f32 1.442695, %v1570_v2 }
 0x798   : > { %v1569_v6 = vpop.xlane.xlu0 %1568 }
 0x799   : > { %7692 = vpow2.f32 %v1572_v5  ;;  %v1571_v9 = vsub.f32 %v1561_v53, %v1569_v6  ;;  %v9219_v5 = vld [vmem:[%s9005_s0 + $0x10] sm:$0xff] }
 0x79a   : > { %7694 = vpow2.f32 %v1370_v4  ;;  %v9216_v4 = vld [vmem:[%s9005_s0 + $0x18] sm:$0xff] }
 0x79b   : > { %v1574_v12 = vmul.f32 1.442695, %v1571_v9 }
 0x79d   : > { %7696 = vpow2.f32 %v1574_v12 }
 0x79e   : > { %7698 = vpow2.f32 %v1372_v11 }
 0x7a3   : > { %v7693_v14 = vpop.eup %7692 }
 0x7a4   : > { %v1576_v16 = vsel %vm1167_vm10, %v7693_v14, 0.0  ;;  %v7695_v17 = vpop.eup %7694 }
 0x7a5   : > { %1577 = vadd.xlane.f32.xlu0 %v1576_v16  ;;  %v1374_v20 = vsel %vm1167_vm10, %v7695_v17, 0.0 }
 0x7a7   : > { %v7697_v19 = vpop.eup %7696 }
 0x7a8   : > { %v1579_v21 = vsel %vm1167_vm10, %v7697_v19, 0.0  ;;  %v7699_v22 = vpop.eup %7698 }
 0x7a9   : > { %1375 = vadd.xlane.f32.xlu0 %v1374_v20  ;;  %1580 = vadd.xlane.f32.xlu1 %v1579_v21  ;;  %v1377_v25 = vsel %vm1167_vm10, %v7699_v22, 0.0 }
 0x7ad   : > { %1378 = vadd.xlane.f32.xlu1 %v1377_v25 }
 0x7be   : > { %7504 = vrot.lane.b32.xlu1 %v9097_v47, %s8430_s15 }
 0x7bf   : > { %7499 = vrot.lane.b32.xlu0 %v9097_v47, %s8429_s24 }
 0x7c2   : > { %7509 = vrot.lane.b32.xlu1 %v9095_v46, %s8431_s9 }
 0x7c3   : > { %1675 = vrot.lane.b32.xlu0 %v9087_v39, %s8431_s9 }
 0x7c6   : > { %1673 = vrot.lane.b32.xlu1 %v9083_v37, %s8431_s9 }
 0x832   : > { %v1578_v26 = vpop.xlane.xlu0 %1577 }
 0x836   : > { %v1581_v13 = vpop.xlane.xlu1 %1580  ;;  %v1376_v18 = vpop.xlane.xlu0 %1375 }
 0x837   : > { %7700 = vrcp.f32 %v1376_v18 }
 0x838   : > { %7702 = vrcp.f32 %v1578_v26 }
 0x83a   : > { %v1379_v27 = vpop.xlane.xlu1 %1378  ;;  %v7500_v28 = vpop.permute.xlu0 %7499 }
 0x83b   : > { %7704 = vrcp.f32 %v1379_v27  ;;  %v7502_v29 = vunpack.i.h.bf16 %v7500_v28  ;;  %v7501_v30 = vunpack.i.l.bf16 %v7500_v28 }
 0x83c   : > { %7706 = vrcp.f32 %v1581_v13 }
 0x83d   : > { %v6891_v31 = vpack.c.bf16 %v7502_v29, %v7501_v30 }
 0x83e   : > { %v7505_v24 = vpop.permute.xlu1 %7504  ;;  %v1676_v60 = vpop.permute.xlu0 %1675 }
 0x83f   : > { %v7507_v46 = vunpack.i.h.bf16 %v7505_v24  ;;  %v7506_v32 = vunpack.i.l.bf16 %v7505_v24  ;;  %6892 = vmatprep.subr.bf16.mxu1 %v6891_v31 }
 0x840   : > { %6894 = vmatpush3.bf16.msra.mxu1 %v6891_v31 }
 0x841   : > { %v6901_v39 = vpack.c.bf16 %v7507_v46, %v7506_v32  ;;  %v7701_v33 = vpop.eup %7700 }
 0x842   : > { %v7510_v37 = vpop.permute.xlu1 %7509  ;;  %v1381_v34 = vmul.f32 %v7701_v33, %v7695_v17  ;;  %v7703_v38 = vpop.eup %7702 }
 0x843   : > { %6902 = vmatprep.subr.bf16.mxu1 %v6901_v39  ;;  %v7512_v40 = vunpack.i.h.bf16 %v7510_v37  ;;  %v7511_v41 = vunpack.i.l.bf16 %v7510_v37  ;;  %v1583_v49 = vmul.f32 %v7703_v38, %v7693_v14 }
 0x844   : > { %6498 = vmatprep.mubr.msk.f32.mxu1 %vm1167_vm10, %v1381_v34 }
 0x845   : > { %v7705_v42 = vpop.eup %7704  ;;  %v6905_v51 = vpack.c.bf16 %v7512_v40, %v7511_v41 }
 0x846   : > { %v1383_v44 = vmul.f32 %v7705_v42, %v7699_v22  ;;  %v7707_v45 = vpop.eup %7706  ;;  %v1674_v53 = vpop.permute.xlu1 %1673 }
 0x847   : > { %v1585_v52 = vmul.f32 %v7707_v45, %v7697_v19 }
 0x848   : > { %6499 = vmatmul.mubr.msk.f32.vlgmr.msra.gmra.mrb[10].mxu1 %vm1167_vm10, %v1383_v44 }
 0x849   : > { %6904 = vmatpush3.bf16.msra.mxu1 %v6901_v39  ;;  %6512 = vmatprep.mubr.msk.f32.mxu1 %vm1167_vm10, %v1583_v49 }
 0x84a   : > { %6907 = vmatprep.subr.msk.bf16.mxu1 %vm9091_vm9, %v6905_v51 }
 0x84c   : > { %6513 = vmatmul.mubr.msk.f32.vlgmr.msra.gmra.mrb[12].mxu1 %vm1167_vm10, %v1585_v52 }
 0x84d   : > { %6519 = vmatprep.mubr.msk.f32.mxu1 %vm1079_vm8, %v1674_v53 }
 0x852   : > { %6910 = vmatpush3.bf16.xpose.msk.msra.mxu1 %vm9091_vm9, %v6905_v51 }
 0x853   : > { %6917 = vmatprep.subr.msk.bf16.mxu1 %vm9091_vm9, %v9109_v54 }
 0x859   : > { %6520 = vmatmul.mubr.msk.f32.vlgmr.msra.gmra.mrb[14].mxu1 %vm1079_vm8, %v1676_v60 }
 0x85a   : > { %6920 = vmatpush3.bf16.xpose.msk.msra.mxu1 %vm9091_vm9, %v9109_v54  ;;  %6533 = vmatprep.mubr.msk.f32.mxu1 %vm1079_vm8, %v9101_v48 }
 0x85b   : > { %6922 = vmatprep.subr.bf16.mxu1 %v9111_v55 }
 0x861   : > { %6534 = vmatmul.mubr.msk.f32.vlgmr.msra.gmra.mrb[16].mxu1 %vm1079_vm8, %v9107_v50 }
 0x862   : > { %6924 = vmatpush3.bf16.msra.mxu1 %v9111_v55 }
 0x91b   : > { %v9203_v61 = vpop.f32.mrb[10].mxu1 }
 0x91c   : > { %v9205_v62 = vpop.f32.mrb[11].mxu1 }
 0x91d   : > { %v7548_v63 = vpack.i.bf16 %v9203_v61, %v9205_v62 }
 0x91f   : > { %v9209_v0 = vpop.f32.mrb[12].mxu1 }
 0x920   : > { %v9211_v54 = vpop.f32.mrb[13].mxu1 }
 0x921   : > { %v7553_v1 = vpack.i.bf16 %v9209_v0, %v9211_v54 }
 0x92c   : > { %v6521_v2 = vpop.f32.mrb[14].mxu1 }
 0x92d   : > { %v1755_v3 = vpop.f32.mrb[15].mxu1  ;;  %v1761_v24 = vadd.f32 %v6521_v2, %v9118_v58 }
 0x92e   : > { %v1756_v16 = vadd.f32 %v1755_v3, %v9121_v59 }
 0x92f   : > { %v1767_v46 = vsel %vm1167_vm10, %v1761_v24, -inf }
 0x930   : > { %v1764_v17 = vsel %vm1167_vm10, %v1756_v16, -inf }
 0x934   : > { %v6535_v55 = vpop.f32.mrb[16].mxu1 }
 0x935   : > { %v1992_v6 = vadd.f32 %v6535_v55, %v9216_v4  ;;  %v1986_v9 = vpop.f32.mrb[17].mxu1 }
 0x936   : > { %v1987_v11 = vadd.f32 %v9219_v5, %v1986_v9 }
 0x937   : > { %v1998_v12 = vsel %vm1167_vm10, %v1992_v6, -inf }
 0x938   : > { %1999 = vmax.xlane.f32.xlu0 %v1998_v12  ;;  %v1995_v14 = vsel %vm1167_vm10, %v1987_v11, -inf }
 0x939   : > { %1996 = vmax.xlane.f32.xlu1 %v1995_v14 }
 0x94a   : > { %7514 = vrot.lane.b32.xlu1 %v9113_v56, %s8429_s24 }
 0x94e   : > { %2100 = vrot.lane.b32.xlu1 %v9107_v50, %s8429_s24 }
 0x972   : > { %1765 = vmax.xlane.f32.xlu1 %v1764_v17 }
 0x9c5   : > { %v2000_v19 = vpop.xlane.xlu0 %1999 }
 0x9c6   : > { %v2002_v20 = vsub.f32 %v1992_v6, %v2000_v19  ;;  %v1997_v21 = vpop.xlane.xlu1 %1996 }
 0x9c7   : > { %v2001_v22 = vsub.f32 %v1987_v11, %v1997_v21 }
 0x9c8   : > { %v2005_v25 = vmul.f32 1.442695, %v2002_v20 }
 0x9c9   : > { %v2003_v26 = vmul.f32 1.442695, %v2001_v22 }
 0x9ca   : > { %v7515_v13 = vpop.permute.xlu1 %7514 }
 0x9cb   : > { %7708 = vpow2.f32 %v2003_v26  ;;  %v7517_v18 = vunpack.i.h.bf16 %v7515_v13  ;;  %v7516_v27 = vunpack.i.l.bf16 %v7515_v13 }
 0x9cc   : > { %7710 = vpow2.f32 %v2005_v25 }
 0x9cd   : > { %v6925_v28 = vpack.c.bf16 %v7517_v18, %v7516_v27 }
 0x9ce   : > { %v2101_v58 = vpop.permute.xlu1 %2100 }
 0x9cf   : > { %6927 = vmatprep.subr.msk.bf16.mxu1 %vm9091_vm9, %v6925_v28 }
 0x9d5   : > { %v7709_v29 = vpop.eup %7708 }
 0x9d6   : > { %v2007_v59 = vsel %vm1167_vm10, %v7709_v29, 0.0  ;;  %v7711_v30 = vpop.eup %7710 }
 0x9d7   : > { %2008 = vadd.xlane.f32.xlu0 %v2007_v59  ;;  %v2010_v31 = vsel %vm1167_vm10, %v7711_v30, 0.0 }
 0x9db   : > { %2011 = vadd.xlane.f32.xlu0 %v2010_v31 }
 0x9f1   : > { %2098 = vrot.lane.b32.xlu0 %v9101_v48, %s8429_s24 }
 0x9ff   : > { %v1766_v42 = vpop.xlane.xlu1 %1765 }
 0xa00   : > { %v1770_v45 = vsub.f32 %v1756_v16, %v1766_v42 }
 0xa02   : > { %v1772_v51 = vmul.f32 1.442695, %v1770_v45 }
 0xa10   : > { %1768 = vmax.xlane.f32.xlu0 %v1767_v46 }
 0xa64   : > { %v2009_v32 = vpop.xlane.xlu0 %2008 }
 0xa65   : > { %7712 = vrcp.f32 %v2009_v32 }
 0xa68   : > { %v2012_v39 = vpop.xlane.xlu0 %2011 }
 0xa69   : > { %7714 = vrcp.f32 %v2012_v39 }
 0xa6c   : > { %v2099_v40 = vpop.permute.xlu0 %2098 }
 0xa6f   : > { %v7713_v33 = vpop.eup %7712 }
 0xa70   : > { %v2014_v37 = vmul.f32 %v7713_v33, %v7709_v29 }
 0xa72   : > { %6540 = vmatprep.mubr.msk.f32.mxu1 %vm1167_vm10, %v2014_v37 }
 0xa73   : > { %v7715_v34 = vpop.eup %7714 }
 0xa74   : > { %v2016_v38 = vmul.f32 %v7715_v34, %v7711_v30 }
 0xa76   : > { %6541 = vmatmul.mubr.msk.f32.vlgmr.msra.gmra.mrb[18].mxu1 %vm1167_vm10, %v2016_v38 }
 0xa77   : > { %6930 = vmatpush3.bf16.xpose.msk.msra.mxu1 %vm9091_vm9, %v6925_v28  ;;  %6547 = vmatprep.mubr.msk.f32.mxu1 %vm1079_vm8, %v2099_v40 }
 0xa7e   : > { %6548 = vmatmul.mubr.msk.f32.vlgmr.msra.gmra.mrb[20].mxu1 %vm1079_vm8, %v2101_v58 }
 0xa9d   : > { %v1769_v41 = vpop.xlane.xlu0 %1768 }
 0xa9e   : > { %v1771_v44 = vsub.f32 %v1761_v24, %v1769_v41 }
 0xaa0   : > { %v1774_v49 = vmul.f32 1.442695, %v1771_v44 }
 0xaa2   : > { %7716 = vpow2.f32 %v1774_v49 }
 0xaa3   : > { %7718 = vpow2.f32 %v1772_v51 }
 0xaac   : > { %v7717_v9 = vpop.eup %7716 }
 0xaad   : > { %v7719_v12 = vpop.eup %7718  ;;  %v1779_v14 = vsel %vm1167_vm10, %v7717_v9, 0.0 }
 0xaae   : > { %v1776_v16 = vsel %vm1167_vm10, %v7719_v12, 0.0 }
 0xb49   : > { %v9245_v52 = vpop.f32.mrb[18].mxu1 }
 0xb4a   : > { %v9247_v53 = vpop.f32.mrb[19].mxu1 }
 0xb51   : > { %v6549_v60 = vpop.f32.mrb[20].mxu1 }
 0xb52   : > { %v2186_v2 = vadd.f32 %v6549_v60, %v9216_v4  ;;  %v2180_v3 = vpop.f32.mrb[21].mxu1 }
 0xb53   : > { %v2181_v55 = vadd.f32 %v9219_v5, %v2180_v3 }
 0xb54   : > { %v2192_v6 = vsel %vm1167_vm10, %v2186_v2, -inf }
 0xb55   : > { %2193 = vmax.xlane.f32.xlu1 %v2192_v6  ;;  %v2189_v11 = vsel %vm1167_vm10, %v2181_v55, -inf }
 0xb56   : > { %2190 = vmax.xlane.f32.xlu0 %v2189_v11 }
 0xb59   : > { %1780 = vadd.xlane.f32.xlu1 %v1779_v14 }
 0xb5a   : > { %1777 = vadd.xlane.f32.xlu0 %v1776_v16 }
 0xbe2   : > { %v2194_v17 = vpop.xlane.xlu1 %2193 }
 0xbe3   : > { %v2196_v19 = vsub.f32 %v2186_v2, %v2194_v17  ;;  %v2191_v20 = vpop.xlane.xlu0 %2190 }
 0xbe4   : > { %v2195_v21 = vsub.f32 %v2181_v55, %v2191_v20 }
 0xbe5   : > { %v2199_v22 = vmul.f32 1.442695, %v2196_v19 }
 0xbe6   : > { %v2197_v25 = vmul.f32 1.442695, %v2195_v21  ;;  %v1781_v30 = vpop.xlane.xlu1 %1780 }
 0xbe7   : > { %7720 = vpow2.f32 %v2199_v22  ;;  %v1778_v26 = vpop.xlane.xlu0 %1777 }
 0xbe8   : > { %7722 = vpow2.f32 %v2197_v25 }
 0xbe9   : > { %7724 = vrcp.f32 %v1778_v26 }
 0xbea   : > { %7726 = vrcp.f32 %v1781_v30 }
 0xbf1   : > { %v7721_v13 = vpop.eup %7720 }
 0xbf2   : > { %v7723_v18 = vpop.eup %7722  ;;  %v2204_v27 = vsel %vm1167_vm10, %v7721_v13, 0.0 }
 0xbf3   : > { %2205 = vadd.xlane.f32.xlu1 %v2204_v27  ;;  %v2201_v28 = vsel %vm1167_vm10, %v7723_v18, 0.0  ;;  %v7725_v29 = vpop.eup %7724 }
 0xbf4   : > { %2202 = vadd.xlane.f32.xlu0 %v2201_v28  ;;  %v1783_v59 = vmul.f32 %v7725_v29, %v7719_v12  ;;  %v7727_v40 = vpop.eup %7726 }
 0xbf5   : > { %v1785_v45 = vmul.f32 %v7727_v40, %v7717_v9 }
 0xbf6   : > { %6526 = vmatprep.mubr.msk.f32.mxu0 %vm1167_vm10, %v1783_v59 }
 0xc04   : > { %7524 = vrot.lane.b32.xlu1 %v9115_v57, %s8429_s24 }
 0xc08   : > { %7529 = vrot.lane.b32.xlu1 %v9113_v56, %s8430_s15 }
 0xc0a   : > { %7519 = vrot.lane.b32.xlu0 %v9097_v47, %s8431_s9 }
 0xc0c   : > { %2300 = vrot.lane.b32.xlu1 %v9101_v48, %s8430_s15 }
 0xc0e   : > { %2302 = vrot.lane.b32.xlu0 %v9107_v50, %s8430_s15 }
 0xc80   : > { %v2206_v31 = vpop.xlane.xlu1 %2205 }
 0xc81   : > { %v2203_v24 = vpop.xlane.xlu0 %2202 }
 0xc82   : > { %7728 = vrcp.f32 %v2203_v24 }
 0xc83   : > { %7730 = vrcp.f32 %v2206_v31 }
 0xc84   : > { %v7525_v46 = vpop.permute.xlu1 %7524 }
 0xc85   : > { %v7520_v32 = vpop.permute.xlu0 %7519  ;;  %v7527_v39 = vunpack.i.h.bf16 %v7525_v46  ;;  %v7526_v33 = vunpack.i.l.bf16 %v7525_v46 }
 0xc86   : > { %v7522_v37 = vunpack.i.h.bf16 %v7520_v32  ;;  %v7521_v34 = vunpack.i.l.bf16 %v7520_v32 }
 0xc87   : > { %v6931_v42 = vpack.c.bf16 %v7527_v39, %v7526_v33 }
 0xc88   : > { %v7530_v38 = vpop.permute.xlu1 %7529  ;;  %v6911_v47 = vpack.c.bf16 %v7522_v37, %v7521_v34 }
 0xc89   : > { %v7532_v58 = vunpack.i.h.bf16 %v7530_v38  ;;  %v7531_v41 = vunpack.i.l.bf16 %v7530_v38  ;;  %v2303_v55 = vpop.permute.xlu0 %2302 }
 0xc8a   : > { %6912 = vmatprep.subr.bf16.mxu0 %v6911_v47 }
 0xc8b   : > { %6914 = vmatpush3.bf16.msra.mxu0 %v6911_v47  ;;  %v6935_v60 = vpack.c.bf16 %v7532_v58, %v7531_v41 }
 0xc8c   : > { %v7729_v44 = vpop.eup %7728  ;;  %6932 = vmatprep.subr.bf16.mxu0 %v6931_v42  ;;  %v2301_v3 = vpop.permute.xlu1 %2300 }
 0xc8d   : > { %v7731_v49 = vpop.eup %7730  ;;  %v2208_v51 = vmul.f32 %v7729_v44, %v7723_v18 }
 0xc8e   : > { %6527 = vmatmul.mubr.msk.f32.vlgmr.msra.gmra.mrb[10].mxu0 %vm1167_vm10, %v1785_v45  ;;  %v2210_v2 = vmul.f32 %v7731_v49, %v7721_v13 }
 0xc8f   : > { %6934 = vmatpush3.bf16.msra.mxu0 %v6931_v42  ;;  %6554 = vmatprep.mubr.msk.f32.mxu0 %vm1167_vm10, %v2208_v51 }
 0xc90   : > { %6937 = vmatprep.subr.msk.bf16.mxu0 %vm9091_vm9, %v6935_v60 }
 0xc92   : > { %6555 = vmatmul.mubr.msk.f32.vlgmr.msra.gmra.mrb[12].mxu0 %vm1167_vm10, %v2210_v2 }
 0xc93   : > { %6561 = vmatprep.mubr.msk.f32.mxu0 %vm1079_vm8, %v2301_v3 }
 0xc98   : > { %6940 = vmatpush3.bf16.xpose.msk.msra.mxu0 %vm9091_vm9, %v6935_v60 }
 0xc9f   : > { %6562 = vmatmul.mubr.msk.f32.vlgmr.msra.gmra.mrb[14].mxu0 %vm1079_vm8, %v2303_v55 }
 0xd61   : > { %v9277_v6 = vpop.f32.mrb[10].mxu0 }
 0xd62   : > { %v9279_v9 = vpop.f32.mrb[11].mxu0 }
 0xd63   : > { %v7558_v11 = vpack.i.bf16 %v9277_v6, %v9279_v9 }
 0xd65   : > { %v9283_v12 = vpop.f32.mrb[12].mxu0 }
 0xd66   : > { %v9285_v14 = vpop.f32.mrb[13].mxu0 }
 0xd67   : > { %v7563_v16 = vpack.i.bf16 %v9283_v12, %v9285_v14  ;;  %v2730_v14 = vld [vmem:[#allocation10] sm:$0xff] }
 0xd72   : > { %v6563_v17 = vpop.f32.mrb[14].mxu0 }
 0xd73   : > { %v2388_v19 = vadd.f32 %v6563_v17, %v9216_v4  ;;  %v2382_v20 = vpop.f32.mrb[15].mxu0 }
 0xd74   : > { %v2383_v21 = vadd.f32 %v9219_v5, %v2382_v20 }
 0xd75   : > { %v2394_v22 = vsel %vm1167_vm10, %v2388_v19, -inf }
 0xd76   : > { %2395 = vmax.xlane.f32.xlu0 %v2394_v22  ;;  %v2391_v25 = vsel %vm1167_vm10, %v2383_v21, -inf }
 0xd77   : > { %2392 = vmax.xlane.f32.xlu1 %v2391_v25 }
 0xd88   : > { %7534 = vrot.lane.b32.xlu1 %v9115_v57, %s8430_s15 }
 0xd8c   : > { %2500 = vrot.lane.b32.xlu1 %v9101_v48, %s8431_s9 }
 0xd90   : > { %2502 = vrot.lane.b32.xlu1 %v9107_v50, %s8431_s9 }
 0xe03   : > { %v2396_v26 = vpop.xlane.xlu0 %2395 }
 0xe04   : > { %v2398_v13 = vsub.f32 %v2388_v19, %v2396_v26  ;;  %v2393_v18 = vpop.xlane.xlu1 %2392 }
 0xe05   : > { %v2397_v27 = vsub.f32 %v2383_v21, %v2393_v18 }
 0xe06   : > { %v2401_v28 = vmul.f32 1.442695, %v2398_v13 }
 0xe07   : > { %v2399_v29 = vmul.f32 1.442695, %v2397_v27 }
 0xe08   : > { %7732 = vpow2.f32 %v2401_v28  ;;  %v7535_v59 = vpop.permute.xlu1 %7534 }
 0xe09   : > { %v7537_v30 = vunpack.i.h.bf16 %v7535_v59  ;;  %v7536_v31 = vunpack.i.l.bf16 %v7535_v59  ;;  %7734 = vpow2.f32 %v2399_v29 }
 0xe0b   : > { %v6941_v24 = vpack.c.bf16 %v7537_v30, %v7536_v31 }
 0xe0c   : > { %v2501_v44 = vpop.permute.xlu1 %2500 }
 0xe0d   : > { %6942 = vmatprep.subr.bf16.mxu1 %v6941_v24 }
 0xe0e   : > { %6944 = vmatpush3.bf16.msra.mxu1 %v6941_v24  ;;  %v2733_v24 = vld [vmem:[#allocation10 + $0x18] sm:$0xff] }
 0xe12   : > { %v7733_v46 = vpop.eup %7732 }
 0xe13   : > { %v2406_v48 = vsel %vm1167_vm10, %v7733_v46, 0.0  ;;  %v7735_v32 = vpop.eup %7734 }
 0xe14   : > { %2407 = vadd.xlane.f32.xlu0 %v2406_v48  ;;  %v2403_v50 = vsel %vm1167_vm10, %v7735_v32, 0.0 }
 0xe18   : > { %2404 = vadd.xlane.f32.xlu0 %v2403_v50 }
 0xe2e   : > { %7539 = vrot.lane.b32.xlu0 %v9113_v56, %s8431_s9  ;;  %v2503_v56 = vpop.permute.xlu1 %2502 }
 0xea1   : > { %v2408_v39 = vpop.xlane.xlu0 %2407 }
 0xea2   : > { %7736 = vrcp.f32 %v2408_v39 }
 0xea5   : > { %v2405_v33 = vpop.xlane.xlu0 %2404 }
 0xea6   : > { %7738 = vrcp.f32 %v2405_v33  ;;  %v2734_v33 = vld [vmem:[#allocation10 + $0x20] sm:$0xff] }
 0xea9   : > { %v7540_v37 = vpop.permute.xlu0 %7539 }
 0xeaa   : > { %v7542_v34 = vunpack.i.h.bf16 %v7540_v37  ;;  %v7541_v38 = vunpack.i.l.bf16 %v7540_v37  ;;  %v2735_v37 = vld [vmem:[#allocation10 + $0x28] sm:$0xff] }
 0xeac   : > { %v6945_v47 = vpack.c.bf16 %v7542_v34, %v7541_v38  ;;  %v7737_v40 = vpop.eup %7736  ;;  %v6963_v34 = vpack.c.bf16 %v2735_v37, %v2734_v33  ;;  %v2736_v38 = vld [vmem:[#allocation10 + $0x30] sm:$0xff] }
 0xead   : > { %v2412_v42 = vmul.f32 %v7737_v40, %v7733_v46  ;;  %v2934_v37 = vld [vmem:[#allocation17 + $0x28] sm:$0xff] }
 0xeae   : > { %6947 = vmatprep.subr.msk.bf16.mxu1 %vm9091_vm9, %v6945_v47 }
 0xeb0   : > { %v7739_v58 = vpop.eup %7738 }
 0xeb1   : > { %v2410_v41 = vmul.f32 %v7739_v58, %v7735_v32  ;;  %v2738_v58 = vld [vmem:[#allocation10 + $0x40] sm:$0xff] }
 0xeb3   : > { %6568 = vmatprep.mubr.msk.f32.mxu1 %vm1167_vm10, %v2410_v41  ;;  %v2739_v41 = vld [vmem:[#allocation10 + $0x48] sm:$0xff] }
 0xeb4   : > { %6569 = vmatmul.mubr.msk.f32.vlgmr.msra.gmra.mrb[22].mxu1 %vm1167_vm10, %v2412_v42  ;;  %v6971_v42 = vpack.c.bf16 %v2739_v41, %v2738_v58  ;;  %v2938_v58 = vld [vmem:[#allocation17 + $0x48] sm:$0xff]  ;;  %v2940_v41 = vld [vmem:[#allocation17 + $0x58] sm:$0xff] }
 0xeb5   : > { %6950 = vmatpush3.bf16.xpose.msk.msra.mxu1 %vm9091_vm9, %v6945_v47  ;;  %6575 = vmatprep.mubr.msk.f32.mxu1 %vm1079_vm8, %v2501_v44  ;;  %v2737_v47 = vld [vmem:[#allocation10 + $0x38] sm:$0xff]  ;;  %v2740_v44 = vld [vmem:[#allocation10 + $0x50] sm:$0xff] }
 0xeb6   : > { %v6967_v40 = vpack.c.bf16 %v2737_v47, %v2736_v38  ;;  %v2933_v38 = vld [vmem:[#allocation17 + $0x20] sm:$0xff]  ;;  %v2935_v47 = vld [vmem:[#allocation17 + $0x30] sm:$0xff] }
 0xebc   : > { %6576 = vmatmul.mubr.msk.f32.vlgmr.msra.gmra.mrb[24].mxu1 %vm1079_vm8, %v2503_v56  ;;  %v2741_v56 = vld [vmem:[#allocation10 + $0x58] sm:$0xff] }
 0xebd   : > { %3037 = vmatprep.mubr.f32.mxu1 %v8428_v15 }
 0xf87   : > { %v6570_v45 = vpop.f32.mrb[22].mxu1 }
 0xf88   : > { %v2491_v49 = vpop.f32.mrb[23].mxu1 }
 0xf89   : > { %v7568_v51 = vpack.i.bf16 %v6570_v45, %v2491_v49  ;;  %v6975_v45 = vpack.c.bf16 %v2741_v56, %v2740_v44  ;;  %v2742_v49 = vld [vmem:[#allocation10 + $0x60] sm:$0xff]  ;;  %v2937_v44 = vld [vmem:[#allocation17 + $0x40] sm:$0xff]  ;;  %v2939_v56 = vld [vmem:[#allocation17 + $0x50] sm:$0xff] }
 0xf8f   : > { %v6577_v60 = vpop.f32.mrb[24].mxu1 }
 0xf90   : > { %v2588_v2 = vadd.f32 %v6577_v60, %v9216_v4  ;;  %v2582_v3 = vpop.f32.mrb[25].mxu1 }
 0xf91   : > { %v2583_v55 = vadd.f32 %v9219_v5, %v2582_v3  ;;  %v2745_v3 = vld [vmem:[#allocation10 + $0x78] sm:$0xff] }
 0xf92   : > { %v2594_v17 = vsel %vm1167_vm10, %v2588_v2, -inf }
 0xf93   : > { %2595 = vmax.xlane.f32.xlu0 %v2594_v17  ;;  %v2591_v19 = vsel %vm1167_vm10, %v2583_v55, -inf }
 0xf94   : > { %2592 = vmax.xlane.f32.xlu1 %v2591_v19 }
 0xfa5   : > { %7544 = vrot.lane.b32.xlu1 %v9115_v57, %s8431_s9 }
 0xfa9   : > { %7554 = vrot.lane.b32.xlu1 %v7553_v1, %s8430_s15 }
 0xfad   : > { %7559 = vrot.lane.b32.xlu1 %v7558_v11, %s8429_s24 }
 0xfb1   : > { %7564 = vrot.lane.b32.xlu1 %v7563_v16, %s8431_s9  ;;  %v2731_v16 = vld [vmem:[#allocation10 + $0x8] sm:$0xff] }
 0xfb2   : > { %v6955_v26 = vpack.c.bf16 %v2731_v16, %v2730_v14 }
0x1020   : > { %v2596_v4 = vpop.xlane.xlu0 %2595 }
0x1021   : > { %v2598_v5 = vsub.f32 %v2588_v2, %v2596_v4  ;;  %v2593_v20 = vpop.xlane.xlu1 %2592  ;;  %v2744_v2 = vld [vmem:[#allocation10 + $0x70] sm:$0xff] }
0x1022   : > { %v2597_v21 = vsub.f32 %v2583_v55, %v2593_v20  ;;  %v6983_v17 = vpack.c.bf16 %v2745_v3, %v2744_v2  ;;  %v2941_v2 = vld [vmem:[#allocation17 + $0x60] sm:$0xff]  ;;  %v2943_v3 = vld [vmem:[#allocation17 + $0x70] sm:$0xff] }
0x1023   : > { %v2601_v57 = vmul.f32 1.442695, %v2598_v5 }
0x1024   : > { %v2599_v22 = vmul.f32 1.442695, %v2597_v21 }
0x1025   : > { %v7545_v25 = vpop.permute.xlu1 %7544 }
0x1026   : > { %7740 = vpow2.f32 %v2599_v22  ;;  %v7547_v0 = vunpack.i.h.bf16 %v7545_v25  ;;  %v7546_v54 = vunpack.i.l.bf16 %v7545_v25 }
0x1027   : > { %7742 = vpow2.f32 %v2601_v57 }
0x1028   : > { %v6951_v1 = vpack.c.bf16 %v7547_v0, %v7546_v54 }
0x1029   : > { %v7555_v27 = vpop.permute.xlu1 %7554 }
0x102a   : > { %6952 = vmatprep.subr.bf16.mxu0 %v6951_v1  ;;  %v7556_v61 = vunpack.i.l.bf16 %v7555_v27  ;;  %v7557_v4 = vunpack.i.h.bf16 %v7555_v27 }
0x102b   : > { %6954 = vmatpush3.bf16.msra.mxu0 %v6951_v1 }
0x102c   : > { %6956 = vmatprep.subr.bf16.mxu0 %v6955_v26 }
0x102d   : > { %v7560_v62 = vpop.permute.xlu1 %7559 }
0x102e   : > { %v7561_v32 = vunpack.i.l.bf16 %v7560_v62  ;;  %v7562_v20 = vunpack.i.h.bf16 %v7560_v62 }
0x1030   : > { %v7741_v6 = vpop.eup %7740 }
0x1031   : > { %v2603_v9 = vsel %vm1167_vm10, %v7741_v6, 0.0  ;;  %v7743_v11 = vpop.eup %7742 }
0x1032   : > { %2604 = vadd.xlane.f32.xlu0 %v2603_v9  ;;  %v2606_v12 = vsel %vm1167_vm10, %v7743_v11, 0.0 }
0x1036   : > { %2607 = vadd.xlane.f32.xlu0 %v2606_v12 }
0x104c   : > { %7549 = vrot.lane.b32.xlu0 %v7548_v63, %s8431_s9  ;;  %v2732_v63 = vld [vmem:[#allocation10 + $0x10] sm:$0xff] }
0x104d   : > { %v6959_v39 = vpack.c.bf16 %v2733_v24, %v2732_v63 }
0x1050   : > { %7569 = vrot.lane.b32.xlu0 %v7568_v51, %s8430_s15  ;;  %v2743_v51 = vld [vmem:[#allocation10 + $0x68] sm:$0xff] }
0x1051   : > { %v6979_v60 = vpack.c.bf16 %v2743_v51, %v2742_v49  ;;  %v2942_v49 = vld [vmem:[#allocation17 + $0x68] sm:$0xff]  ;;  %v2944_v51 = vld [vmem:[#allocation17 + $0x78] sm:$0xff] }
0x10bf   : > { %v2605_v13 = vpop.xlane.xlu0 %2604 }
0x10c0   : > { %7744 = vrcp.f32 %v2605_v13 }
0x10c3   : > { %v2608_v18 = vpop.xlane.xlu0 %2607 }
0x10c4   : > { %7746 = vrcp.f32 %v2608_v18 }
0x10c7   : > { %v7550_v28 = vpop.permute.xlu0 %7549 }
0x10c8   : > { %v7551_v29 = vunpack.i.l.bf16 %v7550_v28  ;;  %v7552_v55 = vunpack.i.h.bf16 %v7550_v28 }
0x10ca   : > { %v7745_v59 = vpop.eup %7744  ;;  %v1897_v31 = vsel %vm1079_vm8, %v9157_v36, %v7551_v29  ;;  %v1898_v19 = vsel %vm1079_vm8, %v9155_v35, %v7552_v55  ;;  %v7001_v55 = vpack.c.bf16 %v2943_v3, %v2941_v2  ;;  %v3088_v2 = vld [vmem:[#allocation20 + $0x90] sm:$0xff]  ;;  %v3089_v3 = vld [vmem:[#allocation20 + $0x98] sm:$0xff] }
0x10cb   : > { %v2610_v30 = vmul.f32 %v7745_v59, %v7741_v6  ;;  %v1900_v48 = vsel %vm1899_vm11, %v1897_v31, %v7556_v61  ;;  %v1901_v5 = vsel %vm1899_vm11, %v1898_v19, %v7557_v4  ;;  %v7565_v6 = vpop.permute.xlu1 %7564  ;;  %v7570_v9 = vpop.permute.xlu0 %7569  ;;  %v2948_v19 = vld [vmem:[#allocation17 + $0x98] sm:$0xff] }
0x10cc   : > { %v1903_v36 = vsel %vm1902_vm12, %v1900_v48, %v7561_v32  ;;  %v1904_v21 = vsel %vm1902_vm12, %v1901_v5, %v7562_v20  ;;  %v7566_v12 = vunpack.i.l.bf16 %v7565_v6  ;;  %v7572_v14 = vunpack.i.h.bf16 %v7570_v9  ;;  %v2932_v48 = vld [vmem:[#allocation17 + $0x18] sm:$0xff]  ;;  %v2945_v5 = vld [vmem:[#allocation17 + $0x80] sm:$0xff]  ;;  %v2947_v20 = vld [vmem:[#allocation17 + $0x90] sm:$0xff] }
0x10cd   : > { %6582 = vmatprep.mubr.msk.f32.mxu0 %vm1167_vm10, %v2610_v30  ;;  %v7571_v16 = vunpack.i.l.bf16 %v7570_v9  ;;  %v2956_v9 = vld [vmem:[#allocation17 + $0xd8] sm:$0xff] }
0x10ce   : > { %v7747_v46 = vpop.eup %7746 }
0x10cf   : > { %v2612_v50 = vmul.f32 %v7747_v46, %v7743_v11  ;;  %v7567_v11 = vunpack.i.h.bf16 %v7565_v6  ;;  %v2930_v46 = vld [vmem:[#allocation17 + $0x8] sm:$0xff] }
0x10d0   : > { %v6987_v32 = vpack.c.bf16 %v2932_v48, %v2930_v46  ;;  %v2954_v6 = vld [vmem:[#allocation17 + $0xc8] sm:$0xff] }
0x10d1   : > { %6583 = vmatmul.mubr.msk.f32.vlgmr.msra.gmra.mrb[16].mxu0 %vm1167_vm10, %v2612_v50  ;;  %v2725_v27 = vsel %vm1079_vm8, %v9245_v52, %v7567_v11  ;;  %v2929_v50 = vld [vmem:[#allocation17] sm:$0xff] }
0x10d2   : > { %6958 = vmatpush3.bf16.msra.mxu0 %v6955_v26  ;;  %6617 = vmatprep.mubr.f32.mxu0 %v1903_v36  ;;  %v2727_v28 = vsel %vm1899_vm11, %v2725_v27, %v7572_v14  ;;  %v2936_v36 = vld [vmem:[#allocation17 + $0x38] sm:$0xff]  ;;  %v2953_v14 = vld [vmem:[#allocation17 + $0xc0] sm:$0xff] }
0x10d3   : > { %6960 = vmatprep.subr.bf16.mxu0 %v6959_v39  ;;  %6988 = vmatprep.subr.bf16.mxu1 %v6987_v32  ;;  %v2957_v27 = vld [vmem:[#allocation17 + $0xe0] sm:$0xff] }
0x10d6   : > { %6962 = vmatpush3.bf16.msra.mxu0 %v6959_v39  ;;  %v2931_v39 = vld [vmem:[#allocation17 + $0x10] sm:$0xff] }
0x10d7   : > { %6964 = vmatprep.subr.bf16.mxu0 %v6963_v34  ;;  %v6989_v33 = vpack.c.bf16 %v2931_v39, %v2929_v50 }
0x10d9   : > { %6990 = vmatpush1.bf16.msra.mxu1 %v6989_v33 }
0x10da   : > { %6966 = vmatpush3.bf16.msra.mxu0 %v6963_v34  ;;  %v6991_v34 = vpack.c.bf16 %v2936_v36, %v2934_v37 }
0x10db   : > { %6968 = vmatprep.subr.bf16.mxu0 %v6967_v40 }
0x10dc   : > { %6992 = vmatprep.subr.bf16.mxu1 %v6991_v34 }
0x10de   : > { %6970 = vmatpush3.bf16.msra.mxu0 %v6967_v40  ;;  %v6993_v40 = vpack.c.bf16 %v2935_v47, %v2933_v38 }
0x10df   : > { %6972 = vmatprep.subr.bf16.mxu0 %v6971_v42 }
0x10e0   : > { %6994 = vmatpush1.bf16.msra.mxu1 %v6993_v40  ;;  %v9382_v40 = vld [vmem:[#allocation14] ss:$0 sm:$0xff] }
0x10e2   : > { %6974 = vmatpush3.bf16.msra.mxu0 %v6971_v42  ;;  %v6995_v42 = vpack.c.bf16 %v2940_v41, %v2938_v58  ;;  %v9385_v41 = vld [vmem:[#allocation16] ss:$0 sm:$0xff] }
0x10e3   : > { %6976 = vmatprep.subr.bf16.mxu0 %v6975_v45 }
0x10e4   : > { %6996 = vmatprep.subr.bf16.mxu1 %v6995_v42 }
0x10e6   : > { %6978 = vmatpush3.bf16.msra.mxu0 %v6975_v45  ;;  %v6997_v45 = vpack.c.bf16 %v2939_v56, %v2937_v44  ;;  %v3086_v44 = vld [vmem:[#allocation20 + $0x80] sm:$0xff]  ;;  %v3087_v56 = vld [vmem:[#allocation20 + $0x88] sm:$0xff] }
0x10e7   : > { %6980 = vmatprep.subr.bf16.mxu0 %v6979_v60 }
0x10e8   : > { %6998 = vmatpush1.bf16.msra.mxu1 %v6997_v45  ;;  %v3070_v45 = vld [vmem:[#allocation20] sm:$0xff] }
0x10ea   : > { %6982 = vmatpush3.bf16.msra.mxu0 %v6979_v60  ;;  %v6999_v60 = vpack.c.bf16 %v2944_v51, %v2942_v49  ;;  %v7019_v51 = vpack.c.bf16 %v3087_v56, %v3086_v44 }
0x10eb   : > { %6984 = vmatprep.subr.bf16.mxu0 %v6983_v17 }
0x10ec   : > { %7000 = vmatprep.subr.bf16.mxu1 %v6999_v60  ;;  %v3071_v60 = vld [vmem:[#allocation20 + $0x8] sm:$0xff] }
0x10ed   : > { %7002 = vmatpush1.bf16.msra.mxu1 %v7001_v55 }
0x10ee   : > { %6986 = vmatpush3.bf16.msra.mxu0 %v6983_v17  ;;  %v2946_v17 = vld [vmem:[#allocation17 + $0x88] sm:$0xff] }
0x10ef   : > { %v7003_v4 = vpack.c.bf16 %v2948_v19, %v2946_v17  ;;  %v7021_v19 = vpack.c.bf16 %v3071_v60, %v3070_v45  ;;  %7020 = vmatprep.subr.bf16.mxu0 %v7019_v51  ;;  %v2963_v60 = vlaneseq }
0x10f1   : > { %6618 = vmatmul.mubr.f32.vlgmr.msra.gmra.mrb[18].mxu0 %v1904_v21  ;;  %v7005_v21 = vpack.c.bf16 %v2947_v20, %v2945_v5  ;;  %7004 = vmatprep.subr.bf16.mxu1 %v7003_v4  ;;  %v7023_v4 = vpack.c.bf16 %v3089_v3, %v3088_v2  ;;  %v3072_v5 = vld [vmem:[#allocation20 + $0x10] sm:$0xff]  ;;  %v3090_v20 = vld [vmem:[#allocation20 + $0xa0] sm:$0xff]  ;;  %v9396_v2 = vshrl.u32 %v2963_v60, 7 }
0x10f2   : > { %7022 = vmatpush3.bf16.msra.mxu0 %v7021_v19 }
0x10f3   : > { %7006 = vmatpush1.bf16.msra.mxu1 %v7005_v21  ;;  %v3091_v21 = vld [vmem:[#allocation20 + $0xa8] sm:$0xff]  ;;  %7024 = vmatprep.subr.bf16.mxu0 %v7023_v4  ;;  %v2965_v3 = vsub.s32 0, %v9396_v2 }
0x11a4   : > { %v6584_v57 = vpop.f32.mrb[16].mxu0 }
0x11a5   : > { %v2691_v22 = vpop.f32.mrb[17].mxu0 }
0x11a6   : > { %v7573_v25 = vpack.i.bf16 %v6584_v57, %v2691_v22  ;;  %v2950_v57 = vld [vmem:[#allocation17 + $0xa8] sm:$0xff]  ;;  %v2952_v22 = vld [vmem:[#allocation17 + $0xb8] sm:$0xff] }
0x11a8   : > { %7574 = vrot.lane.b32.xlu1 %v7573_v25, %s8429_s24  ;;  %v2949_v25 = vld [vmem:[#allocation17 + $0xa0] sm:$0xff] }
0x11c4   : > { %v6619_v0 = vpop.f32.mrb[18].mxu0 }
0x11c5   : > { %v2812_v54 = vpop.f32.mrb[19].mxu0  ;;  %v9353_v35 = vadd.f32 %v6619_v0, %v9045_v8  ;;  %v7007_v0 = vpack.c.bf16 %v2952_v22, %v2950_v57 }
0x11c6   : > { %v9349_v1 = vadd.f32 %v2812_v54, %v9042_v7  ;;  %v2724_v7 = vsel %vm1079_vm8, %v9247_v53, %v7566_v12  ;;  %v2951_v54 = vld [vmem:[#allocation17 + $0xb0] sm:$0xff]  ;;  %v7011_v12 = vpack.c.bf16 %v2956_v9, %v2954_v6  ;;  %v3093_v9 = vld [vmem:[#allocation20 + $0xb8] sm:$0xff] }
0x11c7   : > { %v2726_v8 = vsel %vm1899_vm11, %v2724_v7, %v7571_v16  ;;  %v7009_v11 = vpack.c.bf16 %v2951_v54, %v2949_v25  ;;  %7008 = vmatprep.subr.bf16.mxu1 %v7007_v0  ;;  %v2955_v16 = vld [vmem:[#allocation17 + $0xd0] sm:$0xff]  ;;  %v7027_v25 = vpack.c.bf16 %v3091_v21, %v3090_v20  ;;  %v3074_v0 = vld [vmem:[#allocation20 + $0x20] sm:$0xff] }
0x11c8   : > { %2833 = vadd.xlane.f32.xlu0 %v9349_v1  ;;  %v3075_v54 = vld [vmem:[#allocation20 + $0x28] sm:$0xff]  ;;  %v3092_v6 = vld [vmem:[#allocation20 + $0xb0] sm:$0xff] }
0x11c9   : > { %7010 = vmatpush1.bf16.msra.mxu1 %v7009_v11  ;;  %v7029_v11 = vpack.c.bf16 %v3075_v54, %v3074_v0 }
0x11ca   : > { %7012 = vmatprep.subr.bf16.mxu1 %v7011_v12  ;;  %v7031_v12 = vpack.c.bf16 %v3093_v9, %v3092_v6 }
0x11cc   : > { %2835 = vadd.xlane.f32.xlu1 %v9353_v35 }
0x121a   : > { %v7575_v26 = vpop.permute.xlu1 %7574 }
0x121b   : > { %v7577_v13 = vunpack.i.h.bf16 %v7575_v26  ;;  %v7576_v18 = vunpack.i.l.bf16 %v7575_v26  ;;  %v2958_v26 = vld [vmem:[#allocation17 + $0xe8] sm:$0xff] }
0x121d   : > { %v2728_v29 = vsel %vm1902_vm12, %v2726_v8, %v7576_v18  ;;  %v2729_v59 = vsel %vm1902_vm12, %v2727_v28, %v7577_v13  ;;  %v2960_v13 = vld [vmem:[#allocation17 + $0xf8] sm:$0xff]  ;;  %v7013_v18 = vpack.c.bf16 %v2955_v16, %v2953_v14  ;;  %v2959_v8 = vld [vmem:[#allocation17 + $0xf0] sm:$0xff] }
0x121e   : > { %6620 = vmatprep.mubr.f32.mxu0 %v2728_v29  ;;  %v7015_v7 = vpack.c.bf16 %v2960_v13, %v2958_v26  ;;  %v7017_v28 = vpack.c.bf16 %v2959_v8, %v2957_v27  ;;  %v3076_v14 = vld [vmem:[#allocation20 + $0x30] sm:$0xff]  ;;  %v3077_v16 = vld [vmem:[#allocation20 + $0x38] sm:$0xff]  ;;  %v3094_v26 = vld [vmem:[#allocation20 + $0xc0] sm:$0xff] }
0x121f   : > { %6621 = vmatmul.mubr.f32.gmra.mrb[20].mxu0 %v2729_v59  ;;  %7014 = vmatpush1.bf16.msra.mxu1 %v7013_v18  ;;  %v3095_v13 = vld [vmem:[#allocation20 + $0xc8] sm:$0xff]  ;;  %v7033_v18 = vpack.c.bf16 %v3077_v16, %v3076_v14  ;;  %v3078_v27 = vld [vmem:[#allocation20 + $0x40] sm:$0xff] }
0x1220   : > { %7016 = vmatprep.subr.bf16.mxu1 %v7015_v7  ;;  %v7035_v7 = vpack.c.bf16 %v3095_v13, %v3094_v26  ;;  %v3079_v8 = vld [vmem:[#allocation20 + $0x48] sm:$0xff] }
0x1223   : > { %7018 = vmatpush1.bf16.msra.mxu1 %v7017_v28  ;;  %v3096_v28 = vld [vmem:[#allocation20 + $0xd0] sm:$0xff] }
0x1255   : > { %v2834_v30 = vpop.xlane.xlu0 %2833 }
0x1256   : > { %v2841_v31 = vmul.f32 0.0078125, %v2834_v30 }
0x1258   : > { %v9365_v61 = vsub.f32 %v9349_v1, %v2841_v31 }
0x1259   : > { %v2836_v62 = vpop.xlane.xlu1 %2835 }
0x125a   : > { %v2842_v53 = vmul.f32 0.0078125, %v2836_v62  ;;  %v2849_v52 = vmul.f32 %v9365_v61, %v9365_v61 }
0x125c   : > { %v9370_v63 = vsub.f32 %v9353_v35, %v2842_v53  ;;  %2853 = vadd.xlane.f32.xlu0 %v2849_v52 }
0x125e   : > { %v2850_v24 = vmul.f32 %v9370_v63, %v9370_v63 }
0x1260   : > { %2855 = vadd.xlane.f32.xlu0 %v2850_v24 }
0x12e9   : > { %v2854_v29 = vpop.xlane.xlu0 %2853 }
0x12ea   : > { %v2861_v59 = vmul.f32 0.007874016, %v2854_v29  ;;  %v3097_v29 = vld [vmem:[#allocation20 + $0xd8] sm:$0xff] }
0x12ec   : > { %7748 = vrsqrt.f32 %v2861_v59  ;;  %vm2867_vm13 = vcmp.eq.f32.partialorder %v2861_v59, inf  ;;  %v2870_v32 = vand.u32 2147483648, %v2861_v59  ;;  %vm2869_vm14 = vcmp.eq.f32.partialorder %v2861_v59, 0.0 }
0x12ed   : > { %v2856_v30 = vpop.xlane.xlu0 %2855 }
0x12ee   : > { %v2862_v31 = vmul.f32 0.007874016, %v2856_v30  ;;  %v7039_v30 = vpack.c.bf16 %v3097_v29, %v3096_v28 }
0x12f0   : > { %7750 = vrsqrt.f32 %v2862_v31  ;;  %vm2874_vm15 = vcmp.eq.f32.partialorder %v2862_v31, inf  ;;  %vm2876_vm0 = vcmp.eq.f32.partialorder %v2862_v31, 0.0 }
0x12f2   : > { %v6622_v62 = vpop.f32.mrb[20].mxu0 }
0x12f3   : > { %v9375_v53 = vadd.f32 %v6622_v62, %v9062_v23  ;;  %v2822_v52 = vpop.f32.mrb[21].mxu0  ;;  %v2877_v23 = vand.u32 2147483648, %v2862_v31  ;;  %v3081_v62 = vld [vmem:[#allocation20 + $0x58] sm:$0xff] }
0x12f4   : > { %v9378_v24 = vadd.f32 %v2822_v52, %v9048_v10  ;;  %v3098_v52 = vld [vmem:[#allocation20 + $0xe0] sm:$0xff] }
0x12f5   : > { %2839 = vadd.xlane.f32.xlu1 %v9375_v53 }
0x12f6   : > { %v7749_v46 = vpop.eup %7748  ;;  %2837 = vadd.xlane.f32.xlu0 %v9378_v24 }
0x12f7   : > { %v2866_v48 = vmul.f32 %v7749_v46, %v2861_v59  ;;  %v3099_v46 = vld [vmem:[#allocation20 + $0xe8] sm:$0xff] }
0x12f9   : > { %v2868_v50 = vsel %vm2867_vm13, %v2861_v59, %v2866_v48  ;;  %v7037_v59 = vpack.c.bf16 %v3079_v8, %v3078_v27 }
0x12fa   : > { %v7751_v39 = vpop.eup %7750  ;;  %v2871_v33 = vsel %vm2869_vm14, %v2870_v32, %v2868_v50  ;;  %v7043_v32 = vpack.c.bf16 %v3099_v46, %v3098_v52  ;;  %v3082_v50 = vld [vmem:[#allocation20 + $0x60] sm:$0xff] }
0x12fb   : > { %v2893_v37 = vadd.f32 1e-06, %v2871_v33  ;;  %v2873_v36 = vmul.f32 %v7751_v39, %v2862_v31  ;;  %v3083_v39 = vld [vmem:[#allocation20 + $0x68] sm:$0xff] }
0x12fc   : > { %v7045_v33 = vpack.c.bf16 %v3083_v39, %v3082_v50 }
0x12fd   : > { %7752 = vrcp.f32 %v2893_v37  ;;  %v2875_v34 = vsel %vm2874_vm15, %v2862_v31, %v2873_v36  ;;  %v3080_v31 = vld [vmem:[#allocation20 + $0x50] sm:$0xff]  ;;  %v3101_v36 = vld [vmem:[#allocation20 + $0xf8] sm:$0xff] }
0x12fe   : > { %v2878_v10 = vsel %vm2876_vm0, %v2877_v23, %v2875_v34  ;;  %v7041_v48 = vpack.c.bf16 %v3081_v62, %v3080_v31  ;;  %v3100_v37 = vld [vmem:[#allocation20 + $0xf0] sm:$0xff] }
0x12ff   : > { %v2894_v38 = vadd.f32 1e-06, %v2878_v10  ;;  %v7047_v23 = vpack.c.bf16 %v3101_v36, %v3100_v37  ;;  %v3084_v34 = vld [vmem:[#allocation20 + $0x70] sm:$0xff]  ;;  %v3085_v10 = vld [vmem:[#allocation20 + $0x78] sm:$0xff] }
0x1301   : > { %7754 = vrcp.f32 %v2894_v38  ;;  %v7049_v38 = vpack.c.bf16 %v3085_v10, %v3084_v34 }
0x1307   : > { %v7753_v47 = vpop.eup %7752 }
0x1308   : > { %v2905_v58 = vmul.f32 %v7753_v47, %v9365_v61  ;;  %v3073_v61 = vld [vmem:[#allocation20 + $0x18] sm:$0xff] }
0x1309   : > { %v7025_v22 = vpack.c.bf16 %v3073_v61, %v3072_v5 }
0x130a   : > { %v2915_v42 = vmul.f32 %v9382_v40, %v2905_v58 }
0x130b   : > { %v7755_v49 = vpop.eup %7754  ;;  %7026 = vmatpush3.bf16.msra.mxu0 %v7025_v22 }
0x130c   : > { %v2925_v55 = vadd.f32 %v9385_v41, %v2915_v42  ;;  %v2906_v17 = vmul.f32 %v7755_v49, %v9370_v63  ;;  %7028 = vmatprep.subr.bf16.mxu0 %v7027_v25 }
0x130e   : > { %3038 = vmatmul.mubr.f32.vlgmr.msra.gmra.mrb[26].mxu1 %v2925_v55  ;;  %v2916_v57 = vmul.f32 %v9382_v40, %v2906_v17  ;;  %v2961_v55 = vld [vmem:[#allocation19] sm:$0x3]  ;;  %v2969_v17 = vsub.s32 1, %v9396_v2 }
0x130f   : > { %3043 = vmatprep.mubr.f32.mxu1 %v8428_v15  ;;  %7030 = vmatpush3.bf16.msra.mxu0 %v7029_v11  ;;  %v9402_v19 = vrot.slane %v2961_v55, %v2965_v3 }
0x1310   : > { %v2926_v63 = vadd.f32 %v9385_v41, %v2916_v57  ;;  %7032 = vmatprep.subr.bf16.mxu0 %v7031_v12  ;;  %v9406_v4 = vrot.slane %v2961_v55, %v2969_v17 }
0x1312   : > { %3044 = vmatmul.mubr.f32.gmra.mrb[28].mxu1 %v2926_v63 }
0x1313   : > { %3049 = vmatprep.mubr.f32.mxu1 %v8428_v15  ;;  %7034 = vmatpush3.bf16.msra.mxu0 %v7033_v18 }
0x1314   : > { %7036 = vmatprep.subr.bf16.mxu0 %v7035_v7 }
0x1317   : > { %7038 = vmatpush3.bf16.msra.mxu0 %v7037_v59 }
0x1318   : > { %7040 = vmatprep.subr.bf16.mxu0 %v7039_v30 }
0x131b   : > { %7042 = vmatpush3.bf16.msra.mxu0 %v7041_v48 }
0x131c   : > { %7044 = vmatprep.subr.bf16.mxu0 %v7043_v32 }
0x131f   : > { %7046 = vmatpush3.bf16.msra.mxu0 %v7045_v33 }
0x1320   : > { %7048 = vmatprep.subr.bf16.mxu0 %v7047_v23  ;;  %v9418_v23 = vld [vmem:[#allocation22] ss:$0 sm:$0xff] }
0x1323   : > { %7050 = vmatpush3.bf16.msra.mxu0 %v7049_v38 }
0x1382   : > { %v2840_v47 = vpop.xlane.xlu1 %2839 }
0x1383   : > { %v2844_v58 = vmul.f32 0.0078125, %v2840_v47  ;;  %v2838_v42 = vpop.xlane.xlu0 %2837 }
0x1384   : > { %v2843_v44 = vmul.f32 0.0078125, %v2838_v42 }
0x1385   : > { %v2848_v56 = vsub.f32 %v9375_v53, %v2844_v58 }
0x1386   : > { %v2847_v45 = vsub.f32 %v9378_v24, %v2843_v44 }
0x1387   : > { %v2852_v49 = vmul.f32 %v2848_v56, %v2848_v56 }
0x1388   : > { %v2851_v51 = vmul.f32 %v2847_v45, %v2847_v45 }
0x1389   : > { %2859 = vadd.xlane.f32.xlu1 %v2852_v49 }
0x138a   : > { %2857 = vadd.xlane.f32.xlu0 %v2851_v51 }
0x13e1   : > { %v3039_v5 = vpop.f32.mrb[26].mxu1 }
0x13e2   : > { %v3040_v61 = vadd.f32 %v3039_v5, %v9402_v19  ;;  %v3041_v20 = vpop.f32.mrb[27].mxu1 }
0x13e3   : > { %v3042_v21 = vadd.f32 %v3041_v20, %v9406_v4 }
0x13e4   : > { %v3062_v25 = vmax.f32 %v3040_v61, 0.0 }
0x13e5   : > { %v3063_v57 = vmax.f32 %v3042_v21, 0.0  ;;  %v3045_v22 = vpop.f32.mrb[28].mxu1 }
0x13e6   : > { %v3046_v0 = vadd.f32 %v3045_v22, %v9402_v19  ;;  %v3047_v54 = vpop.f32.mrb[29].mxu1 }
0x13e7   : > { %v3048_v63 = vadd.f32 %v3047_v54, %v9406_v4  ;;  %3173 = vmatprep.mubr.f32.mxu0 %v3063_v57 }
0x13e8   : > { %3174 = vmatmul.mubr.f32.vlgmr.msra.gmra.mrb[22].mxu0 %v3062_v25  ;;  %v3064_v9 = vmax.f32 %v3046_v0, 0.0 }
0x13e9   : > { %v3065_v6 = vmax.f32 %v3048_v63, 0.0 }
0x13eb   : > { %3178 = vmatprep.mubr.f32.mxu0 %v3065_v6  ;;  %v3300_v6 = vld [vmem:[#allocation8 + $0x188] sm:$0xff] }
0x13ec   : > { %3179 = vmatmul.mubr.f32.gmra.mrb[24].mxu0 %v3064_v9  ;;  %v3303_v9 = vld [vmem:[#allocation8 + $0x1a0] sm:$0xff] }
0x1416   : > { %v2860_v11 = vpop.xlane.xlu1 %2859 }
0x1417   : > { %v2864_v12 = vmul.f32 0.007874016, %v2860_v11  ;;  %v2858_v14 = vpop.xlane.xlu0 %2857  ;;  %v7051_v11 = vpack.c.bf16 %v3303_v9, %v3300_v6 }
0x1418   : > { %v2863_v16 = vmul.f32 0.007874016, %v2858_v14  ;;  %v3302_v14 = vld [vmem:[#allocation8 + $0x198] sm:$0xff] }
0x1419   : > { %7756 = vrsqrt.f32 %v2864_v12  ;;  %vm2888_vm1 = vcmp.eq.f32.partialorder %v2864_v12, inf  ;;  %v2891_v7 = vand.u32 2147483648, %v2864_v12  ;;  %vm2890_vm2 = vcmp.eq.f32.partialorder %v2864_v12, 0.0  ;;  %7052 = vmatprep.subr.bf16.mxu1 %v7051_v11  ;;  %v3335_v11 = vld [vmem:[#allocation8 + $0x2a0] sm:$0xff] }
0x141a   : > { %7758 = vrsqrt.f32 %v2863_v16  ;;  %vm2881_vm3 = vcmp.eq.f32.partialorder %v2863_v16, inf  ;;  %v2884_v28 = vand.u32 2147483648, %v2863_v16  ;;  %vm2883_vm4 = vcmp.eq.f32.partialorder %v2863_v16, 0.0 }
0x1423   : > { %v7757_v26 = vpop.eup %7756 }
0x1424   : > { %v7759_v13 = vpop.eup %7758  ;;  %v2887_v18 = vmul.f32 %v7757_v26, %v2864_v12  ;;  %v3306_v26 = vld [vmem:[#allocation8 + $0x1b8] sm:$0xff] }
0x1425   : > { %v2880_v27 = vmul.f32 %v7759_v13, %v2863_v16  ;;  %v3309_v13 = vld [vmem:[#allocation8 + $0x1d0] sm:$0xff] }
0x1426   : > { %v2889_v8 = vsel %vm2888_vm1, %v2864_v12, %v2887_v18  ;;  %v3299_v12 = vld [vmem:[#allocation8 + $0x180] sm:$0xff]  ;;  %v7055_v18 = vpack.c.bf16 %v3309_v13, %v3306_v26  ;;  %v3342_v26 = vld [vmem:[#allocation8 + $0x2d8] sm:$0xff]  ;;  %v3345_v13 = vld [vmem:[#allocation8 + $0x2f0] sm:$0xff] }
0x1427   : > { %v2882_v29 = vsel %vm2881_vm3, %v2863_v16, %v2880_v27  ;;  %v2892_v59 = vsel %vm2890_vm2, %v2891_v7, %v2889_v8  ;;  %v7053_v16 = vpack.c.bf16 %v3302_v14, %v3299_v12  ;;  %v3305_v7 = vld [vmem:[#allocation8 + $0x1b0] sm:$0xff]  ;;  %v3308_v27 = vld [vmem:[#allocation8 + $0x1c8] sm:$0xff]  ;;  %v3338_v12 = vld [vmem:[#allocation8 + $0x2b8] sm:$0xff] }
0x1428   : > { %v2885_v30 = vsel %vm2883_vm4, %v2884_v28, %v2882_v29  ;;  %v2896_v31 = vadd.f32 1e-06, %v2892_v59  ;;  %v3301_v8 = vld [vmem:[#allocation8 + $0x190] sm:$0xff]  ;;  %v7057_v28 = vpack.c.bf16 %v3308_v27, %v3305_v7  ;;  %v3304_v29 = vld [vmem:[#allocation8 + $0x1a8] sm:$0xff]  ;;  %v3331_v14 = vld [vmem:[#allocation8 + $0x280] sm:$0xff]  ;;  %v7077_v7 = vpack.c.bf16 %v3338_v12, %v3335_v11 }
0x1429   : > { %v2895_v62 = vadd.f32 1e-06, %v2885_v30  ;;  %7054 = vmatpush1.bf16.msra.mxu1 %v7053_v16  ;;  %v7083_v59 = vpack.c.bf16 %v3304_v29, %v3301_v8  ;;  %v3312_v30 = vld [vmem:[#allocation8 + $0x1e8] sm:$0xff]  ;;  %v3334_v16 = vld [vmem:[#allocation8 + $0x298] sm:$0xff]  ;;  %v3337_v27 = vld [vmem:[#allocation8 + $0x2b0] sm:$0xff] }
0x142a   : > { %7760 = vrcp.f32 %v2896_v31  ;;  %7056 = vmatprep.subr.bf16.mxu1 %v7055_v18  ;;  %v3315_v31 = vld [vmem:[#allocation8 + $0x200] sm:$0xff]  ;;  %v7103_v18 = vpack.c.bf16 %v3334_v16, %v3331_v14  ;;  %v3340_v8 = vld [vmem:[#allocation8 + $0x2c8] sm:$0xff]  ;;  %v3341_v29 = vld [vmem:[#allocation8 + $0x2d0] sm:$0xff] }
0x142b   : > { %7762 = vrcp.f32 %v2895_v62  ;;  %7084 = vmatprep.subr.bf16.mxu0 %v7083_v59  ;;  %v7059_v62 = vpack.c.bf16 %v3315_v31, %v3312_v30  ;;  %v7107_v30 = vpack.c.bf16 %v3340_v8, %v3337_v27 }
0x142c   : > { %7086 = vmatpush3.bf16.msra.mxu0 %v7083_v59  ;;  %v3344_v59 = vld [vmem:[#allocation8 + $0x2e8] sm:$0xff] }
0x142d   : > { %7058 = vmatpush1.bf16.msra.mxu1 %v7057_v28  ;;  %v7079_v28 = vpack.c.bf16 %v3345_v13, %v3342_v26  ;;  %v7081_v31 = vpack.c.bf16 %v3344_v59, %v3341_v29 }
0x142e   : > { %7060 = vmatprep.subr.bf16.mxu1 %v7059_v62  ;;  %v3343_v62 = vld [vmem:[#allocation8 + $0x2e0] sm:$0xff] }
0x1434   : > { %v7761_v52 = vpop.eup %7760 }
0x1435   : > { %v7763_v46 = vpop.eup %7762  ;;  %v2908_v32 = vmul.f32 %v7761_v52, %v2848_v56  ;;  %v3311_v52 = vld [vmem:[#allocation8 + $0x1e0] sm:$0xff] }
0x1436   : > { %v2907_v48 = vmul.f32 %v7763_v46, %v2847_v45  ;;  %v3314_v46 = vld [vmem:[#allocation8 + $0x1f8] sm:$0xff] }
0x1437   : > { %v2918_v33 = vmul.f32 %v9382_v40, %v2908_v32  ;;  %v7061_v32 = vpack.c.bf16 %v3314_v46, %v3311_v52  ;;  %v3346_v52 = vld [vmem:[#allocation8 + $0x2f8] sm:$0xff] }
0x1438   : > { %v2917_v50 = vmul.f32 %v9382_v40, %v2907_v48  ;;  %v3307_v48 = vld [vmem:[#allocation8 + $0x1c0] sm:$0xff]  ;;  %v7111_v46 = vpack.c.bf16 %v3346_v52, %v3343_v62 }
0x1439   : > { %v2928_v37 = vadd.f32 %v9385_v41, %v2918_v33  ;;  %7062 = vmatpush1.bf16.msra.mxu1 %v7061_v32  ;;  %v3318_v33 = vld [vmem:[#allocation8 + $0x218] sm:$0xff] }
0x143a   : > { %v2927_v39 = vadd.f32 %v9385_v41, %v2917_v50  ;;  %v3310_v50 = vld [vmem:[#allocation8 + $0x1d8] sm:$0xff] }
0x143c   : > { %3050 = vmatmul.mubr.f32.gmra.mrb[30].mxu1 %v2927_v39  ;;  %v7087_v39 = vpack.c.bf16 %v3310_v50, %v3307_v48 }
0x143d   : > { %3055 = vmatprep.mubr.f32.mxu1 %v8428_v15 }
0x143e   : > { %7088 = vmatprep.subr.bf16.mxu0 %v7087_v39 }
0x143f   : > { %7090 = vmatpush3.bf16.msra.mxu0 %v7087_v39 }
0x1440   : > { %3056 = vmatmul.mubr.f32.gmra.mrb[32].mxu1 %v2928_v37  ;;  %v3321_v37 = vld [vmem:[#allocation8 + $0x230] sm:$0xff] }
0x1441   : > { %3411 = vmatprep.mubr.f32.mxu1 %v8428_v15 }
0x14bb   : > { %v6275_v36 = vpop.f32.mrb[22].mxu0 }
0x14bc   : > { %v6276_v34 = vpop.f32.mrb[23].mxu0 }
0x14bd   : > { %v6277_v10 = vadd.f32 %v6276_v34, %v6275_v36  ;;  %v7063_v36 = vpack.c.bf16 %v3321_v37, %v3318_v33  ;;  %v3317_v34 = vld [vmem:[#allocation8 + $0x210] sm:$0xff] }
0x14bf   : > { %v3176_v38 = vadd.f32 %v6277_v10, %v9418_v23  ;;  %v6278_v47 = vpop.f32.mrb[24].mxu0  ;;  %v3320_v10 = vld [vmem:[#allocation8 + $0x228] sm:$0xff]  ;;  %7064 = vmatprep.subr.bf16.mxu1 %v7063_v36 }
0x14c0   : > { %v6279_v58 = vpop.f32.mrb[25].mxu0 }
0x14c1   : > { %v6280_v42 = vadd.f32 %v6279_v58, %v6278_v47  ;;  %v9422_v40 = vadd.f32 %v3176_v38, %v9349_v1  ;;  %v3313_v38 = vld [vmem:[#allocation8 + $0x1f0] sm:$0xff]  ;;  %v7065_v47 = vpack.c.bf16 %v3320_v10, %v3317_v34  ;;  %v3316_v58 = vld [vmem:[#allocation8 + $0x208] sm:$0xff] }
0x14c3   : > { %v3181_v44 = vadd.f32 %v6280_v42, %v9418_v23  ;;  %3202 = vadd.xlane.f32.xlu0 %v9422_v40  ;;  %v7091_v42 = vpack.c.bf16 %v3316_v58, %v3313_v38  ;;  %7066 = vmatpush1.bf16.msra.mxu1 %v7065_v47 }
0x14c5   : > { %v9427_v41 = vadd.f32 %v3181_v44, %v9353_v35  ;;  %v3324_v44 = vld [vmem:[#allocation8 + $0x248] sm:$0xff]  ;;  %7092 = vmatprep.subr.bf16.mxu0 %v7091_v42 }
0x14c6   : > { %7094 = vmatpush3.bf16.msra.mxu0 %v7091_v42 }
0x14c7   : > { %3204 = vadd.xlane.f32.xlu1 %v9427_v41 }
0x150f   : > { %v3051_v56 = vpop.f32.mrb[30].mxu1 }
0x1510   : > { %v3052_v45 = vadd.f32 %v3051_v56, %v9402_v19  ;;  %v3053_v49 = vpop.f32.mrb[31].mxu1  ;;  %v3327_v56 = vld [vmem:[#allocation8 + $0x260] sm:$0xff] }
0x1511   : > { %v3054_v51 = vadd.f32 %v3053_v49, %v9406_v4  ;;  %v3323_v49 = vld [vmem:[#allocation8 + $0x240] sm:$0xff] }
0x1512   : > { %v3066_v5 = vmax.f32 %v3052_v45, 0.0  ;;  %v7067_v45 = vpack.c.bf16 %v3327_v56, %v3324_v44 }
0x1513   : > { %v3067_v60 = vmax.f32 %v3054_v51, 0.0  ;;  %v3057_v55 = vpop.f32.mrb[32].mxu1  ;;  %v3326_v51 = vld [vmem:[#allocation8 + $0x258] sm:$0xff] }
0x1514   : > { %v3058_v1 = vadd.f32 %v3057_v55, %v9402_v19  ;;  %v3059_v61 = vpop.f32.mrb[33].mxu1  ;;  %v7069_v55 = vpack.c.bf16 %v3326_v51, %v3323_v49  ;;  %7068 = vmatprep.subr.bf16.mxu1 %v7067_v45 }
0x1515   : > { %v3060_v20 = vadd.f32 %v3059_v61, %v9406_v4  ;;  %3183 = vmatprep.mubr.f32.mxu0 %v3067_v60  ;;  %v3319_v60 = vld [vmem:[#allocation8 + $0x220] sm:$0xff]  ;;  %v3333_v61 = vld [vmem:[#allocation8 + $0x290] sm:$0xff] }
0x1516   : > { %3184 = vmatmul.mubr.f32.gmra.mrb[26].mxu0 %v3066_v5  ;;  %v3068_v21 = vmax.f32 %v3058_v1, 0.0  ;;  %v3322_v5 = vld [vmem:[#allocation8 + $0x238] sm:$0xff]  ;;  %7070 = vmatpush1.bf16.msra.mxu1 %v7069_v55 }
0x1517   : > { %v3069_v35 = vmax.f32 %v3060_v20, 0.0  ;;  %v3330_v1 = vld [vmem:[#allocation8 + $0x278] sm:$0xff]  ;;  %v7095_v20 = vpack.c.bf16 %v3322_v5, %v3319_v60 }
0x1519   : > { %3188 = vmatprep.mubr.f32.mxu0 %v3069_v35  ;;  %v7071_v35 = vpack.c.bf16 %v3333_v61, %v3330_v1  ;;  %7096 = vmatprep.subr.bf16.mxu0 %v7095_v20 }
0x151a   : > { %3189 = vmatmul.mubr.f32.gmra.mrb[28].mxu0 %v3068_v21  ;;  %v3329_v21 = vld [vmem:[#allocation8 + $0x270] sm:$0xff] }
0x151b   : > { %7072 = vmatprep.subr.bf16.mxu1 %v7071_v35  ;;  %7098 = vmatpush3.bf16.msra.mxu0 %v7095_v20 }
0x1550   : > { %v3203_v57 = vpop.xlane.xlu0 %3202 }
0x1551   : > { %v3210_v22 = vmul.f32 0.0078125, %v3203_v57  ;;  %v3332_v57 = vld [vmem:[#allocation8 + $0x288] sm:$0xff] }
0x1553   : > { %v9435_v25 = vsub.f32 %v9422_v40, %v3210_v22  ;;  %v3325_v22 = vld [vmem:[#allocation8 + $0x250] sm:$0xff] }
0x1554   : > { %v3205_v0 = vpop.xlane.xlu1 %3204 }
0x1555   : > { %v3211_v54 = vmul.f32 0.0078125, %v3205_v0  ;;  %v3218_v63 = vmul.f32 %v9435_v25, %v9435_v25  ;;  %v7073_v0 = vpack.c.bf16 %v3332_v57, %v3329_v21  ;;  %v9454_v21 = vld [vmem:[#allocation11 + $0x1] ss:$0 sm:$0xff]  ;;  %v9457_v57 = vld [vmem:[#allocation13 + $0x1] ss:$0 sm:$0xff] }
0x1557   : > { %v9440_v19 = vsub.f32 %v9427_v41, %v3211_v54  ;;  %3222 = vadd.xlane.f32.xlu0 %v3218_v63  ;;  %v3328_v54 = vld [vmem:[#allocation8 + $0x268] sm:$0xff]  ;;  %7074 = vmatpush1.bf16.msra.mxu1 %v7073_v0 }
0x1558   : > { %v3336_v63 = vld [vmem:[#allocation8 + $0x2a8] sm:$0xff]  ;;  %v7099_v6 = vpack.c.bf16 %v3328_v54, %v3325_v22 }
0x1559   : > { %v3219_v4 = vmul.f32 %v9440_v19, %v9440_v19 }
0x155a   : > { %7100 = vmatprep.subr.bf16.mxu0 %v7099_v6 }
0x155b   : > { %3224 = vadd.xlane.f32.xlu1 %v3219_v4  ;;  %v3339_v4 = vld [vmem:[#allocation8 + $0x2c0] sm:$0xff]  ;;  %7102 = vmatpush3.bf16.msra.mxu0 %v7099_v6 }
0x155c   : > { %v7075_v9 = vpack.c.bf16 %v3339_v4, %v3336_v63  ;;  %7104 = vmatprep.subr.bf16.mxu0 %v7103_v18 }
0x155e   : > { %7076 = vmatprep.subr.bf16.mxu1 %v7075_v9 }
0x155f   : > { %7078 = vmatpush1.bf16.msra.mxu1 %v7077_v7  ;;  %7106 = vmatpush3.bf16.msra.mxu0 %v7103_v18 }
0x1560   : > { %7080 = vmatprep.subr.bf16.mxu1 %v7079_v28  ;;  %7108 = vmatprep.subr.bf16.mxu0 %v7107_v30 }
0x1563   : > { %7082 = vmatpush1.bf16.msra.mxu1 %v7081_v31  ;;  %7110 = vmatpush3.bf16.msra.mxu0 %v7107_v30 }
0x1564   : > { %7112 = vmatprep.subr.bf16.mxu0 %v7111_v46 }
0x1567   : > { %7114 = vmatpush3.bf16.msra.mxu0 %v7111_v46 }
0x15e4   : > { %v3223_v48 = vpop.xlane.xlu0 %3222 }
0x15e5   : > { %v3230_v32 = vmul.f32 0.007874016, %v3223_v48 }
0x15e7   : > { %7764 = vrsqrt.f32 %v3230_v32  ;;  %vm3236_vm5 = vcmp.eq.f32.partialorder %v3230_v32, inf  ;;  %v3239_v45 = vand.u32 2147483648, %v3230_v32  ;;  %vm3238_vm6 = vcmp.eq.f32.partialorder %v3230_v32, 0.0 }
0x15e8   : > { %v3225_v50 = vpop.xlane.xlu1 %3224 }
0x15e9   : > { %v3231_v39 = vmul.f32 0.007874016, %v3225_v50  ;;  %v6281_v33 = vpop.f32.mrb[26].mxu0 }
0x15ea   : > { %v6282_v37 = vpop.f32.mrb[27].mxu0 }
0x15eb   : > { %7766 = vrsqrt.f32 %v3231_v39  ;;  %v6283_v36 = vadd.f32 %v6282_v37, %v6281_v33  ;;  %vm3243_vm7 = vcmp.eq.f32.partialorder %v3231_v39, inf  ;;  %v3246_v1 = vand.u32 2147483648, %v3231_v39 }
0x15ec   : > { %vm3245_vm13 = vcmp.eq.f32.partialorder %v3231_v39, 0.0 }
0x15ed   : > { %v6284_v34 = vpop.f32.mrb[28].mxu0  ;;  %v3186_v10 = vadd.f32 %v6283_v36, %v9418_v23 }
0x15ee   : > { %v6285_v38 = vpop.f32.mrb[29].mxu0 }
0x15ef   : > { %v6286_v47 = vadd.f32 %v6285_v38, %v6284_v34  ;;  %v9446_v58 = vadd.f32 %v3186_v10, %v9378_v24 }
0x15f1   : > { %v7765_v42 = vpop.eup %7764  ;;  %v3191_v44 = vadd.f32 %v6286_v47, %v9418_v23  ;;  %3206 = vadd.xlane.f32.xlu0 %v9446_v58 }
0x15f2   : > { %v3235_v56 = vmul.f32 %v7765_v42, %v3230_v32 }
0x15f3   : > { %v9451_v49 = vadd.f32 %v3191_v44, %v9375_v53 }
0x15f4   : > { %v3237_v51 = vsel %vm3236_vm5, %v3230_v32, %v3235_v56 }
0x15f5   : > { %v7767_v60 = vpop.eup %7766  ;;  %v3240_v55 = vsel %vm3238_vm6, %v3239_v45, %v3237_v51  ;;  %3208 = vadd.xlane.f32.xlu1 %v9451_v49 }
0x15f6   : > { %v3262_v5 = vadd.f32 1e-06, %v3240_v55  ;;  %v3242_v24 = vmul.f32 %v7767_v60, %v3231_v39 }
0x15f8   : > { %7768 = vrcp.f32 %v3262_v5  ;;  %v3244_v23 = vsel %vm3243_vm7, %v3231_v39, %v3242_v24 }
0x15f9   : > { %v3247_v61 = vsel %vm3245_vm13, %v3246_v1, %v3244_v23 }
0x15fa   : > { %v3263_v20 = vadd.f32 1e-06, %v3247_v61 }
0x15fc   : > { %7770 = vrcp.f32 %v3263_v20 }
0x1602   : > { %v7769_v35 = vpop.eup %7768 }
0x1603   : > { %v3274_v53 = vmul.f32 %v7769_v35, %v9435_v25 }
0x1605   : > { %v3284_v22 = vmul.f32 %v9454_v21, %v3274_v53 }
0x1606   : > { %v7771_v0 = vpop.eup %7770 }
0x1607   : > { %v3294_v54 = vadd.f32 %v9457_v57, %v3284_v22  ;;  %v3275_v63 = vmul.f32 %v7771_v0, %v9440_v19 }
0x1609   : > { %3412 = vmatmul.mubr.f32.vlgmr.msra.gmra.mrb[34].mxu1 %v3294_v54  ;;  %6655 = vmatprep.mubr.f32.mxu0 %v3294_v54  ;;  %v3285_v4 = vmul.f32 %v9454_v21, %v3275_v63 }
0x160a   : > { %3417 = vmatprep.mubr.f32.mxu1 %v8428_v15 }
0x160b   : > { %v3295_v6 = vadd.f32 %v9457_v57, %v3285_v4  ;;  %v9502_v4 = vld [vmem:[%s9005_s0 + $0x8] sm:$0xff] }
0x160d   : > { %3418 = vmatmul.mubr.f32.gmra.mrb[36].mxu1 %v3295_v6  ;;  %6656 = vmatmul.mubr.f32.vlgmr.msra.gmra.mrb[30].mxu0 %v3295_v6 }
0x160e   : > { %3423 = vmatprep.mubr.f32.mxu1 %v8428_v15 }
0x167e   : > { %v3207_v25 = vpop.xlane.xlu0 %3206 }
0x167f   : > { %v3212_v9 = vmul.f32 0.0078125, %v3207_v25 }
0x1681   : > { %v3216_v11 = vsub.f32 %v9446_v58, %v3212_v9  ;;  %v9506_v9 = vld [vmem:[%s9005_s0] sm:$0xff] }
0x1682   : > { %v3209_v12 = vpop.xlane.xlu1 %3208 }
0x1683   : > { %v3213_v14 = vmul.f32 0.0078125, %v3209_v12  ;;  %v3220_v16 = vmul.f32 %v3216_v11, %v3216_v11 }
0x1685   : > { %v3217_v19 = vsub.f32 %v9451_v49, %v3213_v14  ;;  %3226 = vadd.xlane.f32.xlu0 %v3220_v16 }
0x1687   : > { %v3221_v26 = vmul.f32 %v3217_v19, %v3217_v19 }
0x1689   : > { %3228 = vadd.xlane.f32.xlu1 %v3221_v26 }
0x16dc   : > { %v9468_v13 = vpop.f32.mrb[34].mxu1 }
0x16dd   : > { %v3415_v18 = vpop.f32.mrb[35].mxu1 }
0x16e0   : > { %v9470_v7 = vpop.f32.mrb[36].mxu1  ;;  %v6657_v27 = vpop.f32.mrb[30].mxu0 }
0x16e1   : > { %v3421_v8 = vpop.f32.mrb[37].mxu1  ;;  %v3502_v28 = vpop.f32.mrb[31].mxu0 }
0x16e2   : > { %v9472_v29 = vpack.i.bf16 %v3421_v8, %v3415_v18  ;;  %v7115_v59 = vpack.c.bf16 %v3421_v8, %v3415_v18  ;;  %v9474_v30 = vpack.i.bf16 %v6657_v27, %v3502_v28  ;;  %v7121_v31 = vpack.c.bf16 %v6657_v27, %v3502_v28 }
0x16e4   : > { %7117 = vmatprep.subr.msk.bf16.mxu1 %vm9091_vm9, %v7115_v59 }
0x16e5   : > { %7120 = vmatpush3.bf16.xpose.msk.msra.mxu1 %vm9091_vm9, %v7115_v59 }
0x16e6   : > { %7122 = vmatprep.subr.bf16.mxu1 %v7121_v31 }
0x1712   : > { %v3227_v62 = vpop.xlane.xlu0 %3226 }
0x1713   : > { %v3232_v52 = vmul.f32 0.007874016, %v3227_v62 }
0x1715   : > { %7772 = vrsqrt.f32 %v3232_v52  ;;  %vm3250_vm14 = vcmp.eq.f32.partialorder %v3232_v52, inf  ;;  %v3253_v39 = vand.u32 2147483648, %v3232_v52  ;;  %vm3252_vm15 = vcmp.eq.f32.partialorder %v3232_v52, 0.0 }
0x1716   : > { %v3229_v46 = vpop.xlane.xlu1 %3228 }
0x1717   : > { %v3233_v48 = vmul.f32 0.007874016, %v3229_v46 }
0x1719   : > { %7774 = vrsqrt.f32 %v3233_v48  ;;  %vm3257_vm0 = vcmp.eq.f32.partialorder %v3233_v48, inf  ;;  %v3260_v10 = vand.u32 2147483648, %v3233_v48  ;;  %vm3259_vm1 = vcmp.eq.f32.partialorder %v3233_v48, 0.0 }
0x171f   : > { %v7773_v32 = vpop.eup %7772 }
0x1720   : > { %v3249_v50 = vmul.f32 %v7773_v32, %v3232_v52 }
0x1722   : > { %v3251_v37 = vsel %vm3250_vm14, %v3232_v52, %v3249_v50 }
0x1723   : > { %v7775_v33 = vpop.eup %7774  ;;  %v3254_v34 = vsel %vm3252_vm15, %v3253_v39, %v3251_v37 }
0x1724   : > { %v3256_v36 = vmul.f32 %v7775_v33, %v3233_v48  ;;  %v3264_v38 = vadd.f32 1e-06, %v3254_v34 }
0x1726   : > { %v3258_v47 = vsel %vm3257_vm0, %v3233_v48, %v3256_v36  ;;  %7776 = vrcp.f32 %v3264_v38 }
0x1727   : > { %v3261_v42 = vsel %vm3259_vm1, %v3260_v10, %v3258_v47 }
0x1728   : > { %v3265_v44 = vadd.f32 1e-06, %v3261_v42 }
0x172a   : > { %7778 = vrcp.f32 %v3265_v44 }
0x1730   : > { %v7777_v56 = vpop.eup %7776 }
0x1731   : > { %v3276_v45 = vmul.f32 %v7777_v56, %v3216_v11 }
0x1733   : > { %v3286_v60 = vmul.f32 %v9454_v21, %v3276_v45 }
0x1734   : > { %v7779_v51 = vpop.eup %7778 }
0x1735   : > { %v3277_v55 = vmul.f32 %v7779_v51, %v3217_v19  ;;  %v3296_v5 = vadd.f32 %v9457_v57, %v3286_v60 }
0x1737   : > { %v3287_v24 = vmul.f32 %v9454_v21, %v3277_v55  ;;  %3424 = vmatmul.mubr.f32.gmra.mrb[38].mxu1 %v3296_v5  ;;  %6658 = vmatprep.mubr.f32.mxu0 %v3296_v5 }
0x1738   : > { %3429 = vmatprep.mubr.f32.mxu1 %v8428_v15 }
0x1739   : > { %v3297_v1 = vadd.f32 %v9457_v57, %v3287_v24 }
0x173b   : > { %6659 = vmatmul.mubr.f32.gmra.mrb[32].mxu0 %v3297_v1  ;;  %3430 = vmatmul.mubr.f32.gmra.mrb[40].mxu1 %v3297_v1 }
0x173c   : > { %6665 = vmatprep.mubr.msk.f32.mxu1 %vm1079_vm8, %v9468_v13 }
0x173f   : > { %6666 = vmatmul.mubr.msk.f32.vlgmr.msra.gmra.mrb[42].mxu1 %vm1079_vm8, %v9470_v7 }
0x1740   : > { %7124 = vmatpush3.bf16.msra.mxu1 %v7121_v31 }
0x180a   : > { %v9489_v23 = vpop.f32.mrb[38].mxu1 }
0x180b   : > { %v3427_v61 = vpop.f32.mrb[39].mxu1 }
0x180e   : > { %v6660_v20 = vpop.f32.mrb[32].mxu0  ;;  %v9491_v35 = vpop.f32.mrb[40].mxu1 }
0x180f   : > { %v3512_v21 = vpop.f32.mrb[33].mxu0  ;;  %v3433_v53 = vpop.f32.mrb[41].mxu1 }
0x1810   : > { %v9493_v57 = vpack.i.bf16 %v6660_v20, %v3512_v21  ;;  %v9495_v22 = vpack.c.bf16 %v6660_v20, %v3512_v21  ;;  %v9497_v0 = vpack.i.bf16 %v3433_v53, %v3427_v61  ;;  %v9499_v54 = vpack.c.bf16 %v3433_v53, %v3427_v61 }
0x1812   : > { %v6667_v63 = vpop.f32.mrb[42].mxu1 }
0x1813   : > { %v3605_v6 = vadd.f32 %v9502_v4, %v6667_v63  ;;  %v3599_v25 = vpop.f32.mrb[43].mxu1 }
0x1814   : > { %v3600_v11 = vadd.f32 %v9506_v9, %v3599_v25 }
0x1815   : > { %v3611_v12 = vsel %vm1167_vm10, %v3605_v6, -inf }
0x1816   : > { %3612 = vmax.xlane.f32.xlu1 %v3611_v12  ;;  %v3608_v14 = vsel %vm1167_vm10, %v3600_v11, -inf }
0x1817   : > { %3609 = vmax.xlane.f32.xlu0 %v3608_v14 }
0x18a3   : > { %v3613_v16 = vpop.xlane.xlu1 %3612 }
0x18a4   : > { %v3615_v19 = vsub.f32 %v3605_v6, %v3613_v16  ;;  %v3610_v26 = vpop.xlane.xlu0 %3609 }
0x18a5   : > { %v3614_v18 = vsub.f32 %v3600_v11, %v3610_v26 }
0x18a6   : > { %v3618_v27 = vmul.f32 1.442695, %v3615_v19 }
0x18a7   : > { %v3616_v8 = vmul.f32 1.442695, %v3614_v18 }
0x18a8   : > { %7780 = vpow2.f32 %v3618_v27 }
0x18a9   : > { %7782 = vpow2.f32 %v3616_v8 }
0x18b2   : > { %v7781_v28 = vpop.eup %7780 }
0x18b3   : > { %v7783_v59 = vpop.eup %7782  ;;  %v3623_v31 = vsel %vm1167_vm10, %v7781_v28, 0.0 }
0x18b4   : > { %3624 = vadd.xlane.f32.xlu1 %v3623_v31  ;;  %v3620_v62 = vsel %vm1167_vm10, %v7783_v59, 0.0 }
0x18b5   : > { %3621 = vadd.xlane.f32.xlu0 %v3620_v62 }
0x18c5   : > { %3711 = vrot.lane.b32.xlu1 %v9468_v13, %s8429_s24 }
0x18c9   : > { %7584 = vrot.lane.b32.xlu1 %v9472_v29, %s8430_s15 }
0x18cb   : > { %7579 = vrot.lane.b32.xlu0 %v9472_v29, %s8429_s24 }
0x18cd   : > { %3713 = vrot.lane.b32.xlu1 %v9470_v7, %s8429_s24 }
0x18cf   : > { %3913 = vrot.lane.b32.xlu0 %v9468_v13, %s8430_s15 }
0x18d1   : > { %3915 = vrot.lane.b32.xlu1 %v9470_v7, %s8430_s15 }
0x1941   : > { %v3625_v52 = vpop.xlane.xlu1 %3624 }
0x1942   : > { %7784 = vrcp.f32 %v3625_v52  ;;  %v3622_v46 = vpop.xlane.xlu0 %3621 }
0x1943   : > { %7786 = vrcp.f32 %v3622_v46 }
0x1945   : > { %v3712_v48 = vpop.permute.xlu1 %3711 }
0x1946   : > { %v7580_v32 = vpop.permute.xlu0 %7579 }
0x1947   : > { %v7582_v50 = vunpack.i.h.bf16 %v7580_v32  ;;  %v7581_v39 = vunpack.i.l.bf16 %v7580_v32 }
0x1949   : > { %v7125_v33 = vpack.c.bf16 %v7582_v50, %v7581_v39  ;;  %v7585_v37 = vpop.permute.xlu1 %7584 }
0x194a   : > { %v7587_v36 = vunpack.i.h.bf16 %v7585_v37  ;;  %v7586_v34 = vunpack.i.l.bf16 %v7585_v37  ;;  %v3914_v10 = vpop.permute.xlu0 %3913 }
0x194b   : > { %7127 = vmatprep.subr.msk.bf16.mxu1 %vm9091_vm9, %v7125_v33  ;;  %6693 = vmatprep.mubr.msk.f32.mxu0 %vm1079_vm8, %v3914_v10 }
0x194c   : > { %v7785_v38 = vpop.eup %7784  ;;  %v7135_v47 = vpack.c.bf16 %v7587_v36, %v7586_v34 }
0x194d   : > { %v7787_v42 = vpop.eup %7786  ;;  %v3629_v56 = vmul.f32 %v7785_v38, %v7781_v28  ;;  %v3714_v45 = vpop.permute.xlu1 %3713 }
0x194e   : > { %7137 = vmatprep.subr.msk.bf16.mxu0 %vm9091_vm9, %v7135_v47  ;;  %v3627_v44 = vmul.f32 %v7787_v42, %v7783_v59 }
0x194f   : > { %7140 = vmatpush3.bf16.xpose.msk.msra.mxu0 %vm9091_vm9, %v7135_v47 }
0x1950   : > { %6672 = vmatprep.mubr.msk.f32.mxu1 %vm1167_vm10, %v3627_v44 }
0x1951   : > { %6673 = vmatmul.mubr.msk.f32.vlgmr.msra.gmra.mrb[44].mxu1 %vm1167_vm10, %v3629_v56  ;;  %v3916_v51 = vpop.permute.xlu1 %3915 }
0x1952   : > { %7130 = vmatpush3.bf16.xpose.msk.msra.mxu1 %vm9091_vm9, %v7125_v33  ;;  %6679 = vmatprep.mubr.msk.f32.mxu1 %vm1079_vm8, %v3712_v48 }
0x1956   : > { %6694 = vmatmul.mubr.msk.f32.vlgmr.msra.gmra.mrb[34].mxu0 %vm1079_vm8, %v3916_v51 }
0x1959   : > { %6680 = vmatmul.mubr.msk.f32.vlgmr.msra.gmra.mrb[46].mxu1 %vm1079_vm8, %v3714_v45 }
0x1a24   : > { %v9539_v60 = vpop.f32.mrb[44].mxu1 }
0x1a25   : > { %v9541_v55 = vpop.f32.mrb[45].mxu1 }
0x1a29   : > { %v6695_v5 = vpop.f32.mrb[34].mxu0 }
0x1a2a   : > { %v3995_v24 = vpop.f32.mrb[35].mxu0  ;;  %v4001_v25 = vadd.f32 %v9502_v4, %v6695_v5 }
0x1a2b   : > { %v3996_v63 = vadd.f32 %v9506_v9, %v3995_v24 }
0x1a2c   : > { %v6681_v1 = vpop.f32.mrb[46].mxu1  ;;  %v4007_v12 = vsel %vm1167_vm10, %v4001_v25, -inf }
0x1a2d   : > { %v3799_v61 = vadd.f32 %v9502_v4, %v6681_v1  ;;  %v3793_v20 = vpop.f32.mrb[47].mxu1  ;;  %v4004_v11 = vsel %vm1167_vm10, %v3996_v63, -inf }
0x1a2e   : > { %v3794_v21 = vadd.f32 %v9506_v9, %v3793_v20 }
0x1a2f   : > { %v3805_v53 = vsel %vm1167_vm10, %v3799_v61, -inf }
0x1a30   : > { %3806 = vmax.xlane.f32.xlu1 %v3805_v53  ;;  %v3802_v6 = vsel %vm1167_vm10, %v3794_v21, -inf }
0x1a31   : > { %3803 = vmax.xlane.f32.xlu0 %v3802_v6 }
0x1a35   : > { %4005 = vmax.xlane.f32.xlu0 %v4004_v11 }
0x1a39   : > { %4008 = vmax.xlane.f32.xlu0 %v4007_v12 }
0x1abd   : > { %v3807_v19 = vpop.xlane.xlu1 %3806 }
0x1abe   : > { %v3804_v14 = vpop.xlane.xlu0 %3803  ;;  %v3809_v27 = vsub.f32 %v3799_v61, %v3807_v19 }
0x1abf   : > { %v3808_v16 = vsub.f32 %v3794_v21, %v3804_v14 }
0x1ac0   : > { %v3812_v62 = vmul.f32 1.442695, %v3809_v27 }
0x1ac1   : > { %v3810_v8 = vmul.f32 1.442695, %v3808_v16 }
0x1ac2   : > { %v4006_v26 = vpop.xlane.xlu0 %4005 }
0x1ac3   : > { %v4010_v18 = vsub.f32 %v3996_v63, %v4006_v26 }
0x1ac5   : > { %v4012_v28 = vmul.f32 1.442695, %v4010_v18 }
0x1ac6   : > { %v4009_v59 = vpop.xlane.xlu0 %4008 }
0x1ac7   : > { %7788 = vpow2.f32 %v4012_v28  ;;  %v4011_v31 = vsub.f32 %v4001_v25, %v4009_v59 }
0x1ac8   : > { %7790 = vpow2.f32 %v3810_v8 }
0x1ac9   : > { %v4014_v52 = vmul.f32 1.442695, %v4011_v31 }
0x1acb   : > { %7792 = vpow2.f32 %v4014_v52 }
0x1acc   : > { %7794 = vpow2.f32 %v3812_v62 }
0x1ad1   : > { %v7789_v46 = vpop.eup %7788 }
0x1ad2   : > { %v4016_v48 = vsel %vm1167_vm10, %v7789_v46, 0.0  ;;  %v7791_v32 = vpop.eup %7790 }
0x1ad3   : > { %4017 = vadd.xlane.f32.xlu0 %v4016_v48  ;;  %v3814_v39 = vsel %vm1167_vm10, %v7791_v32, 0.0 }
0x1ad5   : > { %v7793_v50 = vpop.eup %7792 }
0x1ad6   : > { %v4019_v33 = vsel %vm1167_vm10, %v7793_v50, 0.0  ;;  %v7795_v37 = vpop.eup %7794 }
0x1ad7   : > { %3815 = vadd.xlane.f32.xlu0 %v3814_v39  ;;  %4020 = vadd.xlane.f32.xlu1 %v4019_v33  ;;  %v3817_v36 = vsel %vm1167_vm10, %v7795_v37, 0.0 }
0x1adb   : > { %3818 = vadd.xlane.f32.xlu1 %v3817_v36 }
0x1aec   : > { %7594 = vrot.lane.b32.xlu1 %v9474_v30, %s8430_s15 }
0x1aed   : > { %7589 = vrot.lane.b32.xlu0 %v9474_v30, %s8429_s24 }
0x1af0   : > { %7599 = vrot.lane.b32.xlu1 %v9472_v29, %s8431_s9 }
0x1af1   : > { %4115 = vrot.lane.b32.xlu0 %v9470_v7, %s8431_s9 }
0x1af4   : > { %4113 = vrot.lane.b32.xlu1 %v9468_v13, %s8431_s9 }
0x1b60   : > { %v4018_v34 = vpop.xlane.xlu0 %4017 }
0x1b64   : > { %v4021_v10 = vpop.xlane.xlu1 %4020  ;;  %v3816_v38 = vpop.xlane.xlu0 %3815 }
0x1b65   : > { %7796 = vrcp.f32 %v3816_v38 }
0x1b66   : > { %7798 = vrcp.f32 %v4018_v34 }
0x1b68   : > { %v3819_v47 = vpop.xlane.xlu1 %3818  ;;  %v7590_v42 = vpop.permute.xlu0 %7589 }
0x1b69   : > { %7800 = vrcp.f32 %v3819_v47  ;;  %v7592_v44 = vunpack.i.h.bf16 %v7590_v42  ;;  %v7591_v56 = vunpack.i.l.bf16 %v7590_v42 }
0x1b6a   : > { %7802 = vrcp.f32 %v4021_v10 }
0x1b6b   : > { %v7131_v45 = vpack.c.bf16 %v7592_v44, %v7591_v56 }
0x1b6c   : > { %v7595_v51 = vpop.permute.xlu1 %7594  ;;  %v4116_v16 = vpop.permute.xlu0 %4115 }
0x1b6d   : > { %v7597_v29 = vunpack.i.h.bf16 %v7595_v51  ;;  %v7596_v5 = vunpack.i.l.bf16 %v7595_v51  ;;  %7132 = vmatprep.subr.bf16.mxu1 %v7131_v45 }
0x1b6e   : > { %7134 = vmatpush3.bf16.msra.mxu1 %v7131_v45 }
0x1b6f   : > { %v7141_v7 = vpack.c.bf16 %v7597_v29, %v7596_v5  ;;  %v7797_v24 = vpop.eup %7796 }
0x1b70   : > { %v7600_v13 = vpop.permute.xlu1 %7599  ;;  %v3821_v1 = vmul.f32 %v7797_v24, %v7791_v32  ;;  %v7799_v61 = vpop.eup %7798 }
0x1b71   : > { %7142 = vmatprep.subr.bf16.mxu1 %v7141_v7  ;;  %v7602_v20 = vunpack.i.h.bf16 %v7600_v13  ;;  %v7601_v21 = vunpack.i.l.bf16 %v7600_v13  ;;  %v4023_v25 = vmul.f32 %v7799_v61, %v7789_v46 }
0x1b72   : > { %6686 = vmatprep.mubr.msk.f32.mxu1 %vm1167_vm10, %v3821_v1 }
0x1b73   : > { %v7801_v53 = vpop.eup %7800  ;;  %v7145_v11 = vpack.c.bf16 %v7602_v20, %v7601_v21 }
0x1b74   : > { %v3823_v63 = vmul.f32 %v7801_v53, %v7795_v37  ;;  %v7803_v6 = vpop.eup %7802  ;;  %v4114_v14 = vpop.permute.xlu1 %4113 }
0x1b75   : > { %v4025_v12 = vmul.f32 %v7803_v6, %v7793_v50 }
0x1b76   : > { %6687 = vmatmul.mubr.msk.f32.vlgmr.msra.gmra.mrb[48].mxu1 %vm1167_vm10, %v3823_v63  ;;  %v9622_v63 = vld [vmem:[%s9005_s0 + $0x10] sm:$0xff] }
0x1b77   : > { %7144 = vmatpush3.bf16.msra.mxu1 %v7141_v7  ;;  %6700 = vmatprep.mubr.msk.f32.mxu1 %vm1167_vm10, %v4023_v25 }
0x1b78   : > { %7147 = vmatprep.subr.msk.bf16.mxu1 %vm9091_vm9, %v7145_v11 }
0x1b7a   : > { %6701 = vmatmul.mubr.msk.f32.vlgmr.msra.gmra.mrb[50].mxu1 %vm1167_vm10, %v4025_v12 }
0x1b7b   : > { %6707 = vmatprep.mubr.msk.f32.mxu1 %vm1079_vm8, %v4114_v14 }
0x1b80   : > { %7150 = vmatpush3.bf16.xpose.msk.msra.mxu1 %vm9091_vm9, %v7145_v11 }
0x1b81   : > { %7162 = vmatprep.subr.bf16.mxu1 %v9495_v22 }
0x1b87   : > { %6708 = vmatmul.mubr.msk.f32.vlgmr.msra.gmra.mrb[52].mxu1 %vm1079_vm8, %v4116_v16 }
0x1b88   : > { %7164 = vmatpush3.bf16.msra.mxu1 %v9495_v22 }
0x1c49   : > { %v9577_v19 = vpop.f32.mrb[48].mxu1 }
0x1c4a   : > { %v9579_v26 = vpop.f32.mrb[49].mxu1 }
0x1c4b   : > { %v7638_v18 = vpack.i.bf16 %v9577_v19, %v9579_v26 }
0x1c4d   : > { %v9583_v27 = vpop.f32.mrb[50].mxu1 }
0x1c4e   : > { %v9585_v8 = vpop.f32.mrb[51].mxu1 }
0x1c4f   : > { %v7643_v28 = vpack.i.bf16 %v9583_v27, %v9585_v8 }
0x1c5a   : > { %v6709_v59 = vpop.f32.mrb[52].mxu1 }
0x1c5b   : > { %v4201_v31 = vadd.f32 %v9502_v4, %v6709_v59  ;;  %v4195_v62 = vpop.f32.mrb[53].mxu1 }
0x1c5c   : > { %v4196_v22 = vadd.f32 %v9506_v9, %v4195_v62 }
0x1c5d   : > { %v4207_v52 = vsel %vm1167_vm10, %v4201_v31, -inf }
0x1c5e   : > { %4208 = vmax.xlane.f32.xlu0 %v4207_v52  ;;  %v4204_v46 = vsel %vm1167_vm10, %v4196_v22, -inf }
0x1c5f   : > { %4205 = vmax.xlane.f32.xlu1 %v4204_v46 }
0x1c70   : > { %7604 = vrot.lane.b32.xlu1 %v9474_v30, %s8431_s9 }
0x1c74   : > { %7609 = vrot.lane.b32.xlu1 %v9497_v0, %s8429_s24 }
0x1c78   : > { %4535 = vrot.lane.b32.xlu1 %v9491_v35, %s8429_s24 }
0x1ceb   : > { %v4209_v48 = vpop.xlane.xlu0 %4208 }
0x1cec   : > { %v4211_v4 = vsub.f32 %v4201_v31, %v4209_v48  ;;  %v4206_v32 = vpop.xlane.xlu1 %4205 }
0x1ced   : > { %v4210_v50 = vsub.f32 %v4196_v22, %v4206_v32 }
0x1cee   : > { %v4214_v9 = vmul.f32 1.442695, %v4211_v4 }
0x1cef   : > { %v4212_v39 = vmul.f32 1.442695, %v4210_v50 }
0x1cf0   : > { %v7605_v33 = vpop.permute.xlu1 %7604 }
0x1cf1   : > { %7804 = vpow2.f32 %v4212_v39  ;;  %v7607_v37 = vunpack.i.h.bf16 %v7605_v33  ;;  %v7606_v36 = vunpack.i.l.bf16 %v7605_v33 }
0x1cf2   : > { %7806 = vpow2.f32 %v4214_v9 }
0x1cf3   : > { %v7151_v34 = vpack.c.bf16 %v7607_v37, %v7606_v36 }
0x1cf4   : > { %v7610_v10 = vpop.permute.xlu1 %7609 }
0x1cf5   : > { %v7612_v30 = vunpack.i.h.bf16 %v7610_v10  ;;  %v7611_v38 = vunpack.i.l.bf16 %v7610_v10  ;;  %7152 = vmatprep.subr.bf16.mxu0 %v7151_v34 }
0x1cf6   : > { %7154 = vmatpush3.bf16.msra.mxu0 %v7151_v34 }
0x1cf7   : > { %v7165_v47 = vpack.c.bf16 %v7612_v30, %v7611_v38  ;;  %7157 = vmatprep.subr.msk.bf16.mxu0 %vm9091_vm9, %v9499_v54 }
0x1cf8   : > { %v4536_v34 = vpop.permute.xlu1 %4535 }
0x1cf9   : > { %7167 = vmatprep.subr.msk.bf16.mxu1 %vm9091_vm9, %v7165_v47 }
0x1cfb   : > { %v7805_v42 = vpop.eup %7804 }
0x1cfc   : > { %v4216_v44 = vsel %vm1167_vm10, %v7805_v42, 0.0  ;;  %v7807_v56 = vpop.eup %7806 }
0x1cfd   : > { %4217 = vadd.xlane.f32.xlu0 %v4216_v44  ;;  %v4219_v45 = vsel %vm1167_vm10, %v7807_v56, 0.0 }
0x1d01   : > { %4220 = vadd.xlane.f32.xlu0 %v4219_v45 }
0x1d8a   : > { %v4218_v51 = vpop.xlane.xlu0 %4217 }
0x1d8b   : > { %7808 = vrcp.f32 %v4218_v51 }
0x1d8e   : > { %v4221_v29 = vpop.xlane.xlu0 %4220 }
0x1d8f   : > { %7810 = vrcp.f32 %v4221_v29 }
0x1d95   : > { %v7809_v5 = vpop.eup %7808 }
0x1d96   : > { %v4223_v7 = vmul.f32 %v7809_v5, %v7805_v42 }
0x1d98   : > { %6714 = vmatprep.mubr.msk.f32.mxu0 %vm1167_vm10, %v4223_v7 }
0x1d99   : > { %v7811_v24 = vpop.eup %7810 }
0x1d9a   : > { %v4225_v13 = vmul.f32 %v7811_v24, %v7807_v56 }
0x1d9c   : > { %6715 = vmatmul.mubr.msk.f32.vlgmr.msra.gmra.mrb[36].mxu0 %vm1167_vm10, %v4225_v13 }
0x1d9d   : > { %7160 = vmatpush3.bf16.xpose.msk.msra.mxu0 %vm9091_vm9, %v9499_v54  ;;  %6721 = vmatprep.mubr.msk.f32.mxu0 %vm1079_vm8, %v9489_v23  ;;  %v9626_v54 = vld [vmem:[%s9005_s0 + $0x18] sm:$0xff] }
0x1da4   : > { %6722 = vmatmul.mubr.msk.f32.vlgmr.msra.gmra.mrb[38].mxu0 %vm1079_vm8, %v9491_v35 }
0x1e6f   : > { %v9615_v1 = vpop.f32.mrb[36].mxu0 }
0x1e70   : > { %v9617_v61 = vpop.f32.mrb[37].mxu0 }
0x1e71   : > { %v7648_v20 = vpack.i.bf16 %v9615_v1, %v9617_v61 }
0x1e77   : > { %v6723_v21 = vpop.f32.mrb[38].mxu0 }
0x1e78   : > { %v4421_v53 = vpop.f32.mrb[39].mxu0  ;;  %v4427_v25 = vadd.f32 %v9626_v54, %v6723_v21 }
0x1e79   : > { %v4422_v6 = vadd.f32 %v9622_v63, %v4421_v53 }
0x1e7a   : > { %v4433_v12 = vsel %vm1167_vm10, %v4427_v25, -inf }
0x1e7b   : > { %v4430_v11 = vsel %vm1167_vm10, %v4422_v6, -inf }
0x1e7c   : > { %4431 = vmax.xlane.f32.xlu0 %v4430_v11 }
0x1e80   : > { %4434 = vmax.xlane.f32.xlu0 %v4433_v12 }
0x1f09   : > { %v4432_v14 = vpop.xlane.xlu0 %4431 }
0x1f0a   : > { %v4436_v16 = vsub.f32 %v4422_v6, %v4432_v14 }
0x1f0c   : > { %v4438_v59 = vmul.f32 1.442695, %v4436_v16 }
0x1f0d   : > { %v4435_v31 = vpop.xlane.xlu0 %4434 }
0x1f0e   : > { %7812 = vpow2.f32 %v4438_v59  ;;  %v4437_v62 = vsub.f32 %v4427_v25, %v4435_v31 }
0x1f10   : > { %v4440_v22 = vmul.f32 1.442695, %v4437_v62 }
0x1f12   : > { %7814 = vpow2.f32 %v4440_v22 }
0x1f18   : > { %v7813_v52 = vpop.eup %7812 }
0x1f19   : > { %v4442_v46 = vsel %vm1167_vm10, %v7813_v52, 0.0 }
0x1f1a   : > { %4443 = vadd.xlane.f32.xlu0 %v4442_v46 }
0x1f1c   : > { %v7815_v48 = vpop.eup %7814 }
0x1f1d   : > { %v4445_v4 = vsel %vm1167_vm10, %v7815_v48, 0.0 }
0x1f1e   : > { %4446 = vadd.xlane.f32.xlu0 %v4445_v4 }
0x1f34   : > { %4533 = vrot.lane.b32.xlu0 %v9489_v23, %s8429_s24 }
0x1fa7   : > { %v4444_v32 = vpop.xlane.xlu0 %4443 }
0x1fa8   : > { %7816 = vrcp.f32 %v4444_v32 }
0x1fab   : > { %v4447_v50 = vpop.xlane.xlu0 %4446 }
0x1fac   : > { %7818 = vrcp.f32 %v4447_v50 }
0x1faf   : > { %v4534_v36 = vpop.permute.xlu0 %4533 }
0x1fb2   : > { %v7817_v9 = vpop.eup %7816 }
0x1fb3   : > { %v4449_v39 = vmul.f32 %v7817_v9, %v7813_v52 }
0x1fb5   : > { %6728 = vmatprep.mubr.msk.f32.mxu1 %vm1167_vm10, %v4449_v39 }
0x1fb6   : > { %v7819_v33 = vpop.eup %7818 }
0x1fb7   : > { %v4451_v37 = vmul.f32 %v7819_v33, %v7815_v48 }
0x1fb9   : > { %6729 = vmatmul.mubr.msk.f32.vlgmr.msra.gmra.mrb[54].mxu1 %vm1167_vm10, %v4451_v37 }
0x1fba   : > { %7170 = vmatpush3.bf16.xpose.msk.msra.mxu1 %vm9091_vm9, %v7165_v47  ;;  %6735 = vmatprep.mubr.msk.f32.mxu1 %vm1079_vm8, %v4534_v36 }
0x1fc1   : > { %6736 = vmatmul.mubr.msk.f32.vlgmr.msra.gmra.mrb[56].mxu1 %vm1079_vm8, %v4536_v34 }
0x208c   : > { %v9641_v10 = vpop.f32.mrb[54].mxu1 }
0x208d   : > { %v9643_v30 = vpop.f32.mrb[55].mxu1 }
0x2094   : > { %v6737_v38 = vpop.f32.mrb[56].mxu1 }
0x2095   : > { %v4621_v42 = vadd.f32 %v9626_v54, %v6737_v38  ;;  %v4615_v44 = vpop.f32.mrb[57].mxu1 }
0x2096   : > { %v4616_v56 = vadd.f32 %v9622_v63, %v4615_v44 }
0x2097   : > { %v4627_v45 = vsel %vm1167_vm10, %v4621_v42, -inf }
0x2098   : > { %4628 = vmax.xlane.f32.xlu0 %v4627_v45  ;;  %v4624_v47 = vsel %vm1167_vm10, %v4616_v56, -inf }
0x2099   : > { %4625 = vmax.xlane.f32.xlu1 %v4624_v47 }
0x20aa   : > { %7614 = vrot.lane.b32.xlu1 %v9493_v57, %s8429_s24 }
0x20ae   : > { %7619 = vrot.lane.b32.xlu0 %v9497_v0, %s8430_s15  ;;  %4735 = vrot.lane.b32.xlu1 %v9489_v23, %s8430_s15 }
0x2125   : > { %v4629_v51 = vpop.xlane.xlu0 %4628 }
0x2126   : > { %v4631_v29 = vsub.f32 %v4621_v42, %v4629_v51  ;;  %v4626_v5 = vpop.xlane.xlu1 %4625 }
0x2127   : > { %v4630_v7 = vsub.f32 %v4616_v56, %v4626_v5 }
0x2128   : > { %v4634_v24 = vmul.f32 1.442695, %v4631_v29 }
0x2129   : > { %v4632_v13 = vmul.f32 1.442695, %v4630_v7  ;;  %v7620_v21 = vpop.permute.xlu0 %7619 }
0x212a   : > { %7820 = vpow2.f32 %v4634_v24  ;;  %v7615_v53 = vpop.permute.xlu1 %7614  ;;  %v7622_v6 = vunpack.i.h.bf16 %v7620_v21  ;;  %v7621_v25 = vunpack.i.l.bf16 %v7620_v21 }
0x212b   : > { %v7617_v11 = vunpack.i.h.bf16 %v7615_v53  ;;  %v7616_v12 = vunpack.i.l.bf16 %v7615_v53  ;;  %7822 = vpow2.f32 %v4632_v13 }
0x212c   : > { %v7175_v16 = vpack.c.bf16 %v7622_v6, %v7621_v25 }
0x212d   : > { %v7171_v14 = vpack.c.bf16 %v7617_v11, %v7616_v12 }
0x212e   : > { %v4736_v52 = vpop.permute.xlu1 %4735 }
0x212f   : > { %7172 = vmatprep.subr.bf16.mxu0 %v7171_v14 }
0x2130   : > { %7174 = vmatpush3.bf16.msra.mxu0 %v7171_v14 }
0x2131   : > { %7177 = vmatprep.subr.msk.bf16.mxu0 %vm9091_vm9, %v7175_v16 }
0x2134   : > { %v7821_v59 = vpop.eup %7820 }
0x2135   : > { %v4639_v31 = vsel %vm1167_vm10, %v7821_v59, 0.0  ;;  %v7823_v62 = vpop.eup %7822 }
0x2136   : > { %4640 = vadd.xlane.f32.xlu1 %v4639_v31  ;;  %v4636_v22 = vsel %vm1167_vm10, %v7823_v62, 0.0 }
0x213a   : > { %4637 = vadd.xlane.f32.xlu1 %v4636_v22 }
0x214b   : > { %4737 = vrot.lane.b32.xlu1 %v9491_v35, %s8430_s15 }
0x21c3   : > { %v4641_v46 = vpop.xlane.xlu1 %4640 }
0x21c4   : > { %7824 = vrcp.f32 %v4641_v46 }
0x21c7   : > { %v4638_v48 = vpop.xlane.xlu1 %4637 }
0x21c8   : > { %7826 = vrcp.f32 %v4638_v48 }
0x21cb   : > { %v4738_v39 = vpop.permute.xlu1 %4737 }
0x21ce   : > { %v7825_v4 = vpop.eup %7824 }
0x21cf   : > { %v4645_v9 = vmul.f32 %v7825_v4, %v7821_v59 }
0x21d2   : > { %v7827_v32 = vpop.eup %7826 }
0x21d3   : > { %v4643_v50 = vmul.f32 %v7827_v32, %v7823_v62 }
0x21d5   : > { %6742 = vmatprep.mubr.msk.f32.mxu0 %vm1167_vm10, %v4643_v50 }
0x21d6   : > { %6743 = vmatmul.mubr.msk.f32.vlgmr.msra.gmra.mrb[40].mxu0 %vm1167_vm10, %v4645_v9 }
0x21d7   : > { %7180 = vmatpush3.bf16.xpose.msk.msra.mxu0 %vm9091_vm9, %v7175_v16  ;;  %6749 = vmatprep.mubr.msk.f32.mxu0 %vm1079_vm8, %v4736_v52 }
0x21de   : > { %6750 = vmatmul.mubr.msk.f32.vlgmr.msra.gmra.mrb[42].mxu0 %vm1079_vm8, %v4738_v39 }
0x22a9   : > { %v9667_v33 = vpop.f32.mrb[40].mxu0 }
0x22aa   : > { %v9669_v37 = vpop.f32.mrb[41].mxu0 }
0x22ab   : > { %v7653_v36 = vpack.i.bf16 %v9667_v33, %v9669_v37  ;;  %v5166_v37 = vld [vmem:[#allocation10 + $0x80] sm:$0xff] }
0x22b1   : > { %v6751_v34 = vpop.f32.mrb[42].mxu0 }
0x22b2   : > { %v4823_v38 = vadd.f32 %v9626_v54, %v6751_v34  ;;  %v4817_v42 = vpop.f32.mrb[43].mxu0 }
0x22b3   : > { %v4818_v44 = vadd.f32 %v9622_v63, %v4817_v42 }
0x22b4   : > { %v4829_v56 = vsel %vm1167_vm10, %v4823_v38, -inf }
0x22b5   : > { %4830 = vmax.xlane.f32.xlu0 %v4829_v56  ;;  %v4826_v45 = vsel %vm1167_vm10, %v4818_v44, -inf }
0x22b6   : > { %4827 = vmax.xlane.f32.xlu1 %v4826_v45 }
0x22c7   : > { %7624 = vrot.lane.b32.xlu1 %v9493_v57, %s8430_s15 }
0x22cb   : > { %4935 = vrot.lane.b32.xlu1 %v9489_v23, %s8431_s9 }
0x22cf   : > { %4937 = vrot.lane.b32.xlu1 %v9491_v35, %s8431_s9 }
0x2342   : > { %v4831_v47 = vpop.xlane.xlu0 %4830 }
0x2343   : > { %v4833_v51 = vsub.f32 %v4823_v38, %v4831_v47  ;;  %v4828_v29 = vpop.xlane.xlu1 %4827 }
0x2344   : > { %v4832_v5 = vsub.f32 %v4818_v44, %v4828_v29 }
0x2345   : > { %v4836_v7 = vmul.f32 1.442695, %v4833_v51 }
0x2346   : > { %v4834_v24 = vmul.f32 1.442695, %v4832_v5 }
0x2347   : > { %7828 = vpow2.f32 %v4836_v7  ;;  %v7625_v13 = vpop.permute.xlu1 %7624 }
0x2348   : > { %v7627_v21 = vunpack.i.h.bf16 %v7625_v13  ;;  %v7626_v53 = vunpack.i.l.bf16 %v7625_v13  ;;  %7830 = vpow2.f32 %v4834_v24 }
0x234a   : > { %v7181_v6 = vpack.c.bf16 %v7627_v21, %v7626_v53 }
0x234b   : > { %v4936_v4 = vpop.permute.xlu1 %4935 }
0x234c   : > { %7182 = vmatprep.subr.bf16.mxu1 %v7181_v6 }
0x234d   : > { %7184 = vmatpush3.bf16.msra.mxu1 %v7181_v6 }
0x2351   : > { %v7829_v25 = vpop.eup %7828 }
0x2352   : > { %v4841_v23 = vsel %vm1167_vm10, %v7829_v25, 0.0  ;;  %v7831_v11 = vpop.eup %7830 }
0x2353   : > { %4842 = vadd.xlane.f32.xlu0 %v4841_v23  ;;  %v4838_v35 = vsel %vm1167_vm10, %v7831_v11, 0.0  ;;  %v5169_v23 = vld [vmem:[#allocation10 + $0x98] sm:$0xff] }
0x2357   : > { %4839 = vadd.xlane.f32.xlu0 %v4838_v35 }
0x236d   : > { %7629 = vrot.lane.b32.xlu0 %v9497_v0, %s8431_s9  ;;  %v4938_v0 = vpop.permute.xlu1 %4937 }
0x23e0   : > { %v4843_v12 = vpop.xlane.xlu0 %4842 }
0x23e1   : > { %7832 = vrcp.f32 %v4843_v12 }
0x23e4   : > { %v4840_v14 = vpop.xlane.xlu0 %4839 }
0x23e5   : > { %7834 = vrcp.f32 %v4840_v14 }
0x23e8   : > { %v7630_v16 = vpop.permute.xlu0 %7629 }
0x23e9   : > { %v7632_v59 = vunpack.i.h.bf16 %v7630_v16  ;;  %v7631_v31 = vunpack.i.l.bf16 %v7630_v16 }
0x23eb   : > { %v7185_v62 = vpack.c.bf16 %v7632_v59, %v7631_v31  ;;  %v7833_v22 = vpop.eup %7832  ;;  %v5170_v59 = vld [vmem:[#allocation10 + $0xa0] sm:$0xff]  ;;  %v5171_v31 = vld [vmem:[#allocation10 + $0xa8] sm:$0xff] }
0x23ec   : > { %v4847_v48 = vmul.f32 %v7833_v22, %v7829_v25  ;;  %v5172_v22 = vld [vmem:[#allocation10 + $0xb0] sm:$0xff] }
0x23ed   : > { %7187 = vmatprep.subr.msk.bf16.mxu1 %vm9091_vm9, %v7185_v62 }
0x23ef   : > { %v7835_v52 = vpop.eup %7834 }
0x23f0   : > { %v4845_v46 = vmul.f32 %v7835_v52, %v7831_v11  ;;  %v5173_v52 = vld [vmem:[#allocation10 + $0xb8] sm:$0xff] }
0x23f2   : > { %6756 = vmatprep.mubr.msk.f32.mxu1 %vm1167_vm10, %v4845_v46  ;;  %v7207_v46 = vpack.c.bf16 %v5173_v52, %v5172_v22  ;;  %v5368_v22 = vld [vmem:[#allocation17 + $0x100] sm:$0xff] }
0x23f3   : > { %6757 = vmatmul.mubr.msk.f32.vlgmr.msra.gmra.mrb[58].mxu1 %vm1167_vm10, %v4847_v48  ;;  %v5174_v48 = vld [vmem:[#allocation10 + $0xc0] sm:$0xff] }
0x23f4   : > { %7190 = vmatpush3.bf16.xpose.msk.msra.mxu1 %vm9091_vm9, %v7185_v62  ;;  %6763 = vmatprep.mubr.msk.f32.mxu1 %vm1079_vm8, %v4936_v4  ;;  %v5175_v4 = vld [vmem:[#allocation10 + $0xc8] sm:$0xff] }
0x23fb   : > { %6764 = vmatmul.mubr.msk.f32.vlgmr.msra.gmra.mrb[60].mxu1 %vm1079_vm8, %v4938_v0  ;;  %v7211_v0 = vpack.c.bf16 %v5175_v4, %v5174_v48  ;;  %v5375_v48 = vld [vmem:[#allocation17 + $0x138] sm:$0xff] }
0x23fc   : > { %5477 = vmatprep.mubr.f32.mxu1 %v8428_v15 }
0x24c6   : > { %v6758_v32 = vpop.f32.mrb[58].mxu1 }
0x24c7   : > { %v4926_v50 = vpop.f32.mrb[59].mxu1 }
0x24c8   : > { %v7658_v9 = vpack.i.bf16 %v6758_v32, %v4926_v50  ;;  %v5176_v32 = vld [vmem:[#allocation10 + $0xd0] sm:$0xff]  ;;  %v5177_v50 = vld [vmem:[#allocation10 + $0xd8] sm:$0xff] }
0x24ce   : > { %v6765_v39 = vpop.f32.mrb[60].mxu1 }
0x24cf   : > { %v5023_v34 = vadd.f32 %v9626_v54, %v6765_v39  ;;  %v5017_v38 = vpop.f32.mrb[61].mxu1  ;;  %v5178_v39 = vld [vmem:[#allocation10 + $0xe0] sm:$0xff] }
0x24d0   : > { %v5018_v42 = vadd.f32 %v9622_v63, %v5017_v38 }
0x24d1   : > { %v5029_v44 = vsel %vm1167_vm10, %v5023_v34, -inf }
0x24d2   : > { %5030 = vmax.xlane.f32.xlu0 %v5029_v44  ;;  %v5026_v43 = vsel %vm1167_vm10, %v5018_v42, -inf  ;;  %v5181_v44 = vld [vmem:[#allocation10 + $0xf8] sm:$0xff] }
0x24d3   : > { %5027 = vmax.xlane.f32.xlu1 %v5026_v43 }
0x24e4   : > { %7634 = vrot.lane.b32.xlu1 %v9493_v57, %s8431_s9 }
0x24e8   : > { %7644 = vrot.lane.b32.xlu1 %v7643_v28, %s8430_s15 }
0x24ec   : > { %7649 = vrot.lane.b32.xlu1 %v7648_v20, %s8429_s24 }
0x24f0   : > { %7654 = vrot.lane.b32.xlu1 %v7653_v36, %s8431_s9  ;;  %v5167_v36 = vld [vmem:[#allocation10 + $0x88] sm:$0xff] }
0x24f1   : > { %v7195_v29 = vpack.c.bf16 %v5167_v36, %v5166_v37 }
0x255f   : > { %v5031_v63 = vpop.xlane.xlu0 %5030 }
0x2560   : > { %v5033_v54 = vsub.f32 %v5023_v34, %v5031_v63  ;;  %v5028_v56 = vpop.xlane.xlu1 %5027  ;;  %v5179_v34 = vld [vmem:[#allocation10 + $0xe8] sm:$0xff] }
0x2561   : > { %v5032_v45 = vsub.f32 %v5018_v42, %v5028_v56  ;;  %v7219_v38 = vpack.c.bf16 %v5179_v34, %v5178_v39  ;;  %v5180_v42 = vld [vmem:[#allocation10 + $0xf0] sm:$0xff]  ;;  %v5376_v34 = vld [vmem:[#allocation17 + $0x140] sm:$0xff] }
0x2562   : > { %v5036_v57 = vmul.f32 1.442695, %v5033_v54  ;;  %v7223_v63 = vpack.c.bf16 %v5181_v44, %v5180_v42  ;;  %v5381_v44 = vld [vmem:[#allocation17 + $0x168] sm:$0xff] }
0x2563   : > { %v5034_v47 = vmul.f32 1.442695, %v5032_v45 }
0x2564   : > { %v7635_v51 = vpop.permute.xlu1 %7634 }
0x2565   : > { %7836 = vpow2.f32 %v5034_v47  ;;  %v7637_v27 = vunpack.i.h.bf16 %v7635_v51  ;;  %v7636_v8 = vunpack.i.l.bf16 %v7635_v51 }
0x2566   : > { %7838 = vpow2.f32 %v5036_v57 }
0x2567   : > { %v7191_v28 = vpack.c.bf16 %v7637_v27, %v7636_v8 }
0x2568   : > { %v7645_v24 = vpop.permute.xlu1 %7644 }
0x2569   : > { %7192 = vmatprep.subr.bf16.mxu0 %v7191_v28  ;;  %v7646_v19 = vunpack.i.l.bf16 %v7645_v24  ;;  %v7647_v56 = vunpack.i.h.bf16 %v7645_v24 }
0x256a   : > { %7194 = vmatpush3.bf16.msra.mxu0 %v7191_v28 }
0x256b   : > { %7196 = vmatprep.subr.bf16.mxu0 %v7195_v29 }
0x256c   : > { %v7650_v26 = vpop.permute.xlu1 %7649 }
0x256d   : > { %v7651_v12 = vunpack.i.l.bf16 %v7650_v26  ;;  %v7652_v57 = vunpack.i.h.bf16 %v7650_v26 }
0x256f   : > { %v7837_v1 = vpop.eup %7836 }
0x2570   : > { %v5038_v61 = vsel %vm1167_vm10, %v7837_v1, 0.0  ;;  %v7839_v20 = vpop.eup %7838 }
0x2571   : > { %5039 = vadd.xlane.f32.xlu0 %v5038_v61  ;;  %v5041_v33 = vsel %vm1167_vm10, %v7839_v20, 0.0 }
0x2575   : > { %5042 = vadd.xlane.f32.xlu0 %v5041_v33 }
0x258b   : > { %7639 = vrot.lane.b32.xlu0 %v7638_v18, %s8431_s9  ;;  %v5168_v18 = vld [vmem:[#allocation10 + $0x90] sm:$0xff] }
0x258c   : > { %v7199_v16 = vpack.c.bf16 %v5169_v23, %v5168_v18 }
0x258f   : > { %7659 = vrot.lane.b32.xlu0 %v7658_v9, %s8430_s15  ;;  %v7215_v9 = vpack.c.bf16 %v5177_v50, %v5176_v32  ;;  %v5377_v50 = vld [vmem:[#allocation17 + $0x148] sm:$0xff] }
0x25fe   : > { %v5040_v5 = vpop.xlane.xlu0 %5039 }
0x25ff   : > { %7840 = vrcp.f32 %v5040_v5 }
0x2602   : > { %v5043_v7 = vpop.xlane.xlu0 %5042 }
0x2603   : > { %7842 = vrcp.f32 %v5043_v7 }
0x2606   : > { %v7640_v13 = vpop.permute.xlu0 %7639 }
0x2607   : > { %v7641_v21 = vunpack.i.l.bf16 %v7640_v13  ;;  %v7642_v43 = vunpack.i.h.bf16 %v7640_v13 }
0x2609   : > { %v7841_v53 = vpop.eup %7840  ;;  %v4337_v25 = vsel %vm1079_vm8, %v9541_v55, %v7641_v21  ;;  %v7203_v55 = vpack.c.bf16 %v5171_v31, %v5170_v59  ;;  %v4338_v54 = vsel %vm1079_vm8, %v9539_v60, %v7642_v43  ;;  %v5369_v31 = vld [vmem:[#allocation17 + $0x108] sm:$0xff]  ;;  %v5383_v43 = vld [vmem:[#allocation17 + $0x178] sm:$0xff] }
0x260a   : > { %v5045_v6 = vmul.f32 %v7841_v53, %v7837_v1  ;;  %v4339_v35 = vsel %vm1899_vm11, %v4337_v25, %v7646_v19  ;;  %v4340_v45 = vsel %vm1899_vm11, %v4338_v54, %v7647_v56  ;;  %v7660_v33 = vpop.permute.xlu0 %7659  ;;  %v5380_v54 = vld [vmem:[#allocation17 + $0x160] sm:$0xff]  ;;  %v5382_v56 = vld [vmem:[#allocation17 + $0x170] sm:$0xff] }
0x260b   : > { %v4341_v62 = vsel %vm1902_vm12, %v4339_v35, %v7651_v12  ;;  %v4342_v47 = vsel %vm1902_vm12, %v4340_v45, %v7652_v57  ;;  %v7661_v5 = vunpack.i.l.bf16 %v7660_v33  ;;  %v7241_v45 = vpack.c.bf16 %v5382_v56, %v5380_v54  ;;  %v5385_v57 = vld [vmem:[#allocation17 + $0x188] sm:$0xff]  ;;  %v9778_v56 = vld [vmem:[#allocation14 + $0x1] ss:$0 sm:$0xff] }
0x260c   : > { %6770 = vmatprep.mubr.msk.f32.mxu0 %vm1167_vm10, %v5045_v6 }
0x260d   : > { %v7843_v11 = vpop.eup %7842 }
0x260e   : > { %v5047_v14 = vmul.f32 %v7843_v11, %v7839_v20  ;;  %v7655_v20 = vpop.permute.xlu1 %7654 }
0x260f   : > { %v7657_v37 = vunpack.i.h.bf16 %v7655_v20  ;;  %v7656_v36 = vunpack.i.l.bf16 %v7655_v20  ;;  %v5391_v20 = vld [vmem:[#allocation17 + $0x1b8] sm:$0xff] }
0x2610   : > { %6771 = vmatmul.mubr.msk.f32.vlgmr.msra.gmra.mrb[44].mxu0 %vm1167_vm10, %v5047_v14 }
0x2611   : > { %7198 = vmatpush3.bf16.msra.mxu0 %v7195_v29  ;;  %6805 = vmatprep.mubr.f32.mxu0 %v4341_v62  ;;  %v7662_v29 = vunpack.i.h.bf16 %v7660_v33  ;;  %v5160_v21 = vsel %vm1079_vm8, %v9641_v10, %v7657_v37  ;;  %v5371_v62 = vld [vmem:[#allocation17 + $0x118] sm:$0xff]  ;;  %v5388_v33 = vld [vmem:[#allocation17 + $0x1a0] sm:$0xff]  ;;  %v5390_v37 = vld [vmem:[#allocation17 + $0x1b0] sm:$0xff] }
0x2612   : > { %7200 = vmatprep.subr.bf16.mxu0 %v7199_v16 }
0x2613   : > { %v5162_v53 = vsel %vm1899_vm11, %v5160_v21, %v7662_v29  ;;  %v5393_v29 = vld [vmem:[#allocation17 + $0x1c8] sm:$0xff] }
0x2614   : > { %v5397_v21 = vld [vmem:[#allocation17 + $0x1e8] sm:$0xff] }
0x2615   : > { %7202 = vmatpush3.bf16.msra.mxu0 %v7199_v16 }
0x2616   : > { %7204 = vmatprep.subr.bf16.mxu0 %v7203_v55 }
0x2619   : > { %7206 = vmatpush3.bf16.msra.mxu0 %v7203_v55  ;;  %v7227_v55 = vpack.c.bf16 %v5371_v62, %v5369_v31 }
0x261a   : > { %7208 = vmatprep.subr.bf16.mxu0 %v7207_v46 }
0x261b   : > { %7228 = vmatprep.subr.bf16.mxu1 %v7227_v55 }
0x261d   : > { %7210 = vmatpush3.bf16.msra.mxu0 %v7207_v46  ;;  %v5373_v46 = vld [vmem:[#allocation17 + $0x128] sm:$0xff] }
0x261e   : > { %7212 = vmatprep.subr.bf16.mxu0 %v7211_v0  ;;  %v7231_v4 = vpack.c.bf16 %v5375_v48, %v5373_v46 }
0x2621   : > { %7214 = vmatpush3.bf16.msra.mxu0 %v7211_v0  ;;  %v5372_v0 = vld [vmem:[#allocation17 + $0x120] sm:$0xff] }
0x2622   : > { %7216 = vmatprep.subr.bf16.mxu0 %v7215_v9 }
0x2625   : > { %7218 = vmatpush3.bf16.msra.mxu0 %v7215_v9  ;;  %v5379_v9 = vld [vmem:[#allocation17 + $0x158] sm:$0xff] }
0x2626   : > { %7220 = vmatprep.subr.bf16.mxu0 %v7219_v38  ;;  %v7235_v39 = vpack.c.bf16 %v5379_v9, %v5377_v50 }
0x2629   : > { %7222 = vmatpush3.bf16.msra.mxu0 %v7219_v38  ;;  %v5378_v38 = vld [vmem:[#allocation17 + $0x150] sm:$0xff] }
0x262a   : > { %7224 = vmatprep.subr.bf16.mxu0 %v7223_v63  ;;  %v7237_v42 = vpack.c.bf16 %v5378_v38, %v5376_v34 }
0x262d   : > { %7226 = vmatpush3.bf16.msra.mxu0 %v7223_v63  ;;  %v7239_v63 = vpack.c.bf16 %v5383_v43, %v5381_v44 }
0x2630   : > { %6806 = vmatmul.mubr.f32.vlgmr.msra.gmra.mrb[46].mxu0 %v4342_v47  ;;  %v5387_v47 = vld [vmem:[#allocation17 + $0x198] sm:$0xff] }
0x26e3   : > { %v6772_v51 = vpop.f32.mrb[44].mxu0 }
0x26e4   : > { %v5126_v27 = vpop.f32.mrb[45].mxu0 }
0x26e5   : > { %v7663_v8 = vpack.i.bf16 %v6772_v51, %v5126_v27  ;;  %v7243_v51 = vpack.c.bf16 %v5387_v47, %v5385_v57  ;;  %v5384_v27 = vld [vmem:[#allocation17 + $0x180] sm:$0xff]  ;;  %v9781_v57 = vld [vmem:[#allocation16 + $0x1] ss:$0 sm:$0xff] }
0x26e7   : > { %7664 = vrot.lane.b32.xlu1 %v7663_v8, %s8429_s24  ;;  %v5386_v8 = vld [vmem:[#allocation17 + $0x190] sm:$0xff] }
0x2703   : > { %v6807_v28 = vpop.f32.mrb[46].mxu0 }
0x2704   : > { %v5248_v1 = vpop.f32.mrb[47].mxu0  ;;  %v9737_v60 = vadd.f32 %v6807_v28, %v9427_v41  ;;  %v5389_v28 = vld [vmem:[#allocation17 + $0x1a8] sm:$0xff] }
0x2705   : > { %v9733_v61 = vadd.f32 %v5248_v1, %v9422_v40  ;;  %v5159_v40 = vsel %vm1079_vm8, %v9643_v30, %v7656_v36  ;;  %v7245_v1 = vpack.c.bf16 %v5386_v8, %v5384_v27  ;;  %v7247_v36 = vpack.c.bf16 %v5391_v20, %v5389_v28  ;;  %v5511_v8 = vld [vmem:[#allocation20 + $0x100] sm:$0xff]  ;;  %v5529_v20 = vld [vmem:[#allocation20 + $0x190] sm:$0xff] }
0x2706   : > { %v5161_v41 = vsel %vm1899_vm11, %v5159_v40, %v7661_v5  ;;  %v5395_v5 = vld [vmem:[#allocation17 + $0x1d8] sm:$0xff]  ;;  %v5394_v40 = vld [vmem:[#allocation17 + $0x1d0] sm:$0xff] }
0x2707   : > { %5271 = vadd.xlane.f32.xlu0 %v9733_v61 }
0x270b   : > { %5273 = vadd.xlane.f32.xlu1 %v9737_v60 }
0x2759   : > { %v7665_v7 = vpop.permute.xlu1 %7664 }
0x275a   : > { %v7667_v24 = vunpack.i.h.bf16 %v7665_v7  ;;  %v7666_v13 = vunpack.i.l.bf16 %v7665_v7  ;;  %v7249_v7 = vpack.c.bf16 %v5390_v37, %v5388_v33  ;;  %v5530_v33 = vld [vmem:[#allocation20 + $0x198] sm:$0xff] }
0x275c   : > { %v5163_v6 = vsel %vm1902_vm12, %v5161_v41, %v7666_v13  ;;  %v5164_v25 = vsel %vm1902_vm12, %v5162_v53, %v7667_v24  ;;  %v7251_v24 = vpack.c.bf16 %v5395_v5, %v5393_v29  ;;  %v5392_v13 = vld [vmem:[#allocation17 + $0x1c0] sm:$0xff]  ;;  %v5399_v41 = vld [vmem:[#allocation17 + $0x1f8] sm:$0xff] }
0x275d   : > { %6808 = vmatprep.mubr.f32.mxu0 %v5163_v6  ;;  %v7253_v53 = vpack.c.bf16 %v5394_v40, %v5392_v13  ;;  %v7255_v6 = vpack.c.bf16 %v5399_v41, %v5397_v21  ;;  %v5513_v29 = vld [vmem:[#allocation20 + $0x110] sm:$0xff]  ;;  %v5514_v5 = vld [vmem:[#allocation20 + $0x118] sm:$0xff]  ;;  %v5515_v21 = vld [vmem:[#allocation20 + $0x120] sm:$0xff] }
0x275e   : > { %6809 = vmatmul.mubr.f32.gmra.mrb[48].mxu0 %v5164_v25  ;;  %v5396_v25 = vld [vmem:[#allocation17 + $0x1e0] sm:$0xff]  ;;  %v7265_v13 = vpack.c.bf16 %v5514_v5, %v5513_v29  ;;  %v5516_v41 = vld [vmem:[#allocation20 + $0x128] sm:$0xff] }
0x2794   : > { %v5272_v10 = vpop.xlane.xlu0 %5271 }
0x2795   : > { %v5279_v35 = vmul.f32 0.0078125, %v5272_v10 }
0x2797   : > { %v9758_v14 = vsub.f32 %v9733_v61, %v5279_v35 }
0x2798   : > { %v5274_v19 = vpop.xlane.xlu1 %5273 }
0x2799   : > { %v5280_v26 = vmul.f32 0.0078125, %v5274_v19  ;;  %v5287_v59 = vmul.f32 %v9758_v14, %v9758_v14  ;;  %v5398_v19 = vld [vmem:[#allocation17 + $0x1f0] sm:$0xff] }
0x279b   : > { %v9749_v18 = vsub.f32 %v9737_v60, %v5280_v26  ;;  %v7257_v26 = vpack.c.bf16 %v5398_v19, %v5396_v25  ;;  %v7269_v25 = vpack.c.bf16 %v5516_v41, %v5515_v21 }
0x279d   : > { %v5288_v30 = vmul.f32 %v9749_v18, %v9749_v18 }
0x279f   : > { %5293 = vadd.xlane.f32.xlu1 %v5288_v30 }
0x282c   : > { %v5294_v30 = vpop.xlane.xlu1 %5293 }
0x282d   : > { %v5300_v10 = vmul.f32 0.007874016, %v5294_v30  ;;  %v5518_v30 = vld [vmem:[#allocation20 + $0x138] sm:$0xff] }
0x282f   : > { %7844 = vrsqrt.f32 %v5300_v10  ;;  %vm5312_vm8 = vcmp.eq.f32.partialorder %v5300_v10, inf  ;;  %vm5314_vm9 = vcmp.eq.f32.partialorder %v5300_v10, 0.0 }
0x2831   : > { %v6810_v23 = vpop.f32.mrb[48].mxu0 }
0x2832   : > { %v5258_v11 = vpop.f32.mrb[49].mxu0  ;;  %v9761_v16 = vadd.f32 %v6810_v23, %v9451_v49  ;;  %v5374_v49 = vld [vmem:[#allocation17 + $0x130] sm:$0xff] }
0x2833   : > { %v9754_v12 = vadd.f32 %v5258_v11, %v9446_v58  ;;  %v5370_v58 = vld [vmem:[#allocation17 + $0x110] sm:$0xff]  ;;  %v7233_v32 = vpack.c.bf16 %v5374_v49, %v5372_v0  ;;  %v5315_v0 = vand.u32 2147483648, %v5300_v10 }
0x2834   : > { %v7229_v52 = vpack.c.bf16 %v5370_v58, %v5368_v22 }
0x2835   : > { %5275 = vadd.xlane.f32.xlu0 %v9754_v12 }
0x2836   : > { %7230 = vmatpush1.bf16.msra.mxu1 %v7229_v52 }
0x2837   : > { %7232 = vmatprep.subr.bf16.mxu1 %v7231_v4 }
0x2839   : > { %5277 = vadd.xlane.f32.xlu0 %v9761_v16  ;;  %v7845_v58 = vpop.eup %7844 }
0x283a   : > { %7234 = vmatpush1.bf16.msra.mxu1 %v7233_v32  ;;  %v5311_v48 = vmul.f32 %v7845_v58, %v5300_v10  ;;  %v5538_v58 = vld [vmem:[#allocation20 + $0x1d8] sm:$0xff] }
0x283b   : > { %7236 = vmatprep.subr.bf16.mxu1 %v7235_v39 }
0x283c   : > { %v5313_v4 = vsel %vm5312_vm8, %v5300_v10, %v5311_v48  ;;  %v5535_v10 = vld [vmem:[#allocation20 + $0x1c0] sm:$0xff]  ;;  %v5521_v48 = vld [vmem:[#allocation20 + $0x150] sm:$0xff] }
0x283d   : > { %5291 = vadd.xlane.f32.xlu0 %v5287_v59  ;;  %v5316_v49 = vsel %vm5314_vm9, %v5315_v0, %v5313_v4  ;;  %v5522_v4 = vld [vmem:[#allocation20 + $0x158] sm:$0xff]  ;;  %v5539_v0 = vld [vmem:[#allocation20 + $0x1e0] sm:$0xff] }
0x283e   : > { %7238 = vmatpush1.bf16.msra.mxu1 %v7237_v42  ;;  %v5332_v9 = vadd.f32 1e-06, %v5316_v49  ;;  %v5540_v49 = vld [vmem:[#allocation20 + $0x1e8] sm:$0xff] }
0x283f   : > { %7240 = vmatprep.subr.bf16.mxu1 %v7239_v63 }
0x2842   : > { %7242 = vmatpush1.bf16.msra.mxu1 %v7241_v45 }
0x2843   : > { %7244 = vmatprep.subr.bf16.mxu1 %v7243_v51 }
0x2846   : > { %7246 = vmatpush1.bf16.msra.mxu1 %v7245_v1  ;;  %v5512_v1 = vld [vmem:[#allocation20 + $0x108] sm:$0xff] }
0x2847   : > { %7248 = vmatprep.subr.bf16.mxu1 %v7247_v36  ;;  %v7261_v37 = vpack.c.bf16 %v5512_v1, %v5511_v8  ;;  %v7263_v36 = vpack.c.bf16 %v5530_v33, %v5529_v20 }
0x284a   : > { %7250 = vmatpush1.bf16.msra.mxu1 %v7249_v7  ;;  %v5531_v7 = vld [vmem:[#allocation20 + $0x1a0] sm:$0xff] }
0x284b   : > { %7252 = vmatprep.subr.bf16.mxu1 %v7251_v24  ;;  %v5532_v24 = vld [vmem:[#allocation20 + $0x1a8] sm:$0xff] }
0x284c   : > { %v7267_v40 = vpack.c.bf16 %v5532_v24, %v5531_v7 }
0x284e   : > { %7254 = vmatpush1.bf16.msra.mxu1 %v7253_v53  ;;  %v5533_v53 = vld [vmem:[#allocation20 + $0x1b0] sm:$0xff] }
0x284f   : > { %7256 = vmatprep.subr.bf16.mxu1 %v7255_v6  ;;  %v5534_v6 = vld [vmem:[#allocation20 + $0x1b8] sm:$0xff] }
0x2850   : > { %v7271_v19 = vpack.c.bf16 %v5534_v6, %v5533_v53 }
0x2852   : > { %7258 = vmatpush1.bf16.msra.mxu1 %v7257_v26  ;;  %v5517_v26 = vld [vmem:[#allocation20 + $0x130] sm:$0xff] }
0x28c2   : > { %v5276_v23 = vpop.xlane.xlu0 %5275 }
0x28c3   : > { %v5281_v11 = vmul.f32 0.0078125, %v5276_v23  ;;  %v5536_v23 = vld [vmem:[#allocation20 + $0x1c8] sm:$0xff] }
0x28c5   : > { %v9767_v35 = vsub.f32 %v9754_v12, %v5281_v11  ;;  %v7273_v11 = vpack.c.bf16 %v5518_v30, %v5517_v26 }
0x28c6   : > { %v5278_v59 = vpop.xlane.xlu0 %5277 }
0x28c7   : > { %v5282_v31 = vmul.f32 0.0078125, %v5278_v59  ;;  %v5289_v62 = vmul.f32 %v9767_v35, %v9767_v35  ;;  %v7275_v59 = vpack.c.bf16 %v5536_v23, %v5535_v10 }
0x28c9   : > { %v9772_v55 = vsub.f32 %v9761_v16, %v5282_v31  ;;  %5295 = vadd.xlane.f32.xlu0 %v5289_v62  ;;  %v5519_v31 = vld [vmem:[#allocation20 + $0x140] sm:$0xff]  ;;  %v5520_v62 = vld [vmem:[#allocation20 + $0x148] sm:$0xff] }
0x28ca   : > { %v5292_v22 = vpop.xlane.xlu0 %5291 }
0x28cb   : > { %v5299_v52 = vmul.f32 0.007874016, %v5292_v22  ;;  %v5290_v46 = vmul.f32 %v9772_v55, %v9772_v55  ;;  %v5537_v22 = vld [vmem:[#allocation20 + $0x1d0] sm:$0xff] }
0x28cd   : > { %7846 = vrsqrt.f32 %v5299_v52  ;;  %5297 = vadd.xlane.f32.xlu1 %v5290_v46  ;;  %vm5305_vm10 = vcmp.eq.f32.partialorder %v5299_v52, inf  ;;  %v5308_v39 = vand.u32 2147483648, %v5299_v52  ;;  %vm5307_vm11 = vcmp.eq.f32.partialorder %v5299_v52, 0.0 }
0x28ce   : > { %7848 = vrcp.f32 %v5332_v9  ;;  %v7279_v46 = vpack.c.bf16 %v5538_v58, %v5537_v22  ;;  %v5523_v9 = vld [vmem:[#allocation20 + $0x160] sm:$0xff] }
0x28d7   : > { %v7847_v32 = vpop.eup %7846 }
0x28d8   : > { %v5304_v50 = vmul.f32 %v7847_v32, %v5299_v52  ;;  %v7849_v44 = vpop.eup %7848  ;;  %v7281_v32 = vpack.c.bf16 %v5522_v4, %v5521_v48 }
0x28d9   : > { %v5344_v54 = vmul.f32 %v7849_v44, %v9749_v18  ;;  %v5528_v18 = vld [vmem:[#allocation20 + $0x188] sm:$0xff] }
0x28da   : > { %v5306_v34 = vsel %vm5305_vm10, %v5299_v52, %v5304_v50  ;;  %v7277_v52 = vpack.c.bf16 %v5520_v62, %v5519_v31  ;;  %v7283_v50 = vpack.c.bf16 %v5540_v49, %v5539_v0 }
0x28db   : > { %v5309_v38 = vsel %vm5307_vm11, %v5308_v39, %v5306_v34  ;;  %v5354_v51 = vmul.f32 %v9778_v56, %v5344_v54  ;;  %v5524_v39 = vld [vmem:[#allocation20 + $0x168] sm:$0xff] }
0x28dc   : > { %v5331_v42 = vadd.f32 1e-06, %v5309_v38  ;;  %v7285_v34 = vpack.c.bf16 %v5524_v39, %v5523_v9  ;;  %v5541_v38 = vld [vmem:[#allocation20 + $0x1f0] sm:$0xff]  ;;  %v6124_v39 = vld [vmem:[#allocation22 + $0x1] ss:$0 sm:$0xff] }
0x28dd   : > { %v5364_v27 = vadd.f32 %v9781_v57, %v5354_v51 }
0x28de   : > { %7850 = vrcp.f32 %v5331_v42  ;;  %v5542_v42 = vld [vmem:[#allocation20 + $0x1f8] sm:$0xff] }
0x28df   : > { %v7287_v44 = vpack.c.bf16 %v5542_v42, %v5541_v38 }
0x28e8   : > { %v7851_v43 = vpop.eup %7850 }
0x28e9   : > { %v5343_v63 = vmul.f32 %v7851_v43, %v9758_v14  ;;  %v5527_v14 = vld [vmem:[#allocation20 + $0x180] sm:$0xff]  ;;  %v5525_v43 = vld [vmem:[#allocation20 + $0x170] sm:$0xff] }
0x28ea   : > { %v7259_v28 = vpack.c.bf16 %v5528_v18, %v5527_v14 }
0x28eb   : > { %v5353_v45 = vmul.f32 %v9778_v56, %v5343_v63  ;;  %v5526_v63 = vld [vmem:[#allocation20 + $0x178] sm:$0xff] }
0x28ec   : > { %7260 = vmatprep.subr.bf16.mxu0 %v7259_v28  ;;  %v7289_v54 = vpack.c.bf16 %v5526_v63, %v5525_v43 }
0x28ed   : > { %v5363_v47 = vadd.f32 %v9781_v57, %v5353_v45  ;;  %7262 = vmatpush3.bf16.msra.mxu0 %v7261_v37 }
0x28ee   : > { %7264 = vmatprep.subr.bf16.mxu0 %v7263_v36 }
0x28ef   : > { %5478 = vmatmul.mubr.f32.vlgmr.msra.gmra.mrb[62].mxu1 %v5363_v47 }
0x28f0   : > { %5483 = vmatprep.mubr.f32.mxu1 %v8428_v15 }
0x28f1   : > { %7266 = vmatpush3.bf16.msra.mxu0 %v7265_v13 }
0x28f2   : > { %7268 = vmatprep.subr.bf16.mxu0 %v7267_v40 }
0x28f3   : > { %5484 = vmatmul.mubr.f32.gmra.mrb[64].mxu1 %v5364_v27 }
0x28f4   : > { %5489 = vmatprep.mubr.f32.mxu1 %v8428_v15 }
0x28f5   : > { %7270 = vmatpush3.bf16.msra.mxu0 %v7269_v25 }
0x28f6   : > { %7272 = vmatprep.subr.bf16.mxu0 %v7271_v19  ;;  %v5401_v19 = vld [vmem:[#allocation19 + $0x2] sm:$0x3] }
0x28f7   : > { %v5406_v26 = vrot.slane %v5401_v19, %v2965_v3 }
0x28f9   : > { %7274 = vmatpush3.bf16.msra.mxu0 %v7273_v11 }
0x28fa   : > { %7276 = vmatprep.subr.bf16.mxu0 %v7275_v59 }
0x28fd   : > { %7278 = vmatpush3.bf16.msra.mxu0 %v7277_v52 }
0x28fe   : > { %7280 = vmatprep.subr.bf16.mxu0 %v7279_v46 }
0x2901   : > { %7282 = vmatpush3.bf16.msra.mxu0 %v7281_v32 }
0x2902   : > { %7284 = vmatprep.subr.bf16.mxu0 %v7283_v50 }
0x2905   : > { %7286 = vmatpush3.bf16.msra.mxu0 %v7285_v34 }
0x2906   : > { %7288 = vmatprep.subr.bf16.mxu0 %v7287_v44 }
0x2909   : > { %7290 = vmatpush3.bf16.msra.mxu0 %v7289_v54 }
0x2956   : > { %v5296_v45 = vpop.xlane.xlu0 %5295 }
0x2957   : > { %v5301_v47 = vmul.f32 0.007874016, %v5296_v45 }
0x2959   : > { %7852 = vrsqrt.f32 %v5301_v47  ;;  %vm5319_vm12 = vcmp.eq.f32.partialorder %v5301_v47, inf  ;;  %v5322_v8 = vand.u32 2147483648, %v5301_v47  ;;  %vm5321_vm2 = vcmp.eq.f32.partialorder %v5301_v47, 0.0 }
0x295a   : > { %v5298_v51 = vpop.xlane.xlu1 %5297 }
0x295b   : > { %v5302_v27 = vmul.f32 0.007874016, %v5298_v51 }
0x295d   : > { %7854 = vrsqrt.f32 %v5302_v27  ;;  %vm5326_vm3 = vcmp.eq.f32.partialorder %v5302_v27, inf  ;;  %v5329_v36 = vand.u32 2147483648, %v5302_v27  ;;  %vm5328_vm4 = vcmp.eq.f32.partialorder %v5302_v27, 0.0 }
0x2963   : > { %v7853_v14 = vpop.eup %7852 }
0x2964   : > { %v5318_v18 = vmul.f32 %v7853_v14, %v5301_v47 }
0x2966   : > { %v5320_v28 = vsel %vm5319_vm12, %v5301_v47, %v5318_v18 }
0x2967   : > { %v7855_v1 = vpop.eup %7854  ;;  %v5323_v20 = vsel %vm5321_vm2, %v5322_v8, %v5320_v28 }
0x2968   : > { %v5325_v33 = vmul.f32 %v7855_v1, %v5302_v27  ;;  %v5333_v37 = vadd.f32 1e-06, %v5323_v20 }
0x296a   : > { %v5327_v29 = vsel %vm5326_vm3, %v5302_v27, %v5325_v33  ;;  %7856 = vrcp.f32 %v5333_v37 }
0x296b   : > { %v5330_v5 = vsel %vm5328_vm4, %v5329_v36, %v5327_v29 }
0x296c   : > { %v5334_v7 = vadd.f32 1e-06, %v5330_v5 }
0x296e   : > { %7858 = vrcp.f32 %v5334_v7 }
0x2974   : > { %v7857_v24 = vpop.eup %7856 }
0x2975   : > { %v5345_v13 = vmul.f32 %v7857_v24, %v9767_v35  ;;  %v5410_v35 = vrot.slane %v5401_v19, %v2969_v17 }
0x2977   : > { %v5355_v40 = vmul.f32 %v9778_v56, %v5345_v13 }
0x2978   : > { %v7859_v21 = vpop.eup %7858 }
0x2979   : > { %v5365_v41 = vadd.f32 %v9781_v57, %v5355_v40  ;;  %v5346_v53 = vmul.f32 %v7859_v21, %v9772_v55 }
0x297b   : > { %5490 = vmatmul.mubr.f32.gmra.mrb[66].mxu1 %v5365_v41  ;;  %v5356_v6 = vmul.f32 %v9778_v56, %v5346_v53 }
0x297c   : > { %5495 = vmatprep.mubr.f32.mxu1 %v8428_v15 }
0x297d   : > { %v5366_v25 = vadd.f32 %v9781_v57, %v5356_v6 }
0x297f   : > { %5496 = vmatmul.mubr.f32.gmra.mrb[68].mxu1 %v5366_v25 }
0x29c2   : > { %v5479_v30 = vpop.f32.mrb[62].mxu1 }
0x29c3   : > { %v5480_v10 = vadd.f32 %v5479_v30, %v5406_v26  ;;  %v5481_v23 = vpop.f32.mrb[63].mxu1 }
0x29c4   : > { %v5482_v11 = vadd.f32 %v5481_v23, %v5410_v35 }
0x29c5   : > { %v5502_v31 = vmax.f32 %v5480_v10, 0.0 }
0x29c6   : > { %v5503_v55 = vmax.f32 %v5482_v11, 0.0  ;;  %v5485_v59 = vpop.f32.mrb[64].mxu1 }
0x29c7   : > { %v5486_v56 = vadd.f32 %v5485_v59, %v5406_v26  ;;  %v5487_v62 = vpop.f32.mrb[65].mxu1 }
0x29c8   : > { %v5488_v15 = vadd.f32 %v5487_v62, %v5410_v35  ;;  %5615 = vmatprep.mubr.f32.mxu0 %v5503_v55 }
0x29c9   : > { %5616 = vmatmul.mubr.f32.vlgmr.msra.gmra.mrb[50].mxu0 %v5502_v31  ;;  %v5504_v22 = vmax.f32 %v5486_v56, 0.0 }
0x29ca   : > { %v5505_v57 = vmax.f32 %v5488_v15, 0.0 }
0x29cc   : > { %5620 = vmatprep.mubr.f32.mxu0 %v5505_v57 }
0x29cd   : > { %5621 = vmatmul.mubr.f32.gmra.mrb[52].mxu0 %v5504_v22 }
0x2a4e   : > { %v5491_v3 = vpop.f32.mrb[66].mxu1 }
0x2a4f   : > { %v5492_v58 = vadd.f32 %v5491_v3, %v5406_v26  ;;  %v5493_v2 = vpop.f32.mrb[67].mxu1 }
0x2a50   : > { %v5494_v17 = vadd.f32 %v5493_v2, %v5410_v35  ;;  %v6125_v2 = vld [vmem:[#allocation23] ss:$0 sm:$0xff] }
0x2a51   : > { %v5506_v48 = vmax.f32 %v5492_v58, 0.0 }
0x2a52   : > { %v5507_v52 = vmax.f32 %v5494_v17, 0.0  ;;  %v5497_v46 = vpop.f32.mrb[68].mxu1 }
0x2a53   : > { %v5498_v4 = vadd.f32 %v5497_v46, %v5406_v26  ;;  %v5499_v0 = vpop.f32.mrb[69].mxu1 }
0x2a54   : > { %v5500_v49 = vadd.f32 %v5499_v0, %v5410_v35  ;;  %5625 = vmatprep.mubr.f32.mxu0 %v5507_v52  ;;  %v6126_v52 = vld [vmem:[#allocation25] ss:$0 sm:$0xff] }
0x2a55   : > { %5626 = vmatmul.mubr.f32.gmra.mrb[54].mxu0 %v5506_v48  ;;  %v5508_v50 = vmax.f32 %v5498_v4, 0.0 }
0x2a56   : > { %v5509_v32 = vmax.f32 %v5500_v49, 0.0 }
0x2a58   : > { %5630 = vmatprep.mubr.f32.mxu0 %v5509_v32 }
0x2a59   : > { %5631 = vmatmul.mubr.f32.gmra.mrb[56].mxu0 %v5508_v50 }
0x2a9c   : > { %v6423_v9 = vpop.f32.mrb[50].mxu0 }
0x2a9d   : > { %v6424_v34 = vpop.f32.mrb[51].mxu0 }
0x2a9e   : > { %v6425_v38 = vadd.f32 %v6424_v34, %v6423_v9 }
0x2aa0   : > { %v5618_v42 = vadd.f32 %v6425_v38, %v6124_v39  ;;  %v6426_v44 = vpop.f32.mrb[52].mxu0 }
0x2aa1   : > { %v6427_v43 = vpop.f32.mrb[53].mxu0 }
0x2aa2   : > { %v6428_v63 = vadd.f32 %v6427_v43, %v6426_v44  ;;  %v5636_v54 = vadd.f32 %v5618_v42, %v9733_v61 }
0x2aa4   : > { %v5623_v45 = vadd.f32 %v6428_v63, %v6124_v39  ;;  %5642 = vadd.xlane.f32.xlu0 %v5636_v54 }
0x2aa6   : > { %v5637_v47 = vadd.f32 %v5623_v45, %v9737_v60 }
0x2aa8   : > { %5644 = vadd.xlane.f32.xlu1 %v5637_v47 }
0x2b28   : > { %v6429_v51 = vpop.f32.mrb[54].mxu0 }
0x2b29   : > { %v6430_v27 = vpop.f32.mrb[55].mxu0 }
0x2b2a   : > { %v6431_v14 = vadd.f32 %v6430_v27, %v6429_v51 }
0x2b2c   : > { %v5628_v18 = vadd.f32 %v6431_v14, %v6124_v39  ;;  %v6432_v8 = vpop.f32.mrb[56].mxu0 }
0x2b2d   : > { %v6433_v28 = vpop.f32.mrb[57].mxu0 }
0x2b2e   : > { %v6434_v1 = vadd.f32 %v6433_v28, %v6432_v8  ;;  %v5638_v20 = vadd.f32 %v5628_v18, %v9754_v12 }
0x2b30   : > { %v5633_v33 = vadd.f32 %v6434_v1, %v6124_v39  ;;  %5646 = vadd.xlane.f32.xlu0 %v5638_v20 }
0x2b31   : > { %v5643_v37 = vpop.xlane.xlu0 %5642 }
0x2b32   : > { %v5650_v36 = vmul.f32 0.0078125, %v5643_v37  ;;  %v5639_v61 = vadd.f32 %v5633_v33, %v9761_v16 }
0x2b34   : > { %v5654_v29 = vsub.f32 %v5636_v54, %v5650_v36  ;;  %5648 = vadd.xlane.f32.xlu1 %v5639_v61 }
0x2b35   : > { %v5645_v5 = vpop.xlane.xlu1 %5644 }
0x2b36   : > { %v5651_v60 = vmul.f32 0.0078125, %v5645_v5  ;;  %v5658_v7 = vmul.f32 %v5654_v29, %v5654_v29 }
0x2b38   : > { %v5655_v24 = vsub.f32 %v5637_v47, %v5651_v60  ;;  %5662 = vadd.xlane.f32.xlu0 %v5658_v7 }
0x2b3a   : > { %v5659_v13 = vmul.f32 %v5655_v24, %v5655_v24 }
0x2b3c   : > { %5664 = vadd.xlane.f32.xlu1 %v5659_v13 }
0x2bbd   : > { %v5647_v40 = vpop.xlane.xlu0 %5646 }
0x2bbe   : > { %v5652_v21 = vmul.f32 0.0078125, %v5647_v40 }
0x2bc0   : > { %v9803_v41 = vsub.f32 %v5638_v20, %v5652_v21 }
0x2bc1   : > { %v5649_v12 = vpop.xlane.xlu1 %5648 }
0x2bc2   : > { %v5653_v53 = vmul.f32 0.0078125, %v5649_v12  ;;  %v5660_v6 = vmul.f32 %v9803_v41, %v9803_v41 }
0x2bc4   : > { %v9807_v25 = vsub.f32 %v5639_v61, %v5653_v53  ;;  %5666 = vadd.xlane.f32.xlu0 %v5660_v6 }
0x2bc5   : > { %v5663_v16 = vpop.xlane.xlu0 %5662 }
0x2bc6   : > { %v5670_v19 = vmul.f32 0.007874016, %v5663_v16  ;;  %v5661_v26 = vmul.f32 %v9807_v25, %v9807_v25 }
0x2bc8   : > { %7860 = vrsqrt.f32 %v5670_v19  ;;  %5668 = vadd.xlane.f32.xlu1 %v5661_v26  ;;  %vm5676_vm5 = vcmp.eq.f32.partialorder %v5670_v19, inf  ;;  %v5679_v11 = vand.u32 2147483648, %v5670_v19  ;;  %vm5678_vm6 = vcmp.eq.f32.partialorder %v5670_v19, 0.0 }
0x2bc9   : > { %v5665_v35 = vpop.xlane.xlu1 %5664 }
0x2bca   : > { %v5671_v30 = vmul.f32 0.007874016, %v5665_v35 }
0x2bcc   : > { %7862 = vrsqrt.f32 %v5671_v30  ;;  %vm5683_vm7 = vcmp.eq.f32.partialorder %v5671_v30, inf  ;;  %v5686_v15 = vand.u32 2147483648, %v5671_v30  ;;  %vm5685_vm13 = vcmp.eq.f32.partialorder %v5671_v30, 0.0 }
0x2bd2   : > { %v7861_v10 = vpop.eup %7860 }
0x2bd3   : > { %v5675_v23 = vmul.f32 %v7861_v10, %v5670_v19 }
0x2bd5   : > { %v5677_v55 = vsel %vm5676_vm5, %v5670_v19, %v5675_v23 }
0x2bd6   : > { %v7863_v59 = vpop.eup %7862  ;;  %v5680_v31 = vsel %vm5678_vm6, %v5679_v11, %v5677_v55 }
0x2bd7   : > { %v5702_v56 = vadd.f32 1e-06, %v5680_v31  ;;  %v5682_v62 = vmul.f32 %v7863_v59, %v5671_v30 }
0x2bd9   : > { %7864 = vrcp.f32 %v5702_v56  ;;  %v5684_v57 = vsel %vm5683_vm7, %v5671_v30, %v5682_v62 }
0x2bda   : > { %v5687_v22 = vsel %vm5685_vm13, %v5686_v15, %v5684_v57 }
0x2bdb   : > { %v5703_v3 = vadd.f32 1e-06, %v5687_v22 }
0x2bdd   : > { %7866 = vrcp.f32 %v5703_v3 }
0x2be3   : > { %v7865_v58 = vpop.eup %7864 }
0x2be4   : > { %v5714_v17 = vmul.f32 %v7865_v58, %v5654_v29 }
0x2be6   : > { %v5724_v46 = vmul.f32 %v6125_v2, %v5714_v17 }
0x2be7   : > { %v7867_v48 = vpop.eup %7866 }
0x2be8   : > { %v5715_v4 = vmul.f32 %v7867_v48, %v5655_v24  ;;  %v5734_v0 = vadd.f32 %v6126_v52, %v5724_v46 }
0x2bea   : > { %v5725_v49 = vmul.f32 %v6125_v2, %v5715_v4  ;;  %5738 = vst [vmem:[%s9812_s18] sm:$0xff] %v5734_v0 }
0x2bec   : > { %v5735_v32 = vadd.f32 %v6126_v52, %v5725_v49 }
0x2bee   : > { %5739 = vst [vmem:[%s9812_s18 + $0x8] sm:$0xff] %v5735_v32 }
0x2c51   : > { %v5667_v50 = vpop.xlane.xlu0 %5666 }
0x2c52   : > { %v5672_v9 = vmul.f32 0.007874016, %v5667_v50 }
0x2c54   : > { %7868 = vrsqrt.f32 %v5672_v9  ;;  %vm5690_vm14 = vcmp.eq.f32.partialorder %v5672_v9, inf  ;;  %v5693_v44 = vand.u32 2147483648, %v5672_v9  ;;  %vm5692_vm15 = vcmp.eq.f32.partialorder %v5672_v9, 0.0 }
0x2c55   : > { %v5669_v39 = vpop.xlane.xlu1 %5668 }
0x2c56   : > { %v5673_v34 = vmul.f32 0.007874016, %v5669_v39 }
0x2c58   : > { %7870 = vrsqrt.f32 %v5673_v34  ;;  %vm5697_vm0 = vcmp.eq.f32.partialorder %v5673_v34, inf  ;;  %v5700_v51 = vand.u32 2147483648, %v5673_v34  ;;  %vm5699_vm1 = vcmp.eq.f32.partialorder %v5673_v34, 0.0 }
0x2c5e   : > { %v7869_v38 = vpop.eup %7868 }
0x2c5f   : > { %v5689_v42 = vmul.f32 %v7869_v38, %v5672_v9 }
0x2c61   : > { %v5691_v43 = vsel %vm5690_vm14, %v5672_v9, %v5689_v42 }
0x2c62   : > { %v7871_v63 = vpop.eup %7870  ;;  %v5694_v54 = vsel %vm5692_vm15, %v5693_v44, %v5691_v43 }
0x2c63   : > { %v5704_v45 = vadd.f32 1e-06, %v5694_v54  ;;  %v5696_v47 = vmul.f32 %v7871_v63, %v5673_v34 }
0x2c65   : > { %7872 = vrcp.f32 %v5704_v45  ;;  %v5698_v27 = vsel %vm5697_vm0, %v5673_v34, %v5696_v47 }
0x2c66   : > { %v5701_v14 = vsel %vm5699_vm1, %v5700_v51, %v5698_v27 }
0x2c67   : > { %v5705_v18 = vadd.f32 1e-06, %v5701_v14 }
0x2c69   : > { %7874 = vrcp.f32 %v5705_v18 }
0x2c6f   : > { %v7873_v8 = vpop.eup %7872 }
0x2c70   : > { %v5716_v28 = vmul.f32 %v7873_v8, %v9803_v41 }
0x2c72   : > { %v5726_v1 = vmul.f32 %v6125_v2, %v5716_v28 }
0x2c73   : > { %v7875_v20 = vpop.eup %7874 }
0x2c74   : > { %v5717_v33 = vmul.f32 %v7875_v20, %v9807_v25  ;;  %v5736_v37 = vadd.f32 %v6126_v52, %v5726_v1 }
0x2c76   : > { %v5727_v36 = vmul.f32 %v6125_v2, %v5717_v33  ;;  %5740 = vst [vmem:[%s9812_s18 + $0x10] sm:$0xff] %v5736_v37 }
0x2c78   : > { %v5737_v61 = vadd.f32 %v6126_v52, %v5727_v36 }
0x2c7a   : > { %5741 = vst [vmem:[%s9812_s18 + $0x18] sm:$0xff] %v5737_v61 }
0x2c7b   : > { %8317 = shalt.err (!%p8314_p13)
}
0x2c7c   : > { %s8318_s30 = scalar_lea.hbm %s9824_s4, 512  ;;  %s8322_s15 = scalar_lea.hbm %s9965_s3, 1024 }
0x2c7d   : > { %p8319_p7 = scmp.ne.s32.totalorder %s9824_s4, %s8318_s30  ;;  %p8323_p2 = scmp.lt.u32.totalorder %s9824_s4, %s9965_s3 }
0x2c7e   : > { %p8324_p5 = scmp.lt.u32.totalorder %s8322_s15, %s8318_s30  ;;  %p8326_p4 = scmp.lt.u32.totalorder %s8318_s30, %s9824_s4 }
0x2c7f   : > { %p8320_p9 = pnand %p8319_p7, %p9966_p3 }
0x2c80   : > { %p8325_p8 = por %p8324_p5, %p8323_p2 }
0x2c81   : > { %p8321_p0 = pneg %p8320_p9 }
0x2c82   : > { %p8327_p10 = por %p8326_p4, %p8325_p8 }
0x2c84   : > { %p8328_p1 = pnand %p8327_p10, %p8321_p0 }
0x2c86   : > { %8331 = shalt.err (!%p8328_p1)
}
0x2c87   : > { %s8433_s8 = smov 128   ;;  %s8434_s28 = smov 8  }
0x2c88   : > { %7347 = dma.vmem_to_hbm [thread:$0]  (%p9966_p3), %s9826_s25, 512, %s9824_s4, %s5743_s27, %s8433_s8, %s8433_s8, %s8434_s28  }
0x2c89 PF: > { %s9967_s26 = sld [smem:[#allocation37_spill]]  ;;  %p9968_p11 = scmp.ne.s32.totalorder %s9941_s2, 0 }
0x2c8a   : > { %p9969_p12 = scmp.ge.s32.totalorder %s8402_s21, 2 }
0x2c8c   : > { %p7397_p6 = pnand %p9969_p12, %p9968_p11 }
0x2c8f   : > { %s5772_s1 = sand.u32 1, %s9967_s26  }
0x2c90   : > { %s5773_s23 = scalar_lea.sflag [#allocation4], %s5772_s1 }
0x2c91   : > { %8385 = dma.done.wait (!%p7397_p6), %s5773_s23, 512  }
0x2c92   : > { %8387 = vsyncadd (!%p7397_p6), %s5773_s23, 4294966784  ;;  %s9970_s18 = sld [smem:[#allocation38_spill]]  ;;  %p37_p13 = scmp.ge.s32.totalorder %s8868_s16, 4  }
0x2c93   : > { %s9971_s19 = smov %s8398_s20  ;;  %s9972_s20 = smov %s8879_s29 }
0x2c94   : > { %s9973_s21 = smov %s8868_s16  ;;  %39 = sbr.rel (!%p37_p13) target bundleno = 25 (0x19), region = 201 }
0x2c9b   :  { %5778 = vsyncpa [#allocation3], 1 }
0x2c9c   :  { %5780 = vsyncpa [#allocation3 + $0x1], 1 }
0x2c9d   :  { %5781 = vsyncpa [#allocation6], 1 }
0x2c9e   :  { %5783 = vsyncpa [#allocation6 + $0x1], 1 }
0x2c9f   :  { %5784 = vsyncpa [#allocation9], 1 }
0x2ca0   :  { %5785 = vsyncpa [#allocation12], 1 }
0x2ca1   :  { %5786 = vsyncpa [#allocation15], 1 }
0x2ca2   :  { %5787 = vsyncpa [#allocation18], 1 }
0x2ca3   :  { %5788 = vsyncpa [#allocation21], 1 }
0x2ca4   :  { %5789 = vsyncpa [#allocation24], 1 }
0x2ca5   :  { %5790 = vsyncpa [#allocation4], 1 }
0x2ca6   :  { %5792 = vsyncpa [#allocation4 + $0x1], 1 }

</bundles_post_ra>
